<compile_context>
chip_gen: v7x
topology: tpu7x:2x2x1
jax: 0.10.0
libtpu: 0.0.40
codegen_flags: <defaults>
</compile_context>

<pallas_src>
import functools

import numpy as np
import jax
import jax.numpy as jnp
from jax.experimental import pallas as pl
from jax.experimental.pallas import tpu as pltpu


# --------------------------------------------------------------------------
# Pallas kernel: fused gate matmuls + gate math + decouple conv per row tile
# --------------------------------------------------------------------------
def _stlstm_kernel(xp_ref, hp_ref, c_ref, m_ref, wx_ref, wh_ref, wcm_ref,
                   bg_ref, wd_ref, bd_ref, cm_out_ref, h_out_ref, loss_ref, *,
                   nh, valid_rows, tile_rows):
    two = 2 * nh

    # f32 recurrent state [c | m]; reused (as bf16) for the cc_f/mm 1x1 convs.
    cm = jnp.concatenate([c_ref[...], m_ref[...]], axis=-1)        # (T, 2nh) f32

    # Gate pre-activations: three bf16 MXU matmuls accumulated in f32.
    g = jnp.dot(xp_ref[...], wx_ref[...], preferred_element_type=jnp.float32)
    g = g + jnp.dot(hp_ref[...], wh_ref[...],
                    preferred_element_type=jnp.float32)
    g = g + jnp.dot(cm.astype(jnp.bfloat16), wcm_ref[...],
                    preferred_element_type=jnp.float32)
    g = g + bg_ref[...]

    # One full-width (8*nh lanes) tanh pass.  The i/o/f (sigmoid) columns were
    # pre-scaled by 0.5 at pack time, so sigmoid(z) = 0.5*tanh(z/2)+0.5 and
    # tanh(z) for the g columns share the same EUP pass.
    t = jnp.tanh(g)
    sig_io = 0.5 * t[:, :2 * two] + 0.5       # [sig(i_c)|sig(i_m)|sig(o_c)|sig(o_m)]
    tan_g = t[:, 2 * two:3 * two]             # [tanh(g_c)|tanh(g_m)]
    sig_f = 0.5 * t[:, 3 * two:] + 0.5        # [sig(f_c + cc_f)|sig(f_m)]

    delta = sig_io[:, :two] * tan_g           # [delta_c | delta_m]
    cm_new = sig_f * cm + delta               # [c_new   | m_new  ]
    h2 = sig_io[:, two:] * jnp.tanh(cm_new)   # [h_c_new | h_m_new]

    cm_out_ref[...] = cm_new
    h_out_ref[...] = (h2[:, :nh] + h2[:, nh:]).astype(jnp.bfloat16)

    # Fused decouple 1x1 convs: d = delta_c@Wcd - delta_m@Wmd + (bcd - bmd).
    # Reduced in-kernel to a per-tile partial sum; padded rows are masked.
    d = jnp.dot(delta.astype(jnp.bfloat16), wd_ref[...],
                preferred_element_type=jnp.float32) + bd_ref[...]
    ridx = (pl.program_id(0) * tile_rows
            + jax.lax.broadcasted_iota(jnp.int32, (tile_rows, 1), 0))
    partial = jnp.sum(jnp.where(ridx < valid_rows, jnp.abs(d), 0.0))
    loss_ref[...] = jnp.zeros((8, 128), jnp.float32) + partial


# --------------------------------------------------------------------------
# Glue: NCHW <-> rows, im2col, weight packing
# --------------------------------------------------------------------------
def _nchw_to_rows(x):
    n, c, h, w = x.shape
    return x.transpose(0, 2, 3, 1).reshape(n * h * w, c)


def _rows_to_nchw(y, n, h, w):
    c = y.shape[-1]
    return y.reshape(n, h, w, c).transpose(0, 3, 1, 2)


def _im2col(x, k):
    """x: (N, C, H, W) -> (N*H*W, C*k*k) with column order (C, kh, kw)."""
    n, c, h, w = x.shape
    pad = k // 2
    xp = jnp.pad(x, ((0, 0), (0, 0), (pad, pad), (pad, pad)))
    cols = []
    for dh in range(k):
        for dw in range(k):
            cols.append(xp[:, :, dh:dh + h, dw:dw + w])      # (N, C, H, W)
    patches = jnp.stack(cols, axis=2)                        # (N, C, k*k, H, W)
    patches = patches.reshape(n, c * k * k, h, w)
    return patches.transpose(0, 2, 3, 1).reshape(n * h * w, c * k * k)


def _pack_conv(w):
    """torch conv weight (Cout, Cin, kh, kw) -> matmul weight (Cin*kh*kw, Cout)."""
    cout = w.shape[0]
    return w.reshape(cout, -1).T


def _pack_fused(params, nh):
    """Fused gate weights split into x / h / (c|m) row blocks.

    Column order (each block nh wide):
        [ i_c | i_m | o_c | o_m | g_c | g_m | f_c | f_m ]
    The i/o/f (sigmoid) columns are pre-scaled by 0.5 so the kernel applies a
    single full-width tanh and recovers sigmoid(z) = 0.5*tanh(z/2) + 0.5.
    conv_cc contributes only its f slice (into f_c); conv_mm contributes to the
    *_m columns; the unused cc_i / cc_o slices are dropped.
    """
    pk = lambda name: _pack_conv(params[name + "_w"])
    wxc, whc, wcc = pk("xc"), pk("hc"), pk("cc")
    wxm, whm, wmm = pk("xm"), pk("hm"), pk("mm")
    b = lambda name: params[name + "_b"]
    bxc, bhc, bcc = b("xc"), b("hc"), b("cc")
    bxm, bhm, bmm = b("xm"), b("hm"), b("mm")

    def col(w, idx):
        return w[:, idx * nh:(idx + 1) * nh]

    def bcol(bv, idx):
        return bv[idx * nh:(idx + 1) * nh]

    zc = jnp.zeros((nh, nh), jnp.float32)
    I, F, G, O = 0, 1, 2, 3                  # torch gate order inside each conv
    CC_F = 1                                 # conv_cc order: (cc_i, cc_f, cc_o)

    # (branch, gate index, activation pre-scale)
    order = [("c", I, 0.5), ("m", I, 0.5), ("c", O, 0.5), ("m", O, 0.5),
             ("c", G, 1.0), ("m", G, 1.0), ("c", F, 0.5), ("m", F, 0.5)]
    wx_c, wh_c, wcm_c, bg_c = [], [], [], []
    for branch, gi, s in order:
        if branch == "c":
            xw, hw = col(wxc, gi), col(whc, gi)
            cmw = jnp.concatenate(
                [col(wcc, CC_F) if gi == F else zc, zc], axis=0)
            bias = bcol(bxc, gi) + bcol(bhc, gi)
            if gi == F:
                bias = bias + bcol(bcc, CC_F)
        else:
            xw, hw = col(wxm, gi), col(whm, gi)
            cmw = jnp.concatenate([zc, col(wmm, gi)], axis=0)
            bias = bcol(bxm, gi) + bcol(bhm, gi) + bcol(bmm, gi)
        wx_c.append(xw * s)
        wh_c.append(hw * s)
        wcm_c.append(cmw * s)
        bg_c.append(bias * s)

    wx = jnp.concatenate(wx_c, axis=1).astype(jnp.bfloat16)     # (cin*k*k, 8nh)
    wh = jnp.concatenate(wh_c, axis=1).astype(jnp.bfloat16)     # (nh*k*k, 8nh)
    wcm = jnp.concatenate(wcm_c, axis=1).astype(jnp.bfloat16)   # (2nh, 8nh)
    bg = jnp.concatenate(bg_c).reshape(1, 8 * nh).astype(jnp.float32)

    # Fused decouple 1x1 convs: d = delta @ [Wcd; -Wmd] + (bcd - bmd)
    wd = jnp.concatenate([_pack_conv(params["cd_w"]),
                          -_pack_conv(params["md_w"])],
                         axis=0).astype(jnp.bfloat16)           # (2nh, nh)
    bd = (params["cd_b"] - params["md_b"]).reshape(1, nh).astype(jnp.float32)
    return wx, wh, wcm, bg, wd, bd


def _round_up(v, m):
    return ((v + m - 1) // m) * m


# --------------------------------------------------------------------------
# Wrapper calling pallas_call
# --------------------------------------------------------------------------
def stlstm_cell_forward(x, h_c, c_c, m_c, params, num_hidden, filter_size,
                        tile_rows=2048):
    n, _, hh, ww = x.shape
    nh = num_hidden
    k = filter_size
    rows = n * hh * ww

    # Separate pallas inputs (no XLA-side concat of a fused A slab).
    xp = _im2col(x.astype(jnp.bfloat16), k)          # (rows, cin*k*k) bf16
    hp = _im2col(h_c.astype(jnp.bfloat16), k)        # (rows, nh*k*k)  bf16
    c2 = _nchw_to_rows(c_c)                          # (rows, nh)      f32
    m2 = _nchw_to_rows(m_c)                          # (rows, nh)      f32

    wx, wh, wcm, bg, wd, bd = _pack_fused(params, nh)

    # Big tiles to amortize per-grid-step overhead, but keep >= 2 grid steps
    # when possible so v7x's two TensorCores both get work ("parallel" axis).
    tile_rows = int(tile_rows)
    max_tile_two_steps = _round_up(max((rows + 1) // 2, 256), 256)
    tile_rows = max(256, min(tile_rows, max_tile_two_steps))
    padded = _round_up(rows, tile_rows)
    if padded != rows:
        pad = ((0, padded - rows), (0, 0))
        xp, hp = jnp.pad(xp, pad), jnp.pad(hp, pad)
        c2, m2 = jnp.pad(c2, pad), jnp.pad(m2, pad)
    grid = padded // tile_rows

    kernel = functools.partial(_stlstm_kernel, nh=nh, valid_rows=rows,
                               tile_rows=tile_rows)
    row_spec = lambda w: pl.BlockSpec((tile_rows, w), lambda i: (i, 0))
    const_spec = lambda a: pl.BlockSpec(a.shape, lambda i: (0, 0))

    out_cm, out_h, out_loss = pl.pallas_call(
        kernel,
        out_shape=(jax.ShapeDtypeStruct((padded, 2 * nh), jnp.float32),
                   jax.ShapeDtypeStruct((padded, nh), jnp.bfloat16),
                   jax.ShapeDtypeStruct((grid * 8, 128), jnp.float32)),
        grid_spec=pltpu.PrefetchScalarGridSpec(
            num_scalar_prefetch=0,
            grid=(grid,),
            in_specs=[row_spec(xp.shape[1]), row_spec(hp.shape[1]),
                      row_spec(nh), row_spec(nh),
                      const_spec(wx), const_spec(wh), const_spec(wcm),
                      const_spec(bg), const_spec(wd), const_spec(bd)],
            out_specs=(row_spec(2 * nh), row_spec(nh),
                       pl.BlockSpec((8, 128), lambda i: (i, 0))),
        ),
        compiler_params=pltpu.CompilerParams(
            dimension_semantics=("parallel",),        # no cross-tile state
            vmem_limit_bytes=48 * 1024 * 1024),
    )(xp, hp, c2, m2, wx, wh, wcm, bg, wd, bd)

    out_cm = out_cm[:rows]
    c_new = _rows_to_nchw(out_cm[:, :nh], n, hh, ww)
    m_new = _rows_to_nchw(out_cm[:, nh:], n, hh, ww)
    h_new = _rows_to_nchw(out_h[:rows].astype(jnp.float32), n, hh, ww)
    decouple_loss = jnp.sum(out_loss.reshape(grid, -1)[:, 0]) / (rows * nh)
    return h_new, c_new, m_new, decouple_loss


# --------------------------------------------------------------------------
# Deterministic parameter init (matches nn.Conv2d shapes)
# --------------------------------------------------------------------------
def init_params(key, in_channel, nh, k):
    specs = {
        "xc": (nh * 4, in_channel, k, k),
        "hc": (nh * 4, nh, k, k),
        "cc": (nh * 3, nh, 1, 1),
        "xm": (nh * 4, in_channel, k, k),
        "hm": (nh * 4, nh, k, k),
        "mm": (nh * 4, nh, 1, 1),
        "cd": (nh, nh, 1, 1),
        "md": (nh, nh, 1, 1),
    }
    params = {}
    for name, shape in specs.items():
        key, kw_, kb_ = jax.random.split(key, 3)
        fan_in = shape[1] * shape[2] * shape[3]
        bound = 1.0 / np.sqrt(fan_in)
        params[name + "_w"] = jax.random.uniform(
            kw_, shape, jnp.float32, -bound, bound)
        params[name + "_b"] = jax.random.uniform(
            kb_, (shape[0],), jnp.float32, -bound, bound)
    return params


# --------------------------------------------------------------------------
# Pure-JAX reference (mirrors the PyTorch forward) for a correctness check
# --------------------------------------------------------------------------
def ref_forward(x, h_c, c_c, m_c, params, nh, k):
    pad = k // 2

    def conv(inp, w, b, p):
        out = jax.lax.conv_general_dilated(
            inp, w, (1, 1), [(p, p), (p, p)],
            dimension_numbers=("NCHW", "OIHW", "NCHW"))
        return out + b[None, :, None, None]

    xc = conv(x, params["xc_w"], params["xc_b"], pad)
    hc = conv(h_c, params["hc_w"], params["hc_b"], pad)
    cc = conv(c_c, params["cc_w"], params["cc_b"], 0)
    i_c, f_c, g_c, o_c = jnp.split(xc + hc, 4, axis=1)
    _, cc_f, _ = jnp.split(cc, 3, axis=1)
    delta_c = jax.nn.sigmoid(i_c) * jnp.tanh(g_c)
    c_new = jax.nn.sigmoid(f_c + cc_f) * c_c + delta_c

    xm = conv(x, params["xm_w"], params["xm_b"], pad)
    hm = conv(h_c, params["hm_w"], params["hm_b"], pad)
    mm = conv(m_c, params["mm_w"], params["mm_b"], 0)
    i_m, f_m, g_m, o_m = jnp.split(xm + hm + mm, 4, axis=1)
    delta_m = jax.nn.sigmoid(i_m) * jnp.tanh(g_m)
    m_new = jax.nn.sigmoid(f_m) * m_c + delta_m

    dcc = conv(delta_c, params["cd_w"], params["cd_b"], 0)
    dmc = conv(delta_m, params["md_w"], params["md_b"], 0)
    loss = jnp.mean(jnp.abs(dcc - dmc))

    h_new = (jax.nn.sigmoid(o_c) * jnp.tanh(c_new)
             + jax.nn.sigmoid(o_m) * jnp.tanh(m_new))
    return h_new, c_new, m_new, loss


# --------------------------------------------------------------------------
if __name__ == "__main__":
    batch, in_channel, spatial = 2, 4, 16
    num_hidden, filter_size = 32, 3

    key = jax.random.PRNGKey(0)
    kx, kh, kc, km, kp = jax.random.split(key, 5)
    x = jax.random.normal(kx, (batch, in_channel, spatial, spatial), jnp.float32)
    h_c = jax.random.normal(kh, (batch, num_hidden, spatial, spatial), jnp.float32)
    c_c = jax.random.normal(kc, (batch, num_hidden, spatial, spatial), jnp.float32)
    m_c = jax.random.normal(km, (batch, num_hidden, spatial, spatial), jnp.float32)
    params = init_params(kp, in_channel, num_hidden, filter_size)

    fwd = jax.jit(lambda a, b, c, d, p: stlstm_cell_forward(
        a, b, c, d, p, num_hidden, filter_size))
    h_new, c_new, m_new, loss = fwd(x, h_c, c_c, m_c, params)
    jax.block_until_ready((h_new, c_new, m_new, loss))

    # correctness check against a pure-JAX f32 reference of the torch forward
    # (tolerance accounts for bf16 MXU operands and the bf16 h output)
    h_r, c_r, m_r, l_r = ref_forward(x, h_c, c_c, m_c, params,
                                     num_hidden, filter_size)
    np.testing.assert_allclose(np.asarray(h_new), np.asarray(h_r),
                               rtol=2e-2, atol=4e-2)
    np.testing.assert_allclose(np.asarray(c_new), np.asarray(c_r),
                               rtol=2e-2, atol=4e-2)
    np.testing.assert_allclose(np.asarray(m_new), np.asarray(m_r),
                               rtol=2e-2, atol=4e-2)
    np.testing.assert_allclose(float(loss), float(l_r), rtol=2e-2, atol=1e-2)

    print("KERNEL_OK")
</pallas_src>

<mosaic_0001>
module attributes {stable_mosaic.version = 11 : i64} {
  func.func @_stlstm_kernel(%arg0: i32, %arg1: memref<256x36xbf16, #tpu.memory_space<vmem>>, %arg2: memref<256x288xbf16, #tpu.memory_space<vmem>>, %arg3: memref<256x32xf32, #tpu.memory_space<vmem>>, %arg4: memref<256x32xf32, #tpu.memory_space<vmem>>, %arg5: memref<36x256xbf16, #tpu.memory_space<vmem>>, %arg6: memref<288x256xbf16, #tpu.memory_space<vmem>>, %arg7: memref<64x256xbf16, #tpu.memory_space<vmem>>, %arg8: memref<1x256xf32, #tpu.memory_space<vmem>>, %arg9: memref<64x32xbf16, #tpu.memory_space<vmem>>, %arg10: memref<1x32xf32, #tpu.memory_space<vmem>>, %arg11: memref<256x64xf32, #tpu.memory_space<vmem>>, %arg12: memref<256x32xbf16, #tpu.memory_space<vmem>>, %arg13: memref<8x128xf32, #tpu.memory_space<vmem>>) attributes {dimension_semantics = [#tpu.dimension_semantics<parallel>], iteration_bounds = array<i64: 2>, scalar_prefetch = 0 : i64, scratch_operands = 0 : i64, tpu.core_type = #tpu.core_type<tc>, window_params = [{transform_indices = @transform_0, window_bounds = array<i64: 256, 36>}, {transform_indices = @transform_1, window_bounds = array<i64: 256, 288>}, {transform_indices = @transform_2, window_bounds = array<i64: 256, 32>}, {transform_indices = @transform_3, window_bounds = array<i64: 256, 32>}, {pipeline_mode = #tpu.pipeline_mode<synchronous>, transform_indices = @transform_4, window_bounds = array<i64: 36, 256>}, {pipeline_mode = #tpu.pipeline_mode<synchronous>, transform_indices = @transform_5, window_bounds = array<i64: 288, 256>}, {pipeline_mode = #tpu.pipeline_mode<synchronous>, transform_indices = @transform_6, window_bounds = array<i64: 64, 256>}, {pipeline_mode = #tpu.pipeline_mode<synchronous>, transform_indices = @transform_7, window_bounds = array<i64: 1, 256>}, {pipeline_mode = #tpu.pipeline_mode<synchronous>, transform_indices = @transform_8, window_bounds = array<i64: 64, 32>}, {pipeline_mode = #tpu.pipeline_mode<synchronous>, transform_indices = @transform_9, window_bounds = array<i64: 1, 32>}, {transform_indices = @transform_10, window_bounds = array<i64: 256, 64>}, {transform_indices = @transform_11, window_bounds = array<i64: 256, 32>}, {transform_indices = @transform_12, window_bounds = array<i64: 8, 128>}]} {
    %c0 = arith.constant 0 : index
    %c0_0 = arith.constant 0 : index
    %0 = vector.load %arg3[%c0, %c0_0] : memref<256x32xf32, #tpu.memory_space<vmem>>, vector<256x32xf32>
    %c0_1 = arith.constant 0 : index
    %c0_2 = arith.constant 0 : index
    %1 = vector.load %arg4[%c0_1, %c0_2] : memref<256x32xf32, #tpu.memory_space<vmem>>, vector<256x32xf32>
    %2 = tpu.concatenate %0, %1 in 1 : vector<256x32xf32>, vector<256x32xf32> -> vector<256x64xf32>
    %c0_3 = arith.constant 0 : index
    %c0_4 = arith.constant 0 : index
    %3 = vector.load %arg1[%c0_3, %c0_4] : memref<256x36xbf16, #tpu.memory_space<vmem>>, vector<256x36xbf16>
    %c0_5 = arith.constant 0 : index
    %c0_6 = arith.constant 0 : index
    %4 = vector.load %arg5[%c0_5, %c0_6] : memref<36x256xbf16, #tpu.memory_space<vmem>>, vector<36x256xbf16>
    %cst = arith.constant dense<0.000000e+00> : vector<256x256xf32>
    %5 = tpu.matmul %3, %4, %cst {dimension_numbers = #tpu.dot_dimension_numbers<[1], [0], [0], [1], [0, 0, 1, 1], [], []>} : vector<256x36xbf16>, vector<36x256xbf16>, vector<256x256xf32> -> vector<256x256xf32>
    %c0_7 = arith.constant 0 : index
    %c0_8 = arith.constant 0 : index
    %6 = vector.load %arg2[%c0_7, %c0_8] : memref<256x288xbf16, #tpu.memory_space<vmem>>, vector<256x288xbf16>
    %c0_9 = arith.constant 0 : index
    %c0_10 = arith.constant 0 : index
    %7 = vector.load %arg6[%c0_9, %c0_10] : memref<288x256xbf16, #tpu.memory_space<vmem>>, vector<288x256xbf16>
    %cst_11 = arith.constant dense<0.000000e+00> : vector<256x256xf32>
    %8 = tpu.matmul %6, %7, %cst_11 {dimension_numbers = #tpu.dot_dimension_numbers<[1], [0], [0], [1], [0, 0, 1, 1], [], []>} : vector<256x288xbf16>, vector<288x256xbf16>, vector<256x256xf32> -> vector<256x256xf32>
    %9 = arith.addf %5, %8 : vector<256x256xf32>
    %10 = arith.truncf %2 : vector<256x64xf32> to vector<256x64xbf16>
    %c0_12 = arith.constant 0 : index
    %c0_13 = arith.constant 0 : index
    %11 = vector.load %arg7[%c0_12, %c0_13] : memref<64x256xbf16, #tpu.memory_space<vmem>>, vector<64x256xbf16>
    %cst_14 = arith.constant dense<0.000000e+00> : vector<256x256xf32>
    %12 = tpu.matmul %10, %11, %cst_14 {dimension_numbers = #tpu.dot_dimension_numbers<[1], [0], [0], [1], [0, 0, 1, 1], [], []>} : vector<256x64xbf16>, vector<64x256xbf16>, vector<256x256xf32> -> vector<256x256xf32>
    %13 = arith.addf %9, %12 : vector<256x256xf32>
    %c0_15 = arith.constant 0 : index
    %c0_16 = arith.constant 0 : index
    %14 = vector.load %arg8[%c0_15, %c0_16] : memref<1x256xf32, #tpu.memory_space<vmem>>, vector<1x256xf32>
    %15 = vector.broadcast %14 : vector<1x256xf32> to vector<256x256xf32>
    %16 = arith.addf %13, %15 : vector<256x256xf32>
    %17 = math.tanh %16 : vector<256x256xf32>
    %18 = vector.extract_strided_slice %17 {offsets = [0, 0], sizes = [256, 128], strides = [1, 1]} : vector<256x256xf32> to vector<256x128xf32>
    %cst_17 = arith.constant 5.000000e-01 : f32
    %19 = vector.broadcast %cst_17 : f32 to vector<256x128xf32>
    %20 = arith.mulf %19, %18 : vector<256x128xf32>
    %cst_18 = arith.constant 5.000000e-01 : f32
    %21 = vector.broadcast %cst_18 : f32 to vector<256x128xf32>
    %22 = arith.addf %20, %21 : vector<256x128xf32>
    %23 = vector.extract_strided_slice %17 {offsets = [0, 128], sizes = [256, 64], strides = [1, 1]} : vector<256x256xf32> to vector<256x64xf32>
    %24 = vector.extract_strided_slice %17 {offsets = [0, 192], sizes = [256, 64], strides = [1, 1]} : vector<256x256xf32> to vector<256x64xf32>
    %cst_19 = arith.constant 5.000000e-01 : f32
    %25 = vector.broadcast %cst_19 : f32 to vector<256x64xf32>
    %26 = arith.mulf %25, %24 : vector<256x64xf32>
    %cst_20 = arith.constant 5.000000e-01 : f32
    %27 = vector.broadcast %cst_20 : f32 to vector<256x64xf32>
    %28 = arith.addf %26, %27 : vector<256x64xf32>
    %29 = vector.extract_strided_slice %22 {offsets = [0, 0], sizes = [256, 64], strides = [1, 1]} : vector<256x128xf32> to vector<256x64xf32>
    %30 = arith.mulf %29, %23 : vector<256x64xf32>
    %31 = arith.mulf %28, %2 : vector<256x64xf32>
    %32 = arith.addf %31, %30 : vector<256x64xf32>
    %33 = vector.extract_strided_slice %22 {offsets = [0, 64], sizes = [256, 64], strides = [1, 1]} : vector<256x128xf32> to vector<256x64xf32>
    %34 = math.tanh %32 : vector<256x64xf32>
    %35 = arith.mulf %33, %34 : vector<256x64xf32>
    %c0_21 = arith.constant 0 : index
    %c0_22 = arith.constant 0 : index
    %36 = vector.load %arg11[%c0_21, %c0_22] : memref<256x64xf32, #tpu.memory_space<vmem>>, vector<256x64xf32>
    tpu.vector_store %arg11[%c0_21, %c0_22], %32 {strides = array<i32>} : memref<256x64xf32, #tpu.memory_space<vmem>>, vector<256x64xf32>,
    %37 = vector.extract_strided_slice %35 {offsets = [0, 0], sizes = [256, 32], strides = [1, 1]} : vector<256x64xf32> to vector<256x32xf32>
    %38 = vector.extract_strided_slice %35 {offsets = [0, 32], sizes = [256, 32], strides = [1, 1]} : vector<256x64xf32> to vector<256x32xf32>
    %39 = arith.addf %37, %38 : vector<256x32xf32>
    %40 = arith.truncf %39 : vector<256x32xf32> to vector<256x32xbf16>
    %c0_23 = arith.constant 0 : index
    %c0_24 = arith.constant 0 : index
    %41 = vector.load %arg12[%c0_23, %c0_24] : memref<256x32xbf16, #tpu.memory_space<vmem>>, vector<256x32xbf16>
    tpu.vector_store %arg12[%c0_23, %c0_24], %40 {strides = array<i32>} : memref<256x32xbf16, #tpu.memory_space<vmem>>, vector<256x32xbf16>,
    %42 = arith.truncf %30 : vector<256x64xf32> to vector<256x64xbf16>
    %c0_25 = arith.constant 0 : index
    %c0_26 = arith.constant 0 : index
    %43 = vector.load %arg9[%c0_25, %c0_26] : memref<64x32xbf16, #tpu.memory_space<vmem>>, vector<64x32xbf16>
    %cst_27 = arith.constant dense<0.000000e+00> : vector<256x32xf32>
    %44 = tpu.matmul %42, %43, %cst_27 {dimension_numbers = #tpu.dot_dimension_numbers<[1], [0], [0], [1], [0, 0, 1, 1], [], []>} : vector<256x64xbf16>, vector<64x32xbf16>, vector<256x32xf32> -> vector<256x32xf32>
    %c0_28 = arith.constant 0 : index
    %c0_29 = arith.constant 0 : index
    %45 = vector.load %arg10[%c0_28, %c0_29] : memref<1x32xf32, #tpu.memory_space<vmem>>, vector<1x32xf32>
    %46 = vector.broadcast %45 : vector<1x32xf32> to vector<256x32xf32>
    %47 = arith.addf %44, %46 : vector<256x32xf32>
    %c256_i32 = arith.constant 256 : i32
    %48 = arith.muli %arg0, %c256_i32 : i32
    %49 = tpu.iota {dimensions = array<i32: 0>} : vector<256x1xi32>
    %50 = vector.broadcast %48 : i32 to vector<256x1xi32>
    %51 = arith.addi %50, %49 : vector<256x1xi32>
    %c512_i32 = arith.constant 512 : i32
    %52 = vector.broadcast %c512_i32 : i32 to vector<256x1xi32>
    %53 = arith.cmpi slt, %51, %52 : vector<256x1xi32>
    %54 = math.absf %47 : vector<256x32xf32>
    %cst_30 = arith.constant 0.000000e+00 : f32
    %55 = vector.shape_cast %53 : vector<256x1xi1> to vector<256x1xi1>
    %56 = vector.broadcast %55 : vector<256x1xi1> to vector<256x32xi1>
    %57 = vector.broadcast %cst_30 : f32 to vector<256x32xf32>
    %58 = arith.select %56, %54, %57 : vector<256x32xi1>, vector<256x32xf32>
    %59 = vector.shape_cast %58 : vector<256x32xf32> to vector<1x256x32xf32>
    %cst_31 = arith.constant dense<0.000000e+00> : vector<1xf32>
    %60 = vector.multi_reduction <add>, %59, %cst_31 [1, 2] : vector<1x256x32xf32> to vector<1xf32>
    %61 = vector.shape_cast %60 : vector<1xf32> to vector<1x1x1xf32>
    %62 = vector.extract %61[0, 0, 0] : f32 from vector<1x1x1xf32>
    %cst_32 = arith.constant 0.000000e+00 : f32
    %63 = vector.broadcast %cst_32 : f32 to vector<8x128xf32>
    %64 = vector.broadcast %62 : f32 to vector<8x128xf32>
    %65 = arith.addf %63, %64 : vector<8x128xf32>
    %c0_33 = arith.constant 0 : index
    %c0_34 = arith.constant 0 : index
    %66 = vector.load %arg13[%c0_33, %c0_34] : memref<8x128xf32, #tpu.memory_space<vmem>>, vector<8x128xf32>
    tpu.vector_store %arg13[%c0_33, %c0_34], %65 {strides = array<i32>} : memref<8x128xf32, #tpu.memory_space<vmem>>, vector<8x128xf32>,
    return
  }
  func.func @transform_0(%arg0: i32) -> (i32, i32) {
    %c0_i32 = arith.constant 0 : i32
    %c0_i32_0 = arith.constant 0 : i32
    return %arg0, %c0_i32 : i32, i32
  }
  func.func @transform_1(%arg0: i32) -> (i32, i32) {
    %c0_i32 = arith.constant 0 : i32
    %c0_i32_0 = arith.constant 0 : i32
    return %arg0, %c0_i32 : i32, i32
  }
  func.func @transform_2(%arg0: i32) -> (i32, i32) {
    %c0_i32 = arith.constant 0 : i32
    %c0_i32_0 = arith.constant 0 : i32
    return %arg0, %c0_i32 : i32, i32
  }
  func.func @transform_3(%arg0: i32) -> (i32, i32) {
    %c0_i32 = arith.constant 0 : i32
    %c0_i32_0 = arith.constant 0 : i32
    return %arg0, %c0_i32 : i32, i32
  }
  func.func @transform_4(%arg0: i32) -> (i32, i32) {
    %c0_i32 = arith.constant 0 : i32
    %c0_i32_0 = arith.constant 0 : i32
    %c0_i32_1 = arith.constant 0 : i32
    return %c0_i32, %c0_i32_0 : i32, i32
  }
  func.func @transform_5(%arg0: i32) -> (i32, i32) {
    %c0_i32 = arith.constant 0 : i32
    %c0_i32_0 = arith.constant 0 : i32
    %c0_i32_1 = arith.constant 0 : i32
    return %c0_i32, %c0_i32_0 : i32, i32
  }
  func.func @transform_6(%arg0: i32) -> (i32, i32) {
    %c0_i32 = arith.constant 0 : i32
    %c0_i32_0 = arith.constant 0 : i32
    %c0_i32_1 = arith.constant 0 : i32
    return %c0_i32, %c0_i32_0 : i32, i32
  }
  func.func @transform_7(%arg0: i32) -> (i32, i32) {
    %c0_i32 = arith.constant 0 : i32
    %c0_i32_0 = arith.constant 0 : i32
    %c0_i32_1 = arith.constant 0 : i32
    return %c0_i32, %c0_i32_0 : i32, i32
  }
  func.func @transform_8(%arg0: i32) -> (i32, i32) {
    %c0_i32 = arith.constant 0 : i32
    %c0_i32_0 = arith.constant 0 : i32
    %c0_i32_1 = arith.constant 0 : i32
    return %c0_i32, %c0_i32_0 : i32, i32
  }
  func.func @transform_9(%arg0: i32) -> (i32, i32) {
    %c0_i32 = arith.constant 0 : i32
    %c0_i32_0 = arith.constant 0 : i32
    %c0_i32_1 = arith.constant 0 : i32
    return %c0_i32, %c0_i32_0 : i32, i32
  }
  func.func @transform_10(%arg0: i32) -> (i32, i32) {
    %c0_i32 = arith.constant 0 : i32
    %c0_i32_0 = arith.constant 0 : i32
    return %arg0, %c0_i32 : i32, i32
  }
  func.func @transform_11(%arg0: i32) -> (i32, i32) {
    %c0_i32 = arith.constant 0 : i32
    %c0_i32_0 = arith.constant 0 : i32
    return %arg0, %c0_i32 : i32, i32
  }
  func.func @transform_12(%arg0: i32) -> (i32, i32) {
    %c0_i32 = arith.constant 0 : i32
    %c0_i32_0 = arith.constant 0 : i32
    return %arg0, %c0_i32 : i32, i32
  }
}

</mosaic_0001>

<bundles_post_ra>
// kernel: _lambda_.1
= control target key start
LH: loop header
LB: loop body
LE: loop exit
PB: predicated region body
PF: predicated region fallthrough
CT: control target
= control target key end

     0   :  { %s5370_s21 = smov 0   ;;  %s7293_s0 = inlined_call_operand.vmem [shape: bf16[512,36], index: 0, kind: input, shape index: {}]   ;;  %s7294_s1 = inlined_call_operand.vmem [shape: bf16[512,288], index: 1, kind: input, shape index: {}]   ;;  %s7295_s2 = inlined_call_operand.vmem [shape: f32[512,32], index: 2, kind: input, shape index: {}]   ;;  %s7296_s3 = inlined_call_operand.vmem [shape: f32[512,32], index: 3, kind: input, shape index: {}]   ;;  %s7297_s4 = inlined_call_operand.vmem [shape: bf16[36,256], index: 4, kind: input, shape index: {}]   ;;  %s7298_s5 = inlined_call_operand.vmem [shape: bf16[288,256], index: 5, kind: input, shape index: {}]   ;;  %s7299_s6 = inlined_call_operand.vmem [shape: bf16[64,256], index: 6, kind: input, shape index: {}]   ;;  %s7300_s7 = inlined_call_operand.vmem [shape: f32[1,256], index: 7, kind: input, shape index: {}]   ;;  %s7301_s8 = inlined_call_operand.vmem [shape: bf16[64,32], index: 8, kind: input, shape index: {}]   ;;  %s7302_s9 = inlined_call_operand.vmem [shape: f32[1,32], index: 9, kind: input, shape index: {}]   ;;  %s7303_s10 = inlined_call_operand.vmem [shape: f32[512,64], index: 10, kind: output, shape index: {0}]   ;;  %s7304_s11 = inlined_call_operand.vmem [shape: bf16[512,32], index: 11, kind: output, shape index: {1}]   ;;  %s7305_s12 = inlined_call_operand.vmem [shape: f32[16,128], index: 12, kind: output, shape index: {2}]  }
   0x1 LB: > { %s5376_s22 = sadd.s32 4294967295, %s5299_s21   ;;  %p4407_p0 = scmp.ge.s32.totalorder %s5299_s21, 1  ;;  %s5299_s21 = sphi %s5370_s21, %s23_s21  }
   0x2   : > { %p402_p1 = scmp.lt.s32.totalorder %s5299_s21, 3 }
   0x4   : > { %p403_p2 = pnand %p4407_p0, %p402_p1 }
   0x6   : > { %406 = sbr.rel (%p403_p2) target bundleno = 1005 (0x3ed), region = 60 }
   0xd   : > { %v5383_v0 = vld [vmem:[%s7298_s5 + $0x104] ss:$8 sps:$4 sm:$0xff]   ;;  %s4408_s25 = sshll.u32 %s5376_s22, 5  ;;  %v5389_v1 = vld [vmem:[%s7298_s5 + $0x100] ss:$8 sps:$4 sm:$0xff]   ;;  %v5301_v2 = vmov 0  }
   0xe   : > { %1566 = vmatprep.mubr.bf16.mxu0 %v5301_v2  ;;  %p470_p3 = scmp.lt.s32.totalorder %s4408_s25, 63  ;;  %1534 = vmatprep.subr.bf16.mxu0 %v5383_v0  ;;  %v5396_v3 = vld [vmem:[%s7298_s5 + $0x114] ss:$8 sps:$4 sm:$0xff]   ;;  %v5401_v4 = vld [vmem:[%s7298_s5 + $0x110] ss:$8 sps:$4 sm:$0xff]   ;;  %vm703_vm0 = vcmask 261120  }
   0xf   : > { %1535 = vmatpush1.bf16.msra.mxu0 %v5389_v1  ;;  %v4949_v5 = vld [vmem:[%s7298_s5 + $0x4] ss:$8 sps:$4 sm:$0xff]   ;;  %v4951_v6 = vld [vmem:[%s7298_s5] ss:$8 sps:$4 sm:$0xff]   ;;  %v4956_v8 = vld [vmem:[%s7298_s5 + $0x14] ss:$8 sps:$4 sm:$0xff]  }
  0x10   : > { %s7434_s25 = smov (!%p470_p3, %s4408_s25), 63  ;;  %1536 = vmatprep.subr.bf16.mxu0 %v5396_v3  ;;  %1341 = vmatprep.subr.bf16.mxu1 %v4949_v5  ;;  %v4955_v7 = vld [vmem:[%s7297_s4 + $0x4] ss:$8 sps:$4 sm:$0xff]   ;;  %v4958_v9 = vld [vmem:[%s7298_s5 + $0x10] ss:$8 sps:$4 sm:$0xff]   ;;  %vm1881_vm1 = vcmask 1041408  }
  0x11   : > { %s4928_s18 = smul.u32 12, %s7434_s25  ;;  %1342 = vmatpush1.bf16.msra.mxu1 %v4951_v6  ;;  %v4953_v10 = vld [vmem:[%s7297_s4] ss:$8 sps:$4 sm:$0xff]   ;;  %v4959_v11 = vld [vmem:[%s7298_s5 + $0x24] ss:$8 sps:$4 sm:$0xff]   ;;  %s4409_s19 = sshll.u32 %s7434_s25, 2 }
  0x12   : > { %1343 = vmatprep.subr.bf16.mxu1 %v4956_v8  ;;  %v4961_v13 = vld [vmem:[%s7298_s5 + $0x20] ss:$8 sps:$4 sm:$0xff]   ;;  %v4963_v14 = vld [vmem:[%s7298_s5 + $0x34] ss:$8 sps:$4 sm:$0xff]   ;;  %v4965_v16 = vld [vmem:[%s7298_s5 + $0x30] ss:$8 sps:$4 sm:$0xff]   ;;  %s5507_s13 = scalar_lea.vmem %s7293_s0, %s4409_s19  ;;  %s7174_s24 = scalar_lea.vmem %s7304_s11, %s4409_s19 }
  0x13   : > { %1537 = vmatpush1.bf16.msra.mxu0 %v5401_v4  ;;  %s5427_s30 = scalar_lea.vmem %s7294_s1, %s4928_s18  ;;  %v4966_v17 = vld [vmem:[%s7298_s5 + $0x44] ss:$8 sps:$4 sm:$0xff]   ;;  %v4975_v18 = vld [vmem:[%s7297_s4 + $0x10] ss:$8 sps:$4 sm:$0xff]   ;;  %v4977_v19 = vld [vmem:[%s7297_s4 + $0x14] ss:$8 sps:$4 sm:$0xff]  }
  0x14   : > { %v4952_v12 = vld [vmem:[%s5427_s30 + $0x8] ss:$12 sps:$4 sm:$0xff]   ;;  %1888 = vmatprep.subr.bf16.mxu0 %v4955_v7  ;;  %v4962_v15 = vld [vmem:[%s5427_s30 + $0x20] ss:$12 sps:$4 sm:$0xff]   ;;  %v4969_v22 = vld [vmem:[%s5427_s30 + $0x38] ss:$12 sps:$4 sm:$0xff]  }
  0x15   : > { %1344 = vmatpush1.bf16.msra.mxu1 %v4958_v9  ;;  %v4968_v20 = vld [vmem:[%s7298_s5 + $0x40] ss:$8 sps:$4 sm:$0xff]   ;;  %v4970_v21 = vld [vmem:[%s7298_s5 + $0x54] ss:$8 sps:$4 sm:$0xff]   ;;  %v4972_v23 = vld [vmem:[%s7298_s5 + $0x50] ss:$8 sps:$4 sm:$0xff]  }
  0x16   : > { %4505 = vmatmul.mubr.msk.bf16.vlgmr.msra.gmra.mrb[0].mxu0 %vm703_vm0, %v4952_v12  ;;  %1345 = vmatprep.subr.bf16.mxu1 %v4959_v11  ;;  %v4973_v24 = vld [vmem:[%s7298_s5 + $0x64] ss:$8 sps:$4 sm:$0xff]   ;;  %v4978_v25 = vld [vmem:[%s7298_s5 + $0x60] ss:$8 sps:$4 sm:$0xff]   ;;  %v4980_v26 = vld [vmem:[%s7298_s5 + $0x74] ss:$8 sps:$4 sm:$0xff]  }
  0x17   : > { %1889 = vmatpush1.bf16.msra.mxu0 %v4953_v10  ;;  %1576 = vmatprep.mubr.bf16.mxu0 %v5301_v2  ;;  %v772_v27 = vld [vmem:[%s7297_s4 + $0x20] sm:$0x33]  ;;  %v4979_v30 = vld [vmem:[%s5427_s30 + $0x50] ss:$12 sps:$4 sm:$0xff]   ;;  %s5492_s20 = sshll.u32 %s7434_s25, 3  ;;  %s5302_s28 = smov 32  }
  0x18   : > { %1890 = vmatprep.subr.bf16.mxu0 %v4977_v19  ;;  %v4542_v28 = vcombine.high %v772_v27, %v772_v27  ;;  %v4541_v29 = vcombine.low %v772_v27, %v772_v27  ;;  %v4982_v31 = vld [vmem:[%s7298_s5 + $0x70] ss:$8 sps:$4 sm:$0xff]   ;;  %v4983_v33 = vld [vmem:[%s7298_s5 + $0x84] ss:$8 sps:$4 sm:$0xff]   ;;  %v4985_v34 = vld [vmem:[%s7298_s5 + $0x80] ss:$8 sps:$4 sm:$0xff]   ;;  %s5513_s16 = scalar_lea.vmem %s7296_s3, %s5492_s20  ;;  %s5715_s29 = scalar_lea.vmem %s7295_s2, %s5492_s20 }
  0x19   : > { %1346 = vmatpush1.bf16.msra.mxu1 %v4961_v13  ;;  %v4987_v35 = vld [vmem:[%s7298_s5 + $0x94] ss:$8 sps:$4 sm:$0xff]   ;;  %v5015_v36 = vld [vmem:[%s5427_s30 + $0x4] ss:$12 sps:$4 sm:$0xff]   ;;  %v544_v42 = vld [vmem:[%s5513_s16 + $0x8] sm:$0xff]  ;;  %vm1832_vm2 = vcmask 293888   ;;  %s6863_s18 = scalar_lea.vmem %s7303_s10, %s5492_s20 }
  0x1a   : > { %1347 = vmatprep.subr.bf16.mxu1 %v4963_v14  ;;  %v1883_v32 = vsel %vm1881_vm1, %v4541_v29, 0  ;;  %v4986_v37 = vld [vmem:[%s5427_s30 + $0x68] ss:$12 sps:$4 sm:$0xff]   ;;  %v4989_v38 = vld [vmem:[%s7298_s5 + $0x90] ss:$8 sps:$4 sm:$0xff]   ;;  %1373 = vmatprep.mubr.bf16.mxu1 %v5015_v36  ;;  %v543_v40 = vld [vmem:[%s5513_s16] sm:$0xff] }
  0x1b   : > { %1891 = vmatpush1.bf16.msra.mxu0 %v4975_v18  ;;  %v5019_v39 = vld [vmem:[%s7299_s6 + $0x4] ss:$8 sps:$4 sm:$0xff]   ;;  %607 = vrot.lane.b32.xlu0 %v543_v40, %s5302_s28  ;;  %v545_v43 = vld [vmem:[%s5513_s16 + $0x10] sm:$0xff]  ;;  %v4992_v44 = vld [vmem:[%s7298_s5 + $0xa0] ss:$8 sps:$4 sm:$0xff]   ;;  %s5303_s14 = smov 64  }
  0x1c   : > { %4543 = vmatprep.subr.msk.bf16.mxu0 %vm1881_vm1, %v4542_v28  ;;  %v4990_v41 = vld [vmem:[%s7298_s5 + $0xa4] ss:$8 sps:$4 sm:$0xff]   ;;  %v4994_v45 = vld [vmem:[%s7298_s5 + $0xb4] ss:$8 sps:$4 sm:$0xff]   ;;  %611 = vrot.lane.b32.xlu1 %v545_v43, %s5302_s28  ;;  %v4996_v48 = vld [vmem:[%s7298_s5 + $0xb0] ss:$8 sps:$4 sm:$0xff]  }
  0x1d   : > { %1348 = vmatpush1.bf16.msra.mxu1 %v4965_v16  ;;  %v4993_v46 = vld [vmem:[%s5427_s30 + $0x80] ss:$12 sps:$4 sm:$0xff]   ;;  %v546_v47 = vld [vmem:[%s5513_s16 + $0x18] sm:$0xff]  ;;  %v549_v54 = vld [vmem:[%s5513_s16 + $0x30] sm:$0xff]  ;;  %vm2145_vm3 = vcmask 523264   ;;  %p506_p4 = scmp.lt.s32.totalorder %s5376_s22, 1 }
  0x1e   : > { %4506 = vmatmul.mubr.msk.bf16.gmra.mrb[4].mxu0 %vm703_vm0, %v4962_v15  ;;  %1349 = vmatprep.subr.bf16.mxu1 %v4966_v17  ;;  %v4999_v49 = vld [vmem:[%s7298_s5 + $0xc4] ss:$8 sps:$4 sm:$0xff]   ;;  %v5001_v52 = vld [vmem:[%s7298_s5 + $0xc0] ss:$8 sps:$4 sm:$0xff]   ;;  %v5003_v53 = vld [vmem:[%s7298_s5 + $0xd4] ss:$8 sps:$4 sm:$0xff]  }
  0x1f   : > { %1586 = vmatprep.mubr.bf16.mxu0 %v5301_v2  ;;  %1893 = vmatpush1.bf16.msra.mxu0 %v1883_v32  ;;  %v547_v50 = vld [vmem:[%s5513_s16 + $0x20] sm:$0xff]  ;;  %v548_v51 = vld [vmem:[%s5513_s16 + $0x28] sm:$0xff]  ;;  %v550_v56 = vld [vmem:[%s5513_s16 + $0x38] sm:$0xff] }
  0x20   : > { %2194 = vmatprep.subr.bf16.mxu0 %v5019_v39  ;;  %609 = vrot.lane.b32.xlu0 %v544_v42, %s5302_s28  ;;  %v5002_v55 = vld [vmem:[%s5427_s30 + $0x98] ss:$12 sps:$4 sm:$0xff]   ;;  %v552_v60 = vld [vmem:[%s5513_s16 + $0x48] sm:$0xff]  ;;  %v553_v62 = vld [vmem:[%s5513_s16 + $0x50] sm:$0xff] }
  0x21   : > { %1350 = vmatpush1.bf16.msra.mxu1 %v4968_v20  ;;  %613 = vrot.lane.b32.xlu1 %v546_v47, %s5302_s28  ;;  %v5005_v57 = vld [vmem:[%s7298_s5 + $0xd0] ss:$8 sps:$4 sm:$0xff]   ;;  %v5006_v58 = vld [vmem:[%s7298_s5 + $0xe4] ss:$8 sps:$4 sm:$0xff]   ;;  %v5008_v61 = vld [vmem:[%s7298_s5 + $0xe0] ss:$8 sps:$4 sm:$0xff]  }
  0x22   : > { %1351 = vmatprep.subr.bf16.mxu1 %v4970_v21  ;;  %v551_v59 = vld [vmem:[%s5513_s16 + $0x40] sm:$0xff]  ;;  %v5010_v63 = vld [vmem:[%s7298_s5 + $0xf4] ss:$8 sps:$4 sm:$0xff]   ;;  %v5012_v7 = vld [vmem:[%s7298_s5 + $0xf0] ss:$8 sps:$4 sm:$0xff]  }
  0x23   : > { %v5009_v5 = vld [vmem:[%s5427_s30 + $0xb0] ss:$12 sps:$4 sm:$0xff]   ;;  %v555_v8 = vld [vmem:[%s5513_s16 + $0x60] sm:$0xff]  ;;  %v556_v11 = vld [vmem:[%s5513_s16 + $0x68] sm:$0xff] }
  0x24   : > { %615 = vrot.lane.b32.xlu0 %v547_v50, %s5302_s28  ;;  %v554_v6 = vld [vmem:[%s5513_s16 + $0x58] sm:$0xff]  ;;  %v5013_v9 = vld [vmem:[%s5427_s30] ss:$12 sps:$4 sm:$0xff]   ;;  %v557_v12 = vld [vmem:[%s5513_s16 + $0x70] sm:$0xff] }
  0x25   : > { %1352 = vmatpush1.bf16.msra.mxu1 %v4972_v23  ;;  %617 = vrot.lane.b32.xlu1 %v548_v51, %s5302_s28  ;;  %v5020_v10 = vld [vmem:[%s5427_s30 + $0x1c] ss:$12 sps:$4 sm:$0xff]   ;;  %v5016_v13 = vld [vmem:[%s5507_s13] sm:$0xff]   ;;  %v561_v19 = vld [vmem:[%s5513_s16 + $0x90] sm:$0xff] }
  0x26   : > { %4507 = vmatmul.mubr.msk.bf16.gmra.mrb[8].mxu0 %vm703_vm0, %v4969_v22  ;;  %1353 = vmatprep.subr.bf16.mxu1 %v4973_v24  ;;  %v558_v14 = vld [vmem:[%s5513_s16 + $0x78] sm:$0xff]  ;;  %v559_v15 = vld [vmem:[%s5513_s16 + $0x80] sm:$0xff]  ;;  %v560_v18 = vld [vmem:[%s5513_s16 + $0x88] sm:$0xff] }
  0x27   : > { %1596 = vmatprep.mubr.bf16.mxu0 %v5301_v2  ;;  %v5017_v16 = vld [vmem:[%s7299_s6] ss:$8 sps:$4 sm:$0xff]   ;;  %v5022_v17 = vld [vmem:[%s5427_s30 + $0x18] ss:$12 sps:$4 sm:$0xff]   ;;  %v5026_v24 = vld [vmem:[%s5427_s30 + $0x30] ss:$12 sps:$4 sm:$0xff]  }
  0x28   : > { %619 = vrot.lane.b32.xlu0 %v549_v54, %s5302_s28  ;;  %v5057_v20 = vld [vmem:[%s7299_s6 + $0x24] ss:$8 sps:$4 sm:$0xff]   ;;  %v562_v21 = vld [vmem:[%s5513_s16 + $0x98] sm:$0xff]  ;;  %v5055_v23 = vld [vmem:[%s7299_s6 + $0x20] ss:$8 sps:$4 sm:$0xff]  }
  0x29   : > { %1354 = vmatpush1.bf16.msra.mxu1 %v4978_v25  ;;  %621 = vrot.lane.b32.xlu1 %v550_v56, %s5302_s28  ;;  %v563_v22 = vld [vmem:[%s5513_s16 + $0xa0] sm:$0xff]  ;;  %v5076_v25 = vld [vmem:[%s7299_s6 + $0x34] ss:$8 sps:$4 sm:$0xff]   ;;  %v564_v27 = vld [vmem:[%s5513_s16 + $0xa8] sm:$0xff] }
  0x2a   : > { %1355 = vmatprep.subr.bf16.mxu1 %v4980_v26  ;;  %v5028_v26 = vld [vmem:[%s5427_s30 + $0x4c] ss:$12 sps:$4 sm:$0xff]   ;;  %v565_v28 = vld [vmem:[%s5513_s16 + $0xb0] sm:$0xff]  ;;  %v567_v32 = vld [vmem:[%s5513_s16 + $0xc0] sm:$0xff] }
  0x2b   : > { %v5074_v29 = vld [vmem:[%s7299_s6 + $0x30] ss:$8 sps:$4 sm:$0xff]   ;;  %v571_v39 = vld [vmem:[%s5513_s16 + $0xe0] sm:$0xff]  ;;  %v5039_v42 = vld [vmem:[%s5427_s30 + $0x7c] ss:$12 sps:$4 sm:$0xff]  }
  0x2c   : > { %623 = vrot.lane.b32.xlu0 %v551_v59, %s5302_s28  ;;  %v569_v36 = vld [vmem:[%s5513_s16 + $0xd0] sm:$0xff]  ;;  %v5034_v40 = vld [vmem:[%s5427_s30 + $0x60] ss:$12 sps:$4 sm:$0xff]   ;;  %v5050_v54 = vld [vmem:[%s5507_s13 + $0x38] sm:$0xff]  }
  0x2d   : > { %1356 = vmatpush1.bf16.msra.mxu1 %v4982_v31  ;;  %625 = vrot.lane.b32.xlu1 %v552_v60, %s5302_s28  ;;  %v5027_v31 = vld [vmem:[%s5507_s13 + $0x10] sm:$0xff]   ;;  %v5047_v50 = vld [vmem:[%s5427_s30 + $0xac] ss:$12 sps:$4 sm:$0xff]   ;;  %v5058_v56 = vld [vmem:[%s5427_s30 + $0xdc] ss:$12 sps:$4 sm:$0xff]  }
  0x2e   : > { %4508 = vmatmul.mubr.msk.bf16.gmra.mrb[12].mxu0 %vm703_vm0, %v4979_v30  ;;  %1357 = vmatprep.subr.bf16.mxu1 %v4983_v33  ;;  %v566_v30 = vld [vmem:[%s5513_s16 + $0xb8] sm:$0xff]  ;;  %v5030_v33 = vld [vmem:[%s5427_s30 + $0x48] ss:$12 sps:$4 sm:$0xff]  }
  0x2f   : > { %1606 = vmatprep.mubr.bf16.mxu0 %v5301_v2  ;;  %v573_v43 = vld [vmem:[%s5513_s16 + $0xf0] sm:$0xff]  ;;  %v5061_v60 = vld [vmem:[%s5507_s13 + $0x48] sm:$0xff]  }
  0x30   : > { %627 = vrot.lane.b32.xlu0 %v553_v62, %s5302_s28  ;;  %v5043_v47 = vld [vmem:[%s5427_s30 + $0x94] ss:$12 sps:$4 sm:$0xff]   ;;  %v5066_v62 = vld [vmem:[%s5427_s30 + $0x10c] ss:$12 sps:$4 sm:$0xff]  }
  0x31   : > { %1358 = vmatpush1.bf16.msra.mxu1 %v4985_v34  ;;  %629 = vrot.lane.b32.xlu1 %v554_v6, %s5302_s28  ;;  %v568_v34 = vld [vmem:[%s5513_s16 + $0xc8] sm:$0xff]  ;;  %v5046_v51 = vld [vmem:[%s5507_s13 + $0x30] sm:$0xff]  }
  0x32   : > { %1359 = vmatprep.subr.bf16.mxu1 %v4987_v35  ;;  %v5032_v35 = vld [vmem:[%s5427_s30 + $0x64] ss:$12 sps:$4 sm:$0xff]   ;;  %v5062_v59 = vld [vmem:[%s5427_s30 + $0xf4] ss:$12 sps:$4 sm:$0xff]  }
  0x33   : > { %v5068_v6 = vld [vmem:[%s5427_s30 + $0x108] ss:$12 sps:$4 sm:$0xff]  }
  0x34   : > { %631 = vrot.lane.b32.xlu0 %v555_v8, %s5302_s28  ;;  %v5070_v8 = vld [vmem:[%s5427_s30 + $0x124] ss:$12 sps:$4 sm:$0xff]  }
  0x35   : > { %1360 = vmatpush1.bf16.msra.mxu1 %v4989_v38  ;;  %633 = vrot.lane.b32.xlu1 %v556_v11, %s5302_s28  ;;  %v570_v38 = vld [vmem:[%s5513_s16 + $0xd8] sm:$0xff]  ;;  %v513_v11 = vld [vmem:[%s5715_s29 + $0x10] sm:$0xff] }
  0x36   : > { %4509 = vmatmul.mubr.msk.bf16.gmra.mrb[16].mxu0 %vm703_vm0, %v4986_v37  ;;  %1361 = vmatprep.subr.bf16.mxu1 %v4990_v41  ;;  %v5031_v37 = vld [vmem:[%s5507_s13 + $0x18] sm:$0xff]   ;;  %v572_v41 = vld [vmem:[%s5513_s16 + $0xe8] sm:$0xff] }
  0x37   : > { %1616 = vmatprep.mubr.bf16.mxu0 %v5301_v2 }
  0x38   : > { %635 = vrot.lane.b32.xlu0 %v557_v12, %s5302_s28  ;;  %v5069_v12 = vld [vmem:[%s5507_s13 + $0x58] sm:$0xff]  }
  0x39   : > { %1362 = vmatpush1.bf16.msra.mxu1 %v4992_v44  ;;  %637 = vrot.lane.b32.xlu1 %v558_v14, %s5302_s28  ;;  %v574_v44 = vld [vmem:[%s5513_s16 + $0xf8] sm:$0xff] }
  0x3a   : > { %1363 = vmatprep.subr.bf16.mxu1 %v4994_v45  ;;  %v5035_v45 = vld [vmem:[%s5507_s13 + $0x20] sm:$0xff]  }
  0x3c   : > { %639 = vrot.lane.b32.xlu0 %v559_v15, %s5302_s28 }
  0x3d   : > { %1364 = vmatpush1.bf16.msra.mxu1 %v4996_v48  ;;  %641 = vrot.lane.b32.xlu1 %v560_v18, %s5302_s28  ;;  %v5042_v48 = vld [vmem:[%s5507_s13 + $0x28] sm:$0xff]  }
  0x3e   : > { %4510 = vmatmul.mubr.msk.bf16.gmra.mrb[20].mxu0 %vm703_vm0, %v4993_v46  ;;  %1365 = vmatprep.subr.bf16.mxu1 %v4999_v49  ;;  %v5041_v46 = vld [vmem:[%s5427_s30 + $0x78] ss:$12 sps:$4 sm:$0xff]   ;;  %v5045_v49 = vld [vmem:[%s5427_s30 + $0x90] ss:$12 sps:$4 sm:$0xff]   ;;  %v5072_v18 = vld [vmem:[%s5427_s30 + $0x120] ss:$12 sps:$4 sm:$0xff]  }
  0x3f   : > { %1626 = vmatprep.mubr.bf16.mxu0 %v5301_v2 }
  0x40   : > { %643 = vrot.lane.b32.xlu0 %v561_v19, %s5302_s28 }
  0x41   : > { %1366 = vmatpush1.bf16.msra.mxu1 %v5001_v52  ;;  %645 = vrot.lane.b32.xlu1 %v562_v21, %s5302_s28  ;;  %v5049_v52 = vld [vmem:[%s5427_s30 + $0xa8] ss:$12 sps:$4 sm:$0xff]  }
  0x42   : > { %1367 = vmatprep.subr.bf16.mxu1 %v5003_v53  ;;  %v5051_v53 = vld [vmem:[%s5427_s30 + $0xc4] ss:$12 sps:$4 sm:$0xff]  }
  0x44   : > { %647 = vrot.lane.b32.xlu0 %v563_v22, %s5302_s28  ;;  %v517_v22 = vld [vmem:[%s5715_s29 + $0x30] sm:$0xff] }
  0x45   : > { %1368 = vmatpush1.bf16.msra.mxu1 %v5005_v57  ;;  %649 = vrot.lane.b32.xlu1 %v564_v27, %s5302_s28  ;;  %v5054_v57 = vld [vmem:[%s5507_s13 + $0x40] sm:$0xff]   ;;  %v518_v27 = vld [vmem:[%s5715_s29 + $0x38] sm:$0xff] }
  0x46   : > { %4511 = vmatmul.mubr.msk.bf16.gmra.mrb[24].mxu0 %vm703_vm0, %v5002_v55  ;;  %1369 = vmatprep.subr.bf16.mxu1 %v5006_v58  ;;  %v5053_v55 = vld [vmem:[%s5427_s30 + $0xc0] ss:$12 sps:$4 sm:$0xff]   ;;  %v5060_v58 = vld [vmem:[%s5427_s30 + $0xd8] ss:$12 sps:$4 sm:$0xff]  }
  0x47   : > { %1636 = vmatprep.mubr.bf16.mxu0 %v5301_v2 }
  0x48   : > { %651 = vrot.lane.b32.xlu0 %v565_v28, %s5302_s28 }
  0x49   : > { %1370 = vmatpush1.bf16.msra.mxu1 %v5008_v61  ;;  %653 = vrot.lane.b32.xlu1 %v566_v30, %s5302_s28  ;;  %v5064_v61 = vld [vmem:[%s5427_s30 + $0xf0] ss:$12 sps:$4 sm:$0xff]   ;;  %v519_v30 = vld [vmem:[%s5715_s29 + $0x40] sm:$0xff] }
  0x4a   : > { %1371 = vmatprep.subr.bf16.mxu1 %v5010_v63  ;;  %v5065_v63 = vld [vmem:[%s5507_s13 + $0x50] sm:$0xff]  }
  0x4c   : > { %655 = vrot.lane.b32.xlu0 %v567_v32, %s5302_s28 }
  0x4d   : > { %1372 = vmatpush1.bf16.msra.mxu1 %v5012_v7  ;;  %657 = vrot.lane.b32.xlu1 %v568_v34, %s5302_s28 }
  0x4e   : > { %4512 = vmatmul.mubr.msk.bf16.gmra.mrb[28].mxu0 %vm703_vm0, %v5009_v5  ;;  %4732 = vmatprep.subr.bf16.mxu1 %v5383_v0  ;;  %v5038_v0 = vld [vmem:[%s7299_s6 + $0x14] ss:$8 sps:$4 sm:$0xff]   ;;  %v511_v5 = vld [vmem:[%s5715_s29] sm:$0xff] }
  0x4f   : > { %1920 = vmatprep.mubr.bf16.mxu0 %v5301_v2 }
  0x50   : > { %1374 = vmatmul.mubr.bf16.vlgmr.msra.gmra.mrb[0].mxu1 %v5013_v9  ;;  %659 = vrot.lane.b32.xlu0 %v569_v36, %s5302_s28 }
  0x51   : > { %1383 = vmatprep.mubr.bf16.mxu1 %v5020_v10  ;;  %4734 = vmatpush1.bf16.msra.mxu1 %v5389_v1  ;;  %v5024_v1 = vld [vmem:[%s5427_s30 + $0x34] ss:$12 sps:$4 sm:$0xff]   ;;  %v512_v10 = vld [vmem:[%s5715_s29 + $0x8] sm:$0xff] }
  0x52   : > { %4733 = vmatprep.subr.bf16.mxu1 %v5396_v3  ;;  %v5036_v3 = vld [vmem:[%s7299_s6 + $0x10] ss:$8 sps:$4 sm:$0xff]   ;;  %661 = vrot.lane.b32.xlu1 %v570_v38, %s5302_s28  ;;  %v5080_v38 = vld [vmem:[%s5507_s13 + $0x68] sm:$0xff]  }
  0x54   : > { %663 = vrot.lane.b32.xlu0 %v571_v39, %s5302_s28 }
  0x55   : > { %4735 = vmatpush1.bf16.msra.mxu1 %v5401_v4  ;;  %v5023_v4 = vld [vmem:[%s5507_s13 + $0x8] sm:$0xff]  }
  0x56   : > { %4544 = vmatmul.mubr.msk.bf16.vlgmr.msra.gmra.mrb[0].mxu0 %vm1832_vm2, %v5016_v13  ;;  %665 = vrot.lane.b32.xlu1 %v572_v41, %s5302_s28 }
  0x57   : > { %2195 = vmatpush1.bf16.msra.mxu0 %v5017_v16  ;;  %1930 = vmatprep.mubr.bf16.mxu0 %v5301_v2 }
  0x58   : > { %2196 = vmatprep.subr.bf16.mxu0 %v5038_v0  ;;  %1384 = vmatmul.mubr.bf16.gmra.mrb[4].mxu1 %v5022_v17  ;;  %v514_v17 = vld [vmem:[%s5715_s29 + $0x18] sm:$0xff]  ;;  %v515_v0 = vld [vmem:[%s5715_s29 + $0x20] sm:$0xff] }
  0x59   : > { %1393 = vmatprep.mubr.bf16.mxu1 %v5024_v1  ;;  %667 = vrot.lane.b32.xlu0 %v573_v43, %s5302_s28  ;;  %v5077_v1 = vld [vmem:[%s5427_s30 + $0x13c] ss:$12 sps:$4 sm:$0xff]  }
  0x5a   : > { %669 = vrot.lane.b32.xlu1 %v574_v44, %s5302_s28  ;;  %v5083_v44 = vld [vmem:[%s5427_s30 + $0x150] ss:$12 sps:$4 sm:$0xff]   ;;  %s5304_s28 = smov 96  }
  0x5b   : > { %2197 = vmatpush1.bf16.msra.mxu0 %v5036_v3 }
  0x5c   : > { %2198 = vmatprep.subr.bf16.mxu0 %v5057_v20 }
  0x5e   : > { %4545 = vmatmul.mubr.msk.bf16.gmra.mrb[4].mxu0 %vm1832_vm2, %v5023_v4  ;;  %v516_v4 = vld [vmem:[%s5715_s29 + $0x28] sm:$0xff] }
  0x5f   : > { %1940 = vmatprep.mubr.bf16.mxu0 %v5301_v2  ;;  %2199 = vmatpush1.bf16.msra.mxu0 %v5055_v23  ;;  %v5073_v23 = vld [vmem:[%s5507_s13 + $0x60] sm:$0xff]  }
  0x60   : > { %2200 = vmatprep.subr.bf16.mxu0 %v5076_v25  ;;  %1394 = vmatmul.mubr.bf16.gmra.mrb[8].mxu1 %v5026_v24 }
  0x61   : > { %1403 = vmatprep.mubr.bf16.mxu1 %v5028_v26 }
  0x63   : > { %2201 = vmatpush1.bf16.msra.mxu0 %v5074_v29  ;;  %v5079_v29 = vld [vmem:[%s5427_s30 + $0x138] ss:$12 sps:$4 sm:$0xff]  }
  0x66   : > { %4546 = vmatmul.mubr.msk.bf16.gmra.mrb[8].mxu0 %vm1832_vm2, %v5027_v31  ;;  %v5081_v31 = vld [vmem:[%s5427_s30 + $0x154] ss:$12 sps:$4 sm:$0xff]  }
  0x67   : > { %1950 = vmatprep.mubr.bf16.mxu0 %v5301_v2 }
  0x68   : > { %1404 = vmatmul.mubr.bf16.gmra.mrb[12].mxu1 %v5030_v33 }
  0x69   : > { %1413 = vmatprep.mubr.bf16.mxu1 %v5032_v35  ;;  %v520_v35 = vld [vmem:[%s5715_s29 + $0x48] sm:$0xff] }
  0x6e   : > { %4547 = vmatmul.mubr.msk.bf16.gmra.mrb[12].mxu0 %vm1832_vm2, %v5031_v37  ;;  %v521_v37 = vld [vmem:[%s5715_s29 + $0x50] sm:$0xff] }
  0x6f   : > { %1960 = vmatprep.mubr.bf16.mxu0 %v5301_v2 }
  0x70   : > { %1414 = vmatmul.mubr.bf16.gmra.mrb[16].mxu1 %v5034_v40 }
  0x71   : > { %1423 = vmatprep.mubr.bf16.mxu1 %v5039_v42  ;;  %v522_v42 = vld [vmem:[%s5715_s29 + $0x58] sm:$0xff] }
  0x76   : > { %4548 = vmatmul.mubr.msk.bf16.gmra.mrb[16].mxu0 %vm1832_vm2, %v5035_v45  ;;  %v523_v45 = vld [vmem:[%s5715_s29 + $0x60] sm:$0xff] }
  0x77   : > { %1970 = vmatprep.mubr.bf16.mxu0 %v5301_v2 }
  0x78   : > { %1424 = vmatmul.mubr.bf16.gmra.mrb[20].mxu1 %v5041_v46  ;;  %v5085_v46 = vld [vmem:[%s5427_s30 + $0x16c] ss:$12 sps:$4 sm:$0xff]  }
  0x79   : > { %1433 = vmatprep.mubr.bf16.mxu1 %v5043_v47 }
  0x7e   : > { %4549 = vmatmul.mubr.msk.bf16.gmra.mrb[20].mxu0 %vm1832_vm2, %v5042_v48 }
  0x7f   : > { %1980 = vmatprep.mubr.bf16.mxu0 %v5301_v2 }
  0x80   : > { %1434 = vmatmul.mubr.bf16.gmra.mrb[24].mxu1 %v5045_v49 }
  0x81   : > { %1443 = vmatprep.mubr.bf16.mxu1 %v5047_v50  ;;  %v524_v50 = vld [vmem:[%s5715_s29 + $0x68] sm:$0xff] }
  0x86   : > { %4550 = vmatmul.mubr.msk.bf16.gmra.mrb[24].mxu0 %vm1832_vm2, %v5046_v51 }
  0x87   : > { %1990 = vmatprep.mubr.bf16.mxu0 %v5301_v2 }
  0x88   : > { %1444 = vmatmul.mubr.bf16.gmra.mrb[28].mxu1 %v5049_v52  ;;  %v525_v52 = vld [vmem:[%s5715_s29 + $0x70] sm:$0xff] }
  0x89   : > { %1453 = vmatprep.mubr.bf16.mxu1 %v5051_v53  ;;  %v5084_v53 = vld [vmem:[%s5507_s13 + $0x70] sm:$0xff]  }
  0x8d   : > { %v608_v7 = vpop.permute.xlu0 %607 }
  0x8e   : > { %4551 = vmatmul.mubr.msk.bf16.gmra.mrb[28].mxu0 %vm1832_vm2, %v5050_v54  ;;  %v5723_v9 = vsel %vm703_vm0, %v511_v5, %v608_v7  ;;  %v612_v14 = vpop.permute.xlu1 %611  ;;  %v528_v7 = vld [vmem:[%s5715_s29 + $0x88] sm:$0xff] }
  0x8f   : > { %2000 = vmatprep.mubr.bf16.mxu0 %v5301_v2  ;;  %2783 = vrot.lane.b32.xlu0 %v5723_v9, %s5303_s14  ;;  %v5735_v16 = vsel %vm703_vm0, %v513_v11, %v612_v14  ;;  %v5088_v11 = vld [vmem:[%s5507_s13 + $0x78] sm:$0xff]  }
  0x90   : > { %1454 = vmatmul.mubr.bf16.gmra.mrb[32].mxu1 %v5053_v55 }
  0x91   : > { %1463 = vmatprep.mubr.bf16.mxu1 %v5058_v56 }
  0x92   : > { %v610_v13 = vpop.permute.xlu0 %609 }
  0x93   : > { %v5732_v15 = vsel %vm703_vm0, %v512_v10, %v610_v13  ;;  %2787 = vrot.lane.b32.xlu0 %v5735_v16, %s5303_s14  ;;  %v614_v19 = vpop.permute.xlu1 %613  ;;  %v529_v10 = vld [vmem:[%s5715_s29 + $0x90] sm:$0xff] }
  0x94   : > { %2785 = vrot.lane.b32.xlu1 %v5732_v15, %s5303_s14  ;;  %v5748_v20 = vsel %vm703_vm0, %v514_v17, %v614_v19  ;;  %v531_v19 = vld [vmem:[%s5715_s29 + $0xa0] sm:$0xff] }
  0x96   : > { %4552 = vmatmul.mubr.msk.bf16.gmra.mrb[32].mxu0 %vm1832_vm2, %v5054_v57  ;;  %v616_v3 = vpop.permute.xlu0 %615 }
  0x97   : > { %2010 = vmatprep.mubr.bf16.mxu0 %v5301_v2  ;;  %v5751_v21 = vsel %vm703_vm0, %v515_v0, %v616_v3  ;;  %v618_v24 = vpop.permute.xlu1 %617  ;;  %v530_v0 = vld [vmem:[%s5715_s29 + $0x98] sm:$0xff] }
  0x98   : > { %1464 = vmatmul.mubr.bf16.gmra.mrb[36].mxu1 %v5060_v58  ;;  %2789 = vrot.lane.b32.xlu1 %v5748_v20, %s5303_s14  ;;  %v5761_v25 = vsel %vm703_vm0, %v516_v4, %v618_v24  ;;  %v526_v58 = vld [vmem:[%s5715_s29 + $0x78] sm:$0xff]  ;;  %v532_v24 = vld [vmem:[%s5715_s29 + $0xa8] sm:$0xff] }
  0x99   : > { %1473 = vmatprep.mubr.bf16.mxu1 %v5062_v59  ;;  %2791 = vrot.lane.b32.xlu0 %v5751_v21, %s5303_s14 }
  0x9a   : > { %v620_v26 = vpop.permute.xlu0 %619 }
  0x9b   : > { %v5767_v28 = vsel %vm703_vm0, %v517_v22, %v620_v26  ;;  %v622_v32 = vpop.permute.xlu1 %621 }
  0x9c   : > { %2793 = vrot.lane.b32.xlu1 %v5761_v25, %s5303_s14  ;;  %v5777_v33 = vsel %vm703_vm0, %v518_v27, %v622_v32  ;;  %v533_v27 = vld [vmem:[%s5715_s29 + $0xb0] sm:$0xff]  ;;  %v2081_v32 = vpack.c.bf16 %v5732_v15, %v5723_v9 }
  0x9d   : > { %2795 = vrot.lane.b32.xlu0 %v5767_v28, %s5303_s14 }
  0x9e   : > { %4553 = vmatmul.mubr.msk.bf16.gmra.mrb[36].mxu0 %vm1832_vm2, %v5061_v60  ;;  %v624_v34 = vpop.permute.xlu0 %623  ;;  %v5087_v60 = vld [vmem:[%s5427_s30 + $0x168] ss:$12 sps:$4 sm:$0xff]  }
  0x9f   : > { %2020 = vmatprep.mubr.bf16.mxu0 %v5301_v2  ;;  %v5783_v36 = vsel %vm703_vm0, %v519_v30, %v624_v34  ;;  %v626_v39 = vpop.permute.xlu1 %625 }
  0xa0   : > { %1474 = vmatmul.mubr.bf16.gmra.mrb[40].mxu1 %v5064_v61  ;;  %2797 = vrot.lane.b32.xlu1 %v5777_v33, %s5303_s14  ;;  %v5790_v40 = vsel %vm703_vm0, %v520_v35, %v626_v39  ;;  %v527_v61 = vld [vmem:[%s5715_s29 + $0x80] sm:$0xff]  ;;  %v534_v35 = vld [vmem:[%s5715_s29 + $0xb8] sm:$0xff] }
  0xa1   : > { %1483 = vmatprep.mubr.bf16.mxu1 %v5066_v62  ;;  %2799 = vrot.lane.b32.xlu0 %v5783_v36, %s5303_s14  ;;  %v535_v39 = vld [vmem:[%s5715_s29 + $0xc0] sm:$0xff] }
  0xa2   : > { %v628_v41 = vpop.permute.xlu0 %627 }
  0xa3   : > { %v5796_v43 = vsel %vm703_vm0, %v521_v37, %v628_v41  ;;  %v630_v47 = vpop.permute.xlu1 %629 }
  0xa4   : > { %2801 = vrot.lane.b32.xlu1 %v5790_v40, %s5303_s14  ;;  %v5806_v48 = vsel %vm703_vm0, %v522_v42, %v630_v47 }
  0xa5   : > { %2803 = vrot.lane.b32.xlu0 %v5796_v43, %s5303_s14 }
  0xa6   : > { %4554 = vmatmul.mubr.msk.bf16.gmra.mrb[40].mxu0 %vm1832_vm2, %v5065_v63  ;;  %v632_v49 = vpop.permute.xlu0 %631 }
  0xa7   : > { %2030 = vmatprep.mubr.bf16.mxu0 %v5301_v2  ;;  %v5812_v51 = vsel %vm703_vm0, %v523_v45, %v632_v49  ;;  %v634_v54 = vpop.permute.xlu1 %633 }
  0xa8   : > { %1484 = vmatmul.mubr.bf16.gmra.mrb[44].mxu1 %v5068_v6  ;;  %2805 = vrot.lane.b32.xlu1 %v5806_v48, %s5303_s14  ;;  %v5819_v55 = vsel %vm703_vm0, %v524_v50, %v634_v54  ;;  %v538_v54 = vld [vmem:[%s5715_s29 + $0xd8] sm:$0xff] }
  0xa9   : > { %1493 = vmatprep.mubr.bf16.mxu1 %v5070_v8  ;;  %2807 = vrot.lane.b32.xlu0 %v5812_v51, %s5303_s14  ;;  %v2087_v57 = vpack.c.bf16 %v5819_v55, %v5812_v51 }
  0xaa   : > { %v636_v56 = vpop.permute.xlu0 %635 }
  0xab   : > { %v5827_v59 = vsel %vm703_vm0, %v525_v52, %v636_v56  ;;  %v638_v62 = vpop.permute.xlu1 %637  ;;  %v2082_v52 = vpack.c.bf16 %v5748_v20, %v5735_v16 }
  0xac   : > { %2809 = vrot.lane.b32.xlu1 %v5819_v55, %s5303_s14  ;;  %v5836_v63 = vsel %vm703_vm0, %v526_v58, %v638_v62  ;;  %v5091_v58 = vld [vmem:[%s5427_s30 + $0xf8] ss:$12 sps:$4 sm:$0xff]  }
  0xad   : > { %2811 = vrot.lane.b32.xlu0 %v5827_v59, %s5303_s14  ;;  %v2088_v6 = vpack.c.bf16 %v5836_v63, %v5827_v59 }
  0xae   : > { %4555 = vmatmul.mubr.msk.bf16.gmra.mrb[44].mxu0 %vm1832_vm2, %v5069_v12  ;;  %v640_v5 = vpop.permute.xlu0 %639 }
  0xaf   : > { %2040 = vmatprep.mubr.bf16.mxu0 %v5301_v2  ;;  %v5844_v8 = vsel %vm703_vm0, %v527_v61, %v640_v5  ;;  %v642_v12 = vpop.permute.xlu1 %641  ;;  %v540_v5 = vld [vmem:[%s5715_s29 + $0xe8] sm:$0xff] }
  0xb0   : > { %1494 = vmatmul.mubr.bf16.gmra.mrb[48].mxu1 %v5072_v18  ;;  %2813 = vrot.lane.b32.xlu1 %v5836_v63, %s5303_s14  ;;  %v5852_v13 = vsel %vm703_vm0, %v528_v7, %v642_v12 }
  0xb1   : > { %1503 = vmatprep.mubr.bf16.mxu1 %v5077_v1  ;;  %2815 = vrot.lane.b32.xlu0 %v5844_v8, %s5303_s14  ;;  %v2089_v17 = vpack.c.bf16 %v5852_v13, %v5844_v8  ;;  %v5089_v1 = vld [vmem:[%s5427_s30 + $0xc8] ss:$12 sps:$4 sm:$0xff]  }
  0xb2   : > { %v644_v14 = vpop.permute.xlu0 %643 }
  0xb3   : > { %v5860_v18 = vsel %vm703_vm0, %v529_v10, %v644_v14  ;;  %v646_v3 = vpop.permute.xlu1 %645  ;;  %v541_v10 = vld [vmem:[%s5715_s29 + $0xf0] sm:$0xff] }
  0xb4   : > { %2817 = vrot.lane.b32.xlu1 %v5852_v13, %s5303_s14  ;;  %v5869_v4 = vsel %vm703_vm0, %v530_v0, %v646_v3 }
  0xb5   : > { %2819 = vrot.lane.b32.xlu0 %v5860_v18, %s5303_s14 }
  0xb6   : > { %4556 = vmatmul.mubr.msk.bf16.gmra.mrb[48].mxu0 %vm1832_vm2, %v5073_v23  ;;  %v648_v22 = vpop.permute.xlu0 %647  ;;  %v2090_v23 = vpack.c.bf16 %v5869_v4, %v5860_v18  ;;  %v5097_v18 = vld [vmem:[%s7301_s8] sm:$0xff]  }
  0xb7   : > { %2050 = vmatprep.mubr.bf16.mxu0 %v5301_v2  ;;  %v5877_v26 = vsel %vm703_vm0, %v531_v19, %v648_v22  ;;  %v542_v19 = vld [vmem:[%s5715_s29 + $0xf8] sm:$0xff]  ;;  %4692 = vmatprep.subr.bf16.mxu1 %v5097_v18 }
  0xb8   : > { %1504 = vmatmul.mubr.bf16.gmra.mrb[52].mxu1 %v5079_v29  ;;  %2821 = vrot.lane.b32.xlu1 %v5869_v4, %s5303_s14  ;;  %v650_v29 = vpop.permute.xlu1 %649  ;;  %v5092_v22 = vld [vmem:[%s5427_s30 + $0x110] ss:$12 sps:$4 sm:$0xff]  }
  0xb9   : > { %1513 = vmatprep.mubr.bf16.mxu1 %v5081_v31  ;;  %2823 = vrot.lane.b32.xlu0 %v5877_v26, %s5303_s14  ;;  %v5885_v30 = vsel %vm703_vm0, %v532_v24, %v650_v29  ;;  %v5093_v29 = vld [vmem:[%s5427_s30 + $0x128] ss:$12 sps:$4 sm:$0xff]  }
  0xba   : > { %v652_v31 = vpop.permute.xlu0 %651  ;;  %v2091_v34 = vpack.c.bf16 %v5885_v30, %v5877_v26  ;;  %v5098_v26 = vld [vmem:[%s7301_s8 + $0x8] sm:$0xff]  }
  0xbb   : > { %v5895_v37 = vsel %vm703_vm0, %v533_v27, %v652_v31  ;;  %v2084_v27 = vpack.c.bf16 %v5777_v33, %v5767_v28  ;;  %v2085_v31 = vpack.c.bf16 %v5790_v40, %v5783_v36  ;;  %v2086_v28 = vpack.c.bf16 %v5806_v48, %v5796_v43  ;;  %v5095_v33 = vld [vmem:[%s5427_s30 + $0x158] ss:$12 sps:$4 sm:$0xff]   ;;  %v5096_v36 = vld [vmem:[%s5427_s30 + $0x170] ss:$12 sps:$4 sm:$0xff]  }
  0xbc   : > { %2825 = vrot.lane.b32.xlu1 %v5885_v30, %s5303_s14  ;;  %v654_v41 = vpop.permute.xlu1 %653 }
  0xbd   : > { %2827 = vrot.lane.b32.xlu0 %v5895_v37, %s5303_s14  ;;  %v5904_v9 = vsel %vm703_vm0, %v534_v35, %v654_v41  ;;  %v5099_v35 = vld [vmem:[%s7301_s8 + $0x10] sm:$0xff]  }
  0xbe   : > { %4557 = vmatmul.mubr.msk.bf16.gmra.mrb[52].mxu0 %vm1832_vm2, %v5080_v38  ;;  %v5090_v38 = vld [vmem:[%s5427_s30 + $0xe0] ss:$12 sps:$4 sm:$0xff]   ;;  %v656_v15 = vpop.permute.xlu0 %655  ;;  %v2092_v42 = vpack.c.bf16 %v5904_v9, %v5895_v37 }
  0xbf   : > { %2060 = vmatprep.mubr.bf16.mxu0 %v5301_v2  ;;  %v5912_v45 = vsel %vm703_vm0, %v535_v39, %v656_v15  ;;  %v5100_v39 = vld [vmem:[%s7301_s8 + $0x18] sm:$0xff]  }
  0xc0   : > { %1514 = vmatmul.mubr.bf16.gmra.mrb[56].mxu1 %v5083_v44  ;;  %2829 = vrot.lane.b32.xlu1 %v5904_v9, %s5303_s14  ;;  %v536_v44 = vld [vmem:[%s5715_s29 + $0xc8] sm:$0xff]  ;;  %v658_v47 = vpop.permute.xlu1 %657 }
  0xc1   : > { %1523 = vmatprep.mubr.bf16.mxu1 %v5085_v46  ;;  %2831 = vrot.lane.b32.xlu0 %v5912_v45, %s5303_s14  ;;  %v537_v46 = vld [vmem:[%s5715_s29 + $0xd0] sm:$0xff]  ;;  %v5920_v49 = vsel %vm703_vm0, %v536_v44, %v658_v47 }
  0xc2   : > { %v660_v50 = vpop.permute.xlu0 %659 }
  0xc3   : > { %v5930_v56 = vsel %vm703_vm0, %v537_v46, %v660_v50 }
  0xc4   : > { %2833 = vrot.lane.b32.xlu1 %v5920_v49, %s5303_s14  ;;  %v662_v61 = vpop.permute.xlu1 %661 }
  0xc5   : > { %2835 = vrot.lane.b32.xlu0 %v5930_v56, %s5303_s14  ;;  %v5939_v20 = vsel %vm703_vm0, %v538_v54, %v662_v61 }
  0xc6   : > { %4558 = vmatmul.mubr.msk.bf16.gmra.mrb[56].mxu0 %vm1832_vm2, %v5084_v53  ;;  %v2093_v53 = vpack.c.bf16 %v5920_v49, %v5912_v45  ;;  %v664_v16 = vpop.permute.xlu0 %663  ;;  %v2094_v62 = vpack.c.bf16 %v5939_v20, %v5930_v56  ;;  %v2453_v56 = vlaneseq }
  0xc7   : > { %2070 = vmatprep.mubr.bf16.mxu0 %v5301_v2 }
  0xc8   : > { %1524 = vmatmul.mubr.bf16.gmra.mrb[60].mxu1 %v5087_v60  ;;  %v539_v60 = vld [vmem:[%s5715_s29 + $0xe0] sm:$0xff]  ;;  %2837 = vrot.lane.b32.xlu1 %v5939_v20, %s5303_s14  ;;  %v666_v12 = vpop.permute.xlu1 %665  ;;  %s4637_s29 = sshll.u32 %s5376_s22, 8  ;;  %s7436_s22 = smov (!%p506_p4, %s5376_s22), 1 }
  0xc9   : > { %1646 = vmatprep.mubr.bf16.mxu1 %v5301_v2  ;;  %v5947_v7 = vsel %vm703_vm0, %v539_v60, %v664_v16  ;;  %v5957_v0 = vsel %vm703_vm0, %v540_v5, %v666_v12  ;;  %v2451_v20 = vld [vmem:[%s7300_s7] sm:$0x3]  ;;  %s4420_s25 = sshll.u32 %s7436_s22, 3 }
  0xca   : > { %2839 = vrot.lane.b32.xlu0 %v5947_v7, %s5303_s14  ;;  %s509_s26 = scalar_lea.vmem %s7305_s12, %s4420_s25 }
  0xcb   : > { %v668_v14 = vpop.permute.xlu0 %667 }
  0xcc   : > { %2841 = vrot.lane.b32.xlu1 %v5957_v0, %s5303_s14  ;;  %v5965_v3 = vsel %vm703_vm0, %v541_v10, %v668_v14 }
  0xce   : > { %4559 = vmatmul.mubr.msk.bf16.gmra.mrb[60].mxu0 %vm1832_vm2, %v5088_v11  ;;  %v2083_v11 = vpack.c.bf16 %v5761_v25, %v5751_v21  ;;  %2843 = vrot.lane.b32.xlu0 %v5965_v3, %s5303_s14  ;;  %v670_v21 = vpop.permute.xlu1 %669 }
  0xcf   : > { %2226 = vmatprep.mubr.bf16.mxu0 %v5301_v2  ;;  %v5973_v25 = vsel %vm703_vm0, %v542_v19, %v670_v21 }
  0xd0   : > { %4513 = vmatmul.mubr.msk.bf16.vlgmr.msra.gmra.mrb[32].mxu1 %vm703_vm0, %v5089_v1  ;;  %v2095_v1 = vpack.c.bf16 %v5957_v0, %v5947_v7  ;;  %2845 = vrot.lane.b32.xlu1 %v5973_v25, %s5303_s14  ;;  %v2096_v24 = vpack.c.bf16 %v5973_v25, %v5965_v3 }
  0xd1   : > { %1656 = vmatprep.mubr.bf16.mxu1 %v5301_v2  ;;  %4693 = vmatpush3.bf16.msra.mxu1 %v5097_v18 }
  0xd2   : > { %4694 = vmatprep.subr.bf16.mxu1 %v5098_v26 }
  0xd5   : > { %4695 = vmatpush3.bf16.msra.mxu1 %v5098_v26 }
  0xd6   : > { %4568 = vmatmul.mubr.msk.bf16.vlgmr.msra.gmra.mrb[0].mxu0 %vm2145_vm3, %v2081_v32  ;;  %v5094_v32 = vld [vmem:[%s5427_s30 + $0x140] ss:$12 sps:$4 sm:$0xff]   ;;  %4696 = vmatprep.subr.bf16.mxu1 %v5099_v35 }
  0xd7   : > { %2236 = vmatprep.mubr.bf16.mxu0 %v5301_v2 }
  0xd8   : > { %4514 = vmatmul.mubr.msk.bf16.gmra.mrb[36].mxu1 %vm703_vm0, %v5090_v38 }
  0xd9   : > { %1666 = vmatprep.mubr.bf16.mxu1 %v5301_v2  ;;  %4697 = vmatpush3.bf16.msra.mxu1 %v5099_v35 }
  0xda   : > { %4698 = vmatprep.subr.bf16.mxu1 %v5100_v39 }
  0xdd   : > { %4699 = vmatpush3.bf16.msra.mxu1 %v5100_v39 }
  0xde   : > { %4569 = vmatmul.mubr.msk.bf16.gmra.mrb[4].mxu0 %vm2145_vm3, %v2082_v52 }
  0xdf   : > { %2246 = vmatprep.mubr.bf16.mxu0 %v5301_v2 }
  0xe0   : > { %4515 = vmatmul.mubr.msk.bf16.gmra.mrb[40].mxu1 %vm703_vm0, %v5091_v58  ;;  %v6129_v58 = vshrl.u32 %v2453_v56, 7 }
  0xe1   : > { %1676 = vmatprep.mubr.bf16.mxu1 %v5301_v2 }
  0xe2   : > { %7345 = vst [vmem:[#allocation2_spill] sm:$0xff] %v6129_v58  ;;  %v2455_v61 = vsub.s32 0, %v6129_v58  ;;  %v2459_v5 = vsub.s32 1, %v6129_v58 }
  0xe4   : > { %v6144_v10 = vrot.slane %v2451_v20, %v2455_v61  ;;  %v6147_v0 = vrot.slane %v2451_v20, %v2459_v5 }
  0xe6   : > { %4570 = vmatmul.mubr.msk.bf16.gmra.mrb[8].mxu0 %vm2145_vm3, %v2083_v11 }
  0xe7   : > { %2256 = vmatprep.mubr.bf16.mxu0 %v5301_v2 }
  0xe8   : > { %4516 = vmatmul.mubr.msk.bf16.gmra.mrb[44].mxu1 %vm703_vm0, %v5092_v22 }
  0xe9   : > { %1686 = vmatprep.mubr.bf16.mxu1 %v5301_v2 }
  0xee   : > { %4571 = vmatmul.mubr.msk.bf16.gmra.mrb[12].mxu0 %vm2145_vm3, %v2084_v27 }
  0xef   : > { %2266 = vmatprep.mubr.bf16.mxu0 %v5301_v2 }
  0xf0   : > { %4517 = vmatmul.mubr.msk.bf16.gmra.mrb[48].mxu1 %vm703_vm0, %v5093_v29 }
  0xf1   : > { %1696 = vmatprep.mubr.bf16.mxu1 %v5301_v2 }
  0xf6   : > { %4572 = vmatmul.mubr.msk.bf16.gmra.mrb[16].mxu0 %vm2145_vm3, %v2085_v31 }
  0xf7   : > { %2276 = vmatprep.mubr.bf16.mxu0 %v5301_v2 }
  0xf8   : > { %4518 = vmatmul.mubr.msk.bf16.gmra.mrb[52].mxu1 %vm703_vm0, %v5094_v32 }
  0xf9   : > { %1706 = vmatprep.mubr.bf16.mxu1 %v5301_v2 }
  0xfe   : > { %4573 = vmatmul.mubr.msk.bf16.gmra.mrb[20].mxu0 %vm2145_vm3, %v2086_v28 }
  0xff   : > { %2286 = vmatprep.mubr.bf16.mxu0 %v5301_v2 }
 0x100   : > { %4519 = vmatmul.mubr.msk.bf16.gmra.mrb[56].mxu1 %vm703_vm0, %v5095_v33 }
 0x101   : > { %1716 = vmatprep.mubr.bf16.mxu1 %v5301_v2 }
 0x106   : > { %4574 = vmatmul.mubr.msk.bf16.gmra.mrb[24].mxu0 %vm2145_vm3, %v2087_v57 }
 0x107   : > { %2296 = vmatprep.mubr.bf16.mxu0 %v5301_v2 }
 0x108   : > { %4520 = vmatmul.mubr.msk.bf16.gmra.mrb[60].mxu1 %vm703_vm0, %v5096_v36 }
 0x10e   : > { %4575 = vmatmul.mubr.msk.bf16.gmra.mrb[28].mxu0 %vm2145_vm3, %v2088_v6 }
 0x10f   : > { %2306 = vmatprep.mubr.bf16.mxu0 %v5301_v2 }
 0x116   : > { %4576 = vmatmul.mubr.msk.bf16.gmra.mrb[32].mxu0 %vm2145_vm3, %v2089_v17 }
 0x117   : > { %2316 = vmatprep.mubr.bf16.mxu0 %v5301_v2 }
 0x11e   : > { %4577 = vmatmul.mubr.msk.bf16.gmra.mrb[36].mxu0 %vm2145_vm3, %v2090_v23 }
 0x11f   : > { %2326 = vmatprep.mubr.bf16.mxu0 %v5301_v2 }
 0x123   : > { %v6024_v40 = vpop.f32.mrb[0].mxu1 }
 0x124   : > { %v6026_v43 = vpop.f32.mrb[1].mxu1 }
 0x125   : > { %v6032_v48 = vpop.f32.mrb[2].mxu1 }
 0x126   : > { %4578 = vmatmul.mubr.msk.bf16.gmra.mrb[40].mxu0 %vm2145_vm3, %v2091_v34  ;;  %v6035_v51 = vpop.f32.mrb[3].mxu1 }
 0x127   : > { %2336 = vmatprep.mubr.bf16.mxu0 %v5301_v2 }
 0x12b   : > { %v6037_v55 = vpop.f32.mrb[4].mxu1 }
 0x12c   : > { %v6039_v57 = vpop.f32.mrb[5].mxu1 }
 0x12d   : > { %v6045_v59 = vpop.f32.mrb[6].mxu1 }
 0x12e   : > { %4579 = vmatmul.mubr.msk.bf16.gmra.mrb[44].mxu0 %vm2145_vm3, %v2092_v42  ;;  %v6048_v63 = vpop.f32.mrb[7].mxu1 }
 0x12f   : > { %2346 = vmatprep.mubr.bf16.mxu0 %v5301_v2 }
 0x133   : > { %v6050_v6 = vpop.f32.mrb[8].mxu1 }
 0x134   : > { %v6052_v8 = vpop.f32.mrb[9].mxu1 }
 0x135   : > { %v6058_v13 = vpop.f32.mrb[10].mxu1 }
 0x136   : > { %4580 = vmatmul.mubr.msk.bf16.gmra.mrb[48].mxu0 %vm2145_vm3, %v2093_v53  ;;  %v6061_v17 = vpop.f32.mrb[11].mxu1 }
 0x137   : > { %2356 = vmatprep.mubr.bf16.mxu0 %v5301_v2 }
 0x13b   : > { %v6066_v4 = vpop.f32.mrb[12].mxu1 }
 0x13c   : > { %v6068_v23 = vpop.f32.mrb[13].mxu1 }
 0x13d   : > { %v6077_v30 = vpop.f32.mrb[14].mxu1 }
 0x13e   : > { %4581 = vmatmul.mubr.msk.bf16.gmra.mrb[52].mxu0 %vm2145_vm3, %v2094_v62  ;;  %v6080_v34 = vpop.f32.mrb[15].mxu1 }
 0x13f   : > { %2366 = vmatprep.mubr.bf16.mxu0 %v5301_v2 }
 0x143   : > { %v6085_v37 = vpop.f32.mrb[16].mxu1 }
 0x144   : > { %v6087_v38 = vpop.f32.mrb[17].mxu1 }
 0x145   : > { %v6096_v41 = vpop.f32.mrb[18].mxu1 }
 0x146   : > { %4582 = vmatmul.mubr.msk.bf16.gmra.mrb[56].mxu0 %vm2145_vm3, %v2095_v1  ;;  %v6099_v9 = vpop.f32.mrb[19].mxu1 }
 0x147   : > { %2376 = vmatprep.mubr.bf16.mxu0 %v5301_v2 }
 0x14b   : > { %v6101_v15 = vpop.f32.mrb[20].mxu1 }
 0x14c   : > { %v6103_v42 = vpop.f32.mrb[21].mxu1 }
 0x14d   : > { %v6109_v44 = vpop.f32.mrb[22].mxu1 }
 0x14e   : > { %4583 = vmatmul.mubr.msk.bf16.gmra.mrb[60].mxu0 %vm2145_vm3, %v2096_v24  ;;  %v6111_v45 = vpop.f32.mrb[23].mxu1 }
 0x153   : > { %v6113_v46 = vpop.f32.mrb[24].mxu1 }
 0x154   : > { %v6115_v2 = vpop.f32.mrb[25].mxu1 }
 0x155   : > { %v6117_v47 = vpop.f32.mrb[26].mxu1 }
 0x156   : > { %v6119_v49 = vpop.f32.mrb[27].mxu1 }
 0x15b   : > { %v6121_v50 = vpop.f32.mrb[28].mxu1 }
 0x15c   : > { %v6123_v52 = vpop.f32.mrb[29].mxu1 }
 0x15d   : > { %v6125_v53 = vpop.f32.mrb[30].mxu1 }
 0x15e   : > { %v6127_v54 = vpop.f32.mrb[31].mxu1 }
 0x1a3   : > { %v6131_v60 = vpop.f32.mrb[32].mxu1 }
 0x1a4   : > { %v6134_v16 = vpop.f32.mrb[33].mxu1 }
 0x1a5   : > { %v6139_v62 = vpop.f32.mrb[34].mxu1 }
 0x1a6   : > { %v6142_v7 = vpop.f32.mrb[35].mxu1 }
 0x1a9   : > { %v2228_v11 = vpop.f32.mrb[0].mxu0 }
 0x1aa   : > { %v4736_v12 = vadd.f32 %v2228_v11, %v6024_v40  ;;  %v2230_v14 = vpop.f32.mrb[1].mxu0 }
 0x1ab   : > { %v4737_v1 = vadd.f32 %v2230_v14, %v6026_v43  ;;  %v2232_v19 = vpop.f32.mrb[2].mxu0  ;;  %v6152_v25 = vpop.f32.mrb[36].mxu1 }
 0x1ac   : > { %v2463_v3 = vadd.f32 %v4736_v12, %v6144_v10  ;;  %v4738_v22 = vadd.f32 %v2232_v19, %v6032_v48  ;;  %v2234_v21 = vpop.f32.mrb[3].mxu0  ;;  %v6155_v27 = vpop.f32.mrb[37].mxu1 }
 0x1ad   : > { %v4739_v24 = vadd.f32 %v2234_v21, %v6035_v51  ;;  %v2464_v29 = vadd.f32 %v4737_v1, %v6147_v0  ;;  %v6159_v32 = vpop.f32.mrb[38].mxu1 }
 0x1ae   : > { %5101 = vtanh.f32 %v2463_v3  ;;  %v2465_v31 = vadd.f32 %v4738_v22, %v6144_v10  ;;  %v6161_v28 = vpop.f32.mrb[39].mxu1 }
 0x1af   : > { %v2466_v33 = vadd.f32 %v4739_v24, %v6147_v0 }
 0x1b0   : > { %5103 = vtanh.f32 %v2465_v31 }
 0x1b1   : > { %v2238_v36 = vpop.f32.mrb[4].mxu0  ;;  %5105 = vtanh.f32 %v2464_v29 }
 0x1b2   : > { %v4740_v40 = vadd.f32 %v2238_v36, %v6037_v55  ;;  %v2240_v43 = vpop.f32.mrb[5].mxu0  ;;  %5107 = vtanh.f32 %v2466_v33 }
 0x1b3   : > { %v4741_v48 = vadd.f32 %v2240_v43, %v6039_v57  ;;  %v2242_v51 = vpop.f32.mrb[6].mxu0  ;;  %v6168_v39 = vpop.f32.mrb[40].mxu1 }
 0x1b4   : > { %v2467_v18 = vadd.f32 %v4740_v40, %v6144_v10  ;;  %v4742_v26 = vadd.f32 %v2242_v51, %v6045_v59  ;;  %v2244_v35 = vpop.f32.mrb[7].mxu0  ;;  %v6171_v61 = vpop.f32.mrb[41].mxu1 }
 0x1b5   : > { %v4743_v56 = vadd.f32 %v2244_v35, %v6048_v63  ;;  %v2468_v20 = vadd.f32 %v4741_v48, %v6147_v0  ;;  %v6175_v5 = vpop.f32.mrb[42].mxu1 }
 0x1b6   : > { %5109 = vtanh.f32 %v2467_v18  ;;  %v2469_v55 = vadd.f32 %v4742_v26, %v6144_v10  ;;  %v6177_v57 = vpop.f32.mrb[43].mxu1 }
 0x1b7   : > { %v2470_v59 = vadd.f32 %v4743_v56, %v6147_v0 }
 0x1b8   : > { %v5102_v11 = vpop.eup %5101  ;;  %5111 = vtanh.f32 %v2469_v55 }
 0x1b9   : > { %v2591_v12 = vmul.f32 0.5, %v5102_v11  ;;  %v2248_v14 = vpop.f32.mrb[8].mxu0  ;;  %5113 = vtanh.f32 %v2468_v20 }
 0x1ba   : > { %v5104_v1 = vpop.eup %5103  ;;  %v4744_v63 = vadd.f32 %v2248_v14, %v6050_v6  ;;  %v2250_v19 = vpop.f32.mrb[9].mxu0  ;;  %5115 = vtanh.f32 %v2470_v59 }
 0x1bb   : > { %v2592_v3 = vmul.f32 0.5, %v5104_v1  ;;  %v4745_v22 = vadd.f32 %v2250_v19, %v6052_v8  ;;  %v2252_v21 = vpop.f32.mrb[10].mxu0  ;;  %v6182_v24 = vadd.f32 0.5, %v2591_v12  ;;  %v6184_v29 = vpop.eup %5105 }
 0x1bc   : > { %v2471_v31 = vadd.f32 %v4744_v63, %v6144_v10  ;;  %v4746_v33 = vadd.f32 %v2252_v21, %v6058_v13  ;;  %v2254_v36 = vpop.f32.mrb[11].mxu0  ;;  %v6188_v40 = vpop.f32.mrb[44].mxu1 }
 0x1bd   : > { %v4747_v43 = vadd.f32 %v2254_v36, %v6061_v17  ;;  %v2719_v6 = vmul.f32 %v6184_v29, %v6182_v24  ;;  %v6193_v48 = vpop.f32.mrb[45].mxu1  ;;  %v6195_v8 = vadd.f32 0.5, %v2592_v3  ;;  %v6197_v51 = vpop.eup %5107  ;;  %v2472_v18 = vadd.f32 %v4745_v22, %v6147_v0 }
 0x1be   : > { %5117 = vtanh.f32 %v2471_v31  ;;  %v2473_v26 = vadd.f32 %v4746_v33, %v6144_v10  ;;  %v6201_v13 = vpop.f32.mrb[46].mxu1 }
 0x1bf   : > { %2943 = vrot.lane.b32.xlu0 %v2719_v6, %s5303_s14  ;;  %v2720_v17 = vmul.f32 %v6197_v51, %v6195_v8  ;;  %v6206_v35 = vpop.f32.mrb[47].mxu1  ;;  %v2474_v20 = vadd.f32 %v4747_v43, %v6147_v0 }
 0x1c0   : > { %v5110_v56 = vpop.eup %5109  ;;  %5119 = vtanh.f32 %v2473_v26 }
 0x1c1   : > { %v2593_v55 = vmul.f32 0.5, %v5110_v56  ;;  %2945 = vrot.lane.b32.xlu1 %v2720_v17, %s5303_s14  ;;  %v3680_v11 = vpack.c.bf16 %v2720_v17, %v2719_v6  ;;  %v2258_v59 = vpop.f32.mrb[12].mxu0  ;;  %5121 = vtanh.f32 %v2472_v18 }
 0x1c2   : > { %v5112_v12 = vpop.eup %5111  ;;  %v4748_v14 = vadd.f32 %v2258_v59, %v6066_v4  ;;  %v2260_v1 = vpop.f32.mrb[13].mxu0  ;;  %5123 = vtanh.f32 %v2474_v20 }
 0x1c3   : > { %v2594_v63 = vmul.f32 0.5, %v5112_v12  ;;  %v4749_v19 = vadd.f32 %v2260_v1, %v6068_v23  ;;  %v2262_v3 = vpop.f32.mrb[14].mxu0  ;;  %4700 = vmatprep.mubr.msk.bf16.mxu1 %vm2145_vm3, %v3680_v11  ;;  %v6213_v22 = vadd.f32 0.5, %v2593_v55  ;;  %v6215_v21 = vpop.eup %5113 }
 0x1c4   : > { %v2475_v31 = vadd.f32 %v4748_v14, %v6144_v10  ;;  %v4750_v33 = vadd.f32 %v2262_v3, %v6077_v30  ;;  %v2264_v36 = vpop.f32.mrb[15].mxu0  ;;  %v6219_v43 = vpop.f32.mrb[48].mxu1 }
 0x1c5   : > { %7346 = vst [vmem:[#allocation3_spill] sm:$0xff] %v6213_v22  ;;  %v4751_v4 = vadd.f32 %v2264_v36, %v6080_v34  ;;  %v2721_v23 = vmul.f32 %v6215_v21, %v6213_v22  ;;  %v6224_v6 = vpop.f32.mrb[49].mxu1  ;;  %v6226_v18 = vadd.f32 0.5, %v2594_v63  ;;  %v6228_v26 = vpop.eup %5115  ;;  %v2476_v17 = vadd.f32 %v4749_v19, %v6147_v0 }
 0x1c6   : > { %5125 = vtanh.f32 %v2475_v31  ;;  %v2477_v56 = vadd.f32 %v4750_v33, %v6144_v10  ;;  %v6232_v30 = vpop.f32.mrb[50].mxu1 }
 0x1c7   : > { %7347 = vst [vmem:[#allocation4_spill] sm:$0xff] %v6226_v18  ;;  %2947 = vrot.lane.b32.xlu0 %v2721_v23, %s5303_s14  ;;  %v2722_v34 = vmul.f32 %v6228_v26, %v6226_v18  ;;  %v6237_v20 = vpop.f32.mrb[51].mxu1  ;;  %v2478_v11 = vadd.f32 %v4751_v4, %v6147_v0 }
 0x1c8   : > { %v5118_v55 = vpop.eup %5117  ;;  %5127 = vtanh.f32 %v2477_v56 }
 0x1c9   : > { %v2595_v59 = vmul.f32 0.5, %v5118_v55  ;;  %2949 = vrot.lane.b32.xlu1 %v2722_v34, %s5303_s14  ;;  %v3681_v12 = vpack.c.bf16 %v2722_v34, %v2721_v23  ;;  %v2268_v14 = vpop.f32.mrb[16].mxu0  ;;  %5129 = vtanh.f32 %v2476_v17 }
 0x1ca   : > { %v5120_v1 = vpop.eup %5119  ;;  %v4752_v63 = vadd.f32 %v2268_v14, %v6085_v37  ;;  %v2270_v19 = vpop.f32.mrb[17].mxu0  ;;  %5131 = vtanh.f32 %v2478_v11 }
 0x1cb   : > { %v2596_v3 = vmul.f32 0.5, %v5120_v1  ;;  %v4753_v31 = vadd.f32 %v2270_v19, %v6087_v38  ;;  %v2272_v33 = vpop.f32.mrb[18].mxu0  ;;  %4701 = vmatmul.mubr.msk.bf16.vlgmr.msra.gmra.mrb[64].mxu1 %vm2145_vm3, %v3681_v12  ;;  %v6244_v36 = vadd.f32 0.5, %v2595_v59  ;;  %v6246_v56 = vpop.eup %5121 }
 0x1cc   : > { %v2479_v4 = vadd.f32 %v4752_v63, %v6144_v10  ;;  %v4754_v23 = vadd.f32 %v2272_v33, %v6096_v41  ;;  %v2274_v34 = vpop.f32.mrb[19].mxu0  ;;  %v6250_v17 = vpop.f32.mrb[52].mxu1 }
 0x1cd   : > { %7348 = vst [vmem:[#allocation5_spill] sm:$0xff] %v6244_v36  ;;  %v4755_v37 = vadd.f32 %v2274_v34, %v6099_v9  ;;  %v2723_v38 = vmul.f32 %v6246_v56, %v6244_v36  ;;  %v6255_v55 = vpop.f32.mrb[53].mxu1  ;;  %v6257_v12 = vadd.f32 0.5, %v2596_v3  ;;  %v6259_v59 = vpop.eup %5123  ;;  %v2480_v11 = vadd.f32 %v4753_v31, %v6147_v0 }
 0x1ce   : > { %5133 = vtanh.f32 %v2479_v4  ;;  %v2481_v14 = vadd.f32 %v4754_v23, %v6144_v10  ;;  %v6263_v41 = vpop.f32.mrb[54].mxu1 }
 0x1cf   : > { %7349 = vst [vmem:[#allocation6_spill] sm:$0xff] %v6257_v12  ;;  %2951 = vrot.lane.b32.xlu0 %v2723_v38, %s5303_s14  ;;  %v2724_v9 = vmul.f32 %v6259_v59, %v6257_v12  ;;  %v6268_v1 = vpop.f32.mrb[55].mxu1  ;;  %v2482_v19 = vadd.f32 %v4755_v37, %v6147_v0 }
 0x1d0   : > { %v5126_v63 = vpop.eup %5125  ;;  %5135 = vtanh.f32 %v2481_v14 }
 0x1d1   : > { %v2597_v3 = vmul.f32 0.5, %v5126_v63  ;;  %2953 = vrot.lane.b32.xlu1 %v2724_v9, %s5303_s14  ;;  %v3682_v33 = vpack.c.bf16 %v2724_v9, %v2723_v38  ;;  %v2278_v31 = vpop.f32.mrb[20].mxu0  ;;  %5137 = vtanh.f32 %v2480_v11 }
 0x1d2   : > { %v5128_v4 = vpop.eup %5127  ;;  %v4756_v23 = vadd.f32 %v2278_v31, %v6101_v15  ;;  %v2280_v34 = vpop.f32.mrb[21].mxu0  ;;  %5139 = vtanh.f32 %v2482_v19 }
 0x1d3   : > { %v2598_v58 = vmul.f32 0.5, %v5128_v4  ;;  %v4757_v36 = vadd.f32 %v2280_v34, %v6103_v42  ;;  %v2282_v12 = vpop.f32.mrb[22].mxu0  ;;  %4704 = vmatprep.mubr.msk.bf16.mxu1 %vm2145_vm3, %v3682_v33  ;;  %v6275_v18 = vadd.f32 0.5, %v2597_v3  ;;  %v6277_v14 = vpop.eup %5129 }
 0x1d4   : > { %v2483_v37 = vadd.f32 %v4756_v23, %v6144_v10  ;;  %v4758_v38 = vadd.f32 %v2282_v12, %v6109_v44  ;;  %v2284_v9 = vpop.f32.mrb[23].mxu0  ;;  %v6281_v11 = vpop.f32.mrb[56].mxu1 }
 0x1d5   : > { %7350 = vst [vmem:[#allocation7_spill] sm:$0xff] %v6275_v18  ;;  %v4759_v15 = vadd.f32 %v2284_v9, %v6111_v45  ;;  %v2725_v42 = vmul.f32 %v6277_v14, %v6275_v18  ;;  %v6286_v63 = vpop.f32.mrb[57].mxu1  ;;  %v6288_v33 = vadd.f32 0.5, %v2598_v58  ;;  %v6290_v3 = vpop.eup %5131  ;;  %v2484_v19 = vadd.f32 %v4757_v36, %v6147_v0 }
 0x1d6   : > { %7352 = vst [vmem:[#allocation9_spill] sm:$0xff] %v6290_v3  ;;  %5141 = vtanh.f32 %v2483_v37  ;;  %v2485_v31 = vadd.f32 %v4758_v38, %v6144_v10  ;;  %v6294_v44 = vpop.f32.mrb[58].mxu1 }
 0x1d7   : > { %7351 = vst [vmem:[#allocation8_spill] sm:$0xff] %v6288_v33  ;;  %2955 = vrot.lane.b32.xlu0 %v2725_v42, %s5303_s14  ;;  %v2726_v45 = vmul.f32 %v6290_v3, %v6288_v33  ;;  %v6299_v12 = vpop.f32.mrb[59].mxu1  ;;  %v2486_v58 = vadd.f32 %v4759_v15, %v6147_v0 }
 0x1d8   : > { %v5134_v4 = vpop.eup %5133  ;;  %5143 = vtanh.f32 %v2485_v31 }
 0x1d9   : > { %v2599_v23 = vmul.f32 0.5, %v5134_v4  ;;  %2957 = vrot.lane.b32.xlu1 %v2726_v45, %s5303_s14  ;;  %v3683_v34 = vpack.c.bf16 %v2726_v45, %v2725_v42  ;;  %v2288_v36 = vpop.f32.mrb[24].mxu0  ;;  %5145 = vtanh.f32 %v2484_v19 }
 0x1da   : > { %v5136_v37 = vpop.eup %5135  ;;  %v4760_v38 = vadd.f32 %v2288_v36, %v6113_v46  ;;  %v2290_v9 = vpop.f32.mrb[25].mxu0  ;;  %5147 = vtanh.f32 %v2486_v58 }
 0x1db   : > { %v2600_v18 = vmul.f32 0.5, %v5136_v37  ;;  %v4761_v22 = vadd.f32 %v2290_v9, %v6115_v2  ;;  %v2292_v33 = vpop.f32.mrb[26].mxu0  ;;  %4705 = vmatmul.mubr.msk.bf16.gmra.mrb[68].mxu1 %vm2145_vm3, %v3683_v34  ;;  %v6306_v3 = vadd.f32 0.5, %v2599_v23  ;;  %v6308_v31 = vpop.eup %5137 }
 0x1dc   : > { %7354 = vst [vmem:[#allocation11_spill] sm:$0xff] %v6308_v31  ;;  %v2487_v15 = vadd.f32 %v4760_v38, %v6144_v10  ;;  %v4762_v42 = vadd.f32 %v2292_v33, %v6117_v47  ;;  %v2294_v45 = vpop.f32.mrb[27].mxu0  ;;  %v6312_v19 = vpop.f32.mrb[60].mxu1 }
 0x1dd   : > { %7353 = vst [vmem:[#allocation10_spill] sm:$0xff] %v6306_v3  ;;  %v4763_v46 = vadd.f32 %v2294_v45, %v6119_v49  ;;  %v2727_v2 = vmul.f32 %v6308_v31, %v6306_v3  ;;  %v6317_v4 = vpop.f32.mrb[61].mxu1  ;;  %v6319_v34 = vadd.f32 0.5, %v2600_v18  ;;  %v6321_v23 = vpop.eup %5139  ;;  %v2488_v58 = vadd.f32 %v4761_v22, %v6147_v0 }
 0x1de   : > { %7356 = vst [vmem:[#allocation13_spill] sm:$0xff] %v6321_v23  ;;  %5149 = vtanh.f32 %v2487_v15  ;;  %v2489_v36 = vadd.f32 %v4762_v42, %v6144_v10  ;;  %v6325_v47 = vpop.f32.mrb[62].mxu1 }
 0x1df   : > { %7355 = vst [vmem:[#allocation12_spill] sm:$0xff] %v6319_v34  ;;  %2959 = vrot.lane.b32.xlu0 %v2727_v2, %s5303_s14  ;;  %v2728_v49 = vmul.f32 %v6321_v23, %v6319_v34  ;;  %v6330_v33 = vpop.f32.mrb[63].mxu1  ;;  %v2490_v18 = vadd.f32 %v4763_v46, %v6147_v0 }
 0x1e0   : > { %v5142_v37 = vpop.eup %5141  ;;  %5151 = vtanh.f32 %v2489_v36 }
 0x1e1   : > { %v2601_v38 = vmul.f32 0.5, %v5142_v37  ;;  %2961 = vrot.lane.b32.xlu1 %v2728_v49, %s5303_s14  ;;  %v3684_v9 = vpack.c.bf16 %v2728_v49, %v2727_v2  ;;  %v2298_v22 = vpop.f32.mrb[28].mxu0  ;;  %5153 = vtanh.f32 %v2488_v58 }
 0x1e2   : > { %v5144_v15 = vpop.eup %5143  ;;  %v4764_v42 = vadd.f32 %v2298_v22, %v6121_v50  ;;  %v2300_v45 = vpop.f32.mrb[29].mxu0  ;;  %5155 = vtanh.f32 %v2490_v18 }
 0x1e3   : > { %v2602_v3 = vmul.f32 0.5, %v5144_v15  ;;  %v4765_v31 = vadd.f32 %v2300_v45, %v6123_v52  ;;  %v2302_v34 = vpop.f32.mrb[30].mxu0  ;;  %4708 = vmatprep.mubr.msk.bf16.mxu1 %vm2145_vm3, %v3684_v9  ;;  %v6337_v23 = vadd.f32 0.5, %v2601_v38  ;;  %v6339_v36 = vpop.eup %5145 }
 0x1e4   : > { %v2491_v46 = vadd.f32 %v4764_v42, %v6144_v10  ;;  %v4766_v2 = vadd.f32 %v2302_v34, %v6125_v53  ;;  %v2304_v49 = vpop.f32.mrb[31].mxu0  ;;  %v6348_v52 = vpop.eup %5147 }
 0x1e5   : > { %7357 = vst [vmem:[#allocation14_spill] sm:$0xff] %v6337_v23  ;;  %v4767_v58 = vadd.f32 %v2304_v49, %v6127_v54  ;;  %v2729_v50 = vmul.f32 %v6339_v36, %v6337_v23  ;;  %v6346_v37 = vadd.f32 0.5, %v2602_v3  ;;  %v2492_v38 = vadd.f32 %v4765_v31, %v6147_v0 }
 0x1e6   : > { %5157 = vtanh.f32 %v2491_v46  ;;  %v2493_v9 = vadd.f32 %v4766_v2, %v6144_v10 }
 0x1e7   : > { %7358 = vst [vmem:[#allocation15_spill] sm:$0xff] %v6346_v37  ;;  %2963 = vrot.lane.b32.xlu0 %v2729_v50, %s5303_s14  ;;  %v2730_v53 = vmul.f32 %v6348_v52, %v6346_v37  ;;  %v2494_v54 = vadd.f32 %v4767_v58, %v6147_v0 }
 0x1e8   : > { %v5150_v34 = vpop.eup %5149  ;;  %5159 = vtanh.f32 %v2493_v9 }
 0x1e9   : > { %v2603_v18 = vmul.f32 0.5, %v5150_v34  ;;  %2965 = vrot.lane.b32.xlu1 %v2730_v53, %s5303_s14  ;;  %v3685_v3 = vpack.c.bf16 %v2730_v53, %v2729_v50  ;;  %v2308_v22 = vpop.f32.mrb[32].mxu0  ;;  %5161 = vtanh.f32 %v2492_v38 }
 0x1ea   : > { %v5152_v15 = vpop.eup %5151  ;;  %v4768_v31 = vadd.f32 %v2308_v22, %v6131_v60  ;;  %v2310_v42 = vpop.f32.mrb[33].mxu0  ;;  %5163 = vtanh.f32 %v2494_v54 }
 0x1eb   : > { %v2604_v45 = vmul.f32 0.5, %v5152_v15  ;;  %v4769_v46 = vadd.f32 %v2310_v42, %v6134_v16  ;;  %v2312_v2 = vpop.f32.mrb[34].mxu0  ;;  %4709 = vmatmul.mubr.msk.bf16.gmra.mrb[72].mxu1 %vm2145_vm3, %v3685_v3  ;;  %v6360_v49 = vadd.f32 0.5, %v2603_v18  ;;  %v6362_v9 = vpop.eup %5153 }
 0x1ec   : > { %v2495_v58 = vadd.f32 %v4768_v31, %v6144_v10  ;;  %v4770_v50 = vadd.f32 %v2312_v2, %v6139_v62  ;;  %v2314_v53 = vpop.f32.mrb[35].mxu0  ;;  %v6371_v16 = vpop.eup %5155 }
 0x1ed   : > { %7359 = vst [vmem:[#allocation16_spill] sm:$0xff] %v6360_v49  ;;  %v4771_v38 = vadd.f32 %v2314_v53, %v6142_v7  ;;  %v2731_v60 = vmul.f32 %v6362_v9, %v6360_v49  ;;  %v6369_v34 = vadd.f32 0.5, %v2604_v45  ;;  %v2496_v18 = vadd.f32 %v4769_v46, %v6147_v0  ;;  %v6379_v22 = vpop.permute.xlu0 %2783 }
 0x1ee   : > { %5165 = vtanh.f32 %v2495_v58  ;;  %v2497_v3 = vadd.f32 %v4770_v50, %v6144_v10  ;;  %v6383_v58 = vpop.permute.xlu1 %2785 }
 0x1ef   : > { %7360 = vst [vmem:[#allocation17_spill] sm:$0xff] %v6369_v34  ;;  %2967 = vrot.lane.b32.xlu0 %v2731_v60, %s5303_s14  ;;  %v2732_v62 = vmul.f32 %v6371_v16, %v6369_v34  ;;  %v2498_v7 = vadd.f32 %v4771_v38, %v6147_v0 }
 0x1f0   : > { %v5158_v54 = vpop.eup %5157  ;;  %5167 = vtanh.f32 %v2497_v3 }
 0x1f1   : > { %v2605_v15 = vmul.f32 0.5, %v5158_v54  ;;  %2969 = vrot.lane.b32.xlu1 %v2732_v62, %s5303_s14  ;;  %v3686_v31 = vpack.c.bf16 %v2732_v62, %v2731_v60  ;;  %v2318_v42 = vpop.f32.mrb[36].mxu0  ;;  %5169 = vtanh.f32 %v2496_v18 }
 0x1f2   : > { %v5160_v45 = vpop.eup %5159  ;;  %v4772_v46 = vadd.f32 %v2318_v42, %v6152_v25  ;;  %v2320_v2 = vpop.f32.mrb[37].mxu0  ;;  %5171 = vtanh.f32 %v2498_v7 }
 0x1f3   : > { %v2606_v50 = vmul.f32 0.5, %v5160_v45  ;;  %v4773_v53 = vadd.f32 %v2320_v2, %v6155_v27  ;;  %v2322_v3 = vpop.f32.mrb[38].mxu0  ;;  %4712 = vmatprep.mubr.msk.bf16.mxu1 %vm2145_vm3, %v3686_v31  ;;  %v6387_v38 = vadd.f32 0.5, %v2605_v15  ;;  %v6389_v54 = vpop.eup %5161 }
 0x1f4   : > { %v2499_v60 = vadd.f32 %v4772_v46, %v6144_v10  ;;  %v4774_v18 = vadd.f32 %v2322_v3, %v6159_v32  ;;  %v2324_v62 = vpop.f32.mrb[39].mxu0  ;;  %v6393_v25 = vpop.permute.xlu0 %2787 }
 0x1f5   : > { %7361 = vst [vmem:[#allocation18_spill] sm:$0xff] %v6387_v38  ;;  %v4775_v42 = vadd.f32 %v2324_v62, %v6161_v28  ;;  %v2733_v27 = vmul.f32 %v6389_v54, %v6387_v38  ;;  %v6398_v45 = vadd.f32 0.5, %v2606_v50  ;;  %v6400_v31 = vpop.eup %5163  ;;  %v2500_v15 = vadd.f32 %v4773_v53, %v6147_v0  ;;  %v6404_v46 = vpop.permute.xlu1 %2789 }
 0x1f6   : > { %5173 = vtanh.f32 %v2499_v60  ;;  %v2501_v7 = vadd.f32 %v4774_v18, %v6144_v10 }
 0x1f7   : > { %7362 = vst [vmem:[#allocation19_spill] sm:$0xff] %v6398_v45  ;;  %2971 = vrot.lane.b32.xlu0 %v2733_v27, %s5303_s14  ;;  %v2734_v32 = vmul.f32 %v6400_v31, %v6398_v45  ;;  %v2502_v2 = vadd.f32 %v4775_v42, %v6147_v0 }
 0x1f8   : > { %v5166_v28 = vpop.eup %5165  ;;  %5175 = vtanh.f32 %v2501_v7  ;;  %v6410_v50 = vpop.permute.xlu0 %2791 }
 0x1f9   : > { %v2607_v3 = vmul.f32 0.5, %v5166_v28  ;;  %2973 = vrot.lane.b32.xlu1 %v2734_v32, %s5303_s14  ;;  %v3687_v60 = vpack.c.bf16 %v2734_v32, %v2733_v27  ;;  %v2328_v53 = vpop.f32.mrb[40].mxu0  ;;  %5177 = vtanh.f32 %v2500_v15  ;;  %v6414_v49 = vpop.permute.xlu1 %2793 }
 0x1fa   : > { %v5168_v62 = vpop.eup %5167  ;;  %v4776_v18 = vadd.f32 %v2328_v53, %v6168_v39  ;;  %v2330_v34 = vpop.f32.mrb[41].mxu0  ;;  %5179 = vtanh.f32 %v2502_v2 }
 0x1fb   : > { %v2608_v38 = vmul.f32 0.5, %v5168_v62  ;;  %v4777_v45 = vadd.f32 %v2330_v34, %v6171_v61  ;;  %v2332_v7 = vpop.f32.mrb[42].mxu0  ;;  %4713 = vmatmul.mubr.msk.bf16.gmra.mrb[76].mxu1 %vm2145_vm3, %v3687_v60  ;;  %v6418_v42 = vadd.f32 0.5, %v2607_v3  ;;  %v6420_v28 = vpop.eup %5169 }
 0x1fc   : > { %7364 = vst [vmem:[#allocation21_spill] sm:$0xff] %v6420_v28  ;;  %v2503_v27 = vadd.f32 %v4776_v18, %v6144_v10  ;;  %v4778_v15 = vadd.f32 %v2332_v7, %v6175_v5  ;;  %v2334_v32 = vpop.f32.mrb[43].mxu0  ;;  %v6424_v39 = vpop.permute.xlu0 %2795 }
 0x1fd   : > { %7363 = vst [vmem:[#allocation20_spill] sm:$0xff] %v6418_v42  ;;  %v4779_v53 = vadd.f32 %v2334_v32, %v6177_v57  ;;  %v2735_v61 = vmul.f32 %v6420_v28, %v6418_v42  ;;  %v6429_v34 = vadd.f32 0.5, %v2608_v38  ;;  %v6431_v60 = vpop.eup %5171  ;;  %v2504_v3 = vadd.f32 %v4777_v45, %v6147_v0  ;;  %v6435_v62 = vpop.permute.xlu1 %2797 }
 0x1fe   : > { %5181 = vtanh.f32 %v2503_v27  ;;  %v2505_v2 = vadd.f32 %v4778_v15, %v6144_v10 }
 0x1ff   : > { %7365 = vst [vmem:[#allocation22_spill] sm:$0xff] %v6429_v34  ;;  %2975 = vrot.lane.b32.xlu0 %v2735_v61, %s5303_s14  ;;  %v2736_v5 = vmul.f32 %v6431_v60, %v6429_v34  ;;  %v2506_v18 = vadd.f32 %v4779_v53, %v6147_v0 }
 0x200   : > { %v5174_v57 = vpop.eup %5173  ;;  %5183 = vtanh.f32 %v2505_v2  ;;  %v6441_v38 = vpop.permute.xlu0 %2799 }
 0x201   : > { %v2609_v7 = vmul.f32 0.5, %v5174_v57  ;;  %2977 = vrot.lane.b32.xlu1 %v2736_v5, %s5303_s14  ;;  %v3688_v27 = vpack.c.bf16 %v2736_v5, %v2735_v61  ;;  %v2338_v45 = vpop.f32.mrb[44].mxu0  ;;  %5185 = vtanh.f32 %v2504_v3  ;;  %v6445_v37 = vpop.permute.xlu1 %2801 }
 0x202   : > { %v5176_v32 = vpop.eup %5175  ;;  %v4780_v15 = vadd.f32 %v2338_v45, %v6188_v40  ;;  %v2340_v42 = vpop.f32.mrb[45].mxu0  ;;  %5187 = vtanh.f32 %v2506_v18 }
 0x203   : > { %v2610_v28 = vmul.f32 0.5, %v5176_v32  ;;  %v4781_v34 = vadd.f32 %v2340_v42, %v6193_v48  ;;  %v2342_v2 = vpop.f32.mrb[46].mxu0  ;;  %4716 = vmatprep.mubr.msk.bf16.mxu1 %vm2145_vm3, %v3688_v27  ;;  %v6449_v53 = vadd.f32 0.5, %v2609_v7  ;;  %v6451_v57 = vpop.eup %5177 }
 0x204   : > { %7367 = vst [vmem:[#allocation24_spill] sm:$0xff] %v6451_v57  ;;  %v2507_v61 = vadd.f32 %v4780_v15, %v6144_v10  ;;  %v4782_v3 = vadd.f32 %v2342_v2, %v6201_v13  ;;  %v2344_v5 = vpop.f32.mrb[47].mxu0  ;;  %v6455_v40 = vpop.permute.xlu0 %2803 }
 0x205   : > { %7366 = vst [vmem:[#allocation23_spill] sm:$0xff] %v6449_v53  ;;  %v4783_v45 = vadd.f32 %v2344_v5, %v6206_v35  ;;  %v2737_v48 = vmul.f32 %v6451_v57, %v6449_v53  ;;  %v6460_v42 = vadd.f32 0.5, %v2610_v28  ;;  %v6462_v27 = vpop.eup %5179  ;;  %v2508_v7 = vadd.f32 %v4781_v34, %v6147_v0  ;;  %v6466_v32 = vpop.permute.xlu1 %2805 }
 0x206   : > { %7369 = vst [vmem:[#allocation26_spill] sm:$0xff] %v6462_v27  ;;  %5189 = vtanh.f32 %v2507_v61  ;;  %v2509_v18 = vadd.f32 %v4782_v3, %v6144_v10 }
 0x207   : > { %7368 = vst [vmem:[#allocation25_spill] sm:$0xff] %v6460_v42  ;;  %2979 = vrot.lane.b32.xlu0 %v2737_v48, %s5303_s14  ;;  %v2738_v13 = vmul.f32 %v6462_v27, %v6460_v42  ;;  %v2510_v15 = vadd.f32 %v4783_v45, %v6147_v0 }
 0x208   : > { %v5182_v35 = vpop.eup %5181  ;;  %5191 = vtanh.f32 %v2509_v18  ;;  %v6472_v28 = vpop.permute.xlu0 %2807 }
 0x209   : > { %v2611_v2 = vmul.f32 0.5, %v5182_v35  ;;  %2981 = vrot.lane.b32.xlu1 %v2738_v13, %s5303_s14  ;;  %v3689_v61 = vpack.c.bf16 %v2738_v13, %v2737_v48  ;;  %v2348_v34 = vpop.f32.mrb[48].mxu0  ;;  %5193 = vtanh.f32 %v2508_v7  ;;  %v6476_v57 = vpop.permute.xlu1 %2809 }
 0x20a   : > { %v5184_v5 = vpop.eup %5183  ;;  %v4784_v3 = vadd.f32 %v2348_v34, %v6219_v43  ;;  %v2350_v53 = vpop.f32.mrb[49].mxu0  ;;  %5195 = vtanh.f32 %v2510_v15 }
 0x20b   : > { %v2612_v23 = vmul.f32 0.5, %v5184_v5  ;;  %v4785_v42 = vadd.f32 %v2350_v53, %v6224_v6  ;;  %v2352_v18 = vpop.f32.mrb[50].mxu0  ;;  %4717 = vmatmul.mubr.msk.bf16.gmra.mrb[80].mxu1 %vm2145_vm3, %v3689_v61  ;;  %v6480_v45 = vadd.f32 0.5, %v2611_v2  ;;  %v6482_v35 = vpop.eup %5185 }
 0x20c   : > { %7371 = vst [vmem:[#allocation28_spill] sm:$0xff] %v6482_v35  ;;  %v2511_v48 = vadd.f32 %v4784_v3, %v6144_v10  ;;  %v4786_v7 = vadd.f32 %v2352_v18, %v6232_v30  ;;  %v2354_v13 = vpop.f32.mrb[51].mxu0  ;;  %v6486_v43 = vpop.permute.xlu0 %2811 }
 0x20d   : > { %7370 = vst [vmem:[#allocation27_spill] sm:$0xff] %v6480_v45  ;;  %v4787_v34 = vadd.f32 %v2354_v13, %v6237_v20  ;;  %v2739_v6 = vmul.f32 %v6482_v35, %v6480_v45  ;;  %v6491_v53 = vadd.f32 0.5, %v2612_v23  ;;  %v6493_v61 = vpop.eup %5187  ;;  %v2512_v2 = vadd.f32 %v4785_v42, %v6147_v0  ;;  %v6497_v5 = vpop.permute.xlu1 %2813 }
 0x20e   : > { %5197 = vtanh.f32 %v2511_v48  ;;  %v2513_v15 = vadd.f32 %v4786_v7, %v6144_v10 }
 0x20f   : > { %7372 = vst [vmem:[#allocation29_spill] sm:$0xff] %v6491_v53  ;;  %2983 = vrot.lane.b32.xlu0 %v2739_v6, %s5303_s14  ;;  %v2740_v30 = vmul.f32 %v6493_v61, %v6491_v53  ;;  %v2514_v3 = vadd.f32 %v4787_v34, %v6147_v0 }
 0x210   : > { %v5190_v20 = vpop.eup %5189  ;;  %5199 = vtanh.f32 %v2513_v15  ;;  %v6503_v23 = vpop.permute.xlu0 %2815 }
 0x211   : > { %v2613_v18 = vmul.f32 0.5, %v5190_v20  ;;  %2985 = vrot.lane.b32.xlu1 %v2740_v30, %s5303_s14  ;;  %v3690_v48 = vpack.c.bf16 %v2740_v30, %v2739_v6  ;;  %v2358_v42 = vpop.f32.mrb[52].mxu0  ;;  %5201 = vtanh.f32 %v2512_v2  ;;  %v6507_v35 = vpop.permute.xlu1 %2817 }
 0x212   : > { %v5192_v13 = vpop.eup %5191  ;;  %v4788_v7 = vadd.f32 %v2358_v42, %v6250_v17  ;;  %v2360_v45 = vpop.f32.mrb[53].mxu0  ;;  %5203 = vtanh.f32 %v2514_v3 }
 0x213   : > { %v2614_v27 = vmul.f32 0.5, %v5192_v13  ;;  %v4789_v53 = vadd.f32 %v2360_v45, %v6255_v55  ;;  %v2362_v15 = vpop.f32.mrb[54].mxu0  ;;  %4720 = vmatprep.mubr.msk.bf16.mxu1 %vm2145_vm3, %v3690_v48  ;;  %v6511_v34 = vadd.f32 0.5, %v2613_v18  ;;  %v6513_v20 = vpop.eup %5193 }
 0x214   : > { %7374 = vst [vmem:[#allocation31_spill] sm:$0xff] %v6513_v20  ;;  %v2515_v6 = vadd.f32 %v4788_v7, %v6144_v10  ;;  %v4790_v2 = vadd.f32 %v2362_v15, %v6263_v41  ;;  %v2364_v30 = vpop.f32.mrb[55].mxu0  ;;  %v6517_v17 = vpop.permute.xlu0 %2819 }
 0x215   : > { %7373 = vst [vmem:[#allocation30_spill] sm:$0xff] %v6511_v34  ;;  %7375 = vst [vmem:[#allocation32_spill] sm:$0xff] %v6517_v17  ;;  %v4791_v42 = vadd.f32 %v2364_v30, %v6268_v1  ;;  %v2741_v55 = vmul.f32 %v6513_v20, %v6511_v34  ;;  %v6522_v45 = vadd.f32 0.5, %v2614_v27  ;;  %v6524_v48 = vpop.eup %5195  ;;  %v2516_v18 = vadd.f32 %v4789_v53, %v6147_v0  ;;  %v6528_v13 = vpop.permute.xlu1 %2821 }
 0x216   : > { %5205 = vtanh.f32 %v2515_v6  ;;  %v2517_v3 = vadd.f32 %v4790_v2, %v6144_v10 }
 0x217   : > { %7376 = vst [vmem:[#allocation33_spill] sm:$0xff] %v6522_v45  ;;  %2987 = vrot.lane.b32.xlu0 %v2741_v55, %s5303_s14  ;;  %v2742_v41 = vmul.f32 %v6524_v48, %v6522_v45  ;;  %v2518_v7 = vadd.f32 %v4791_v42, %v6147_v0 }
 0x218   : > { %v5198_v1 = vpop.eup %5197  ;;  %5207 = vtanh.f32 %v2517_v3  ;;  %v6534_v27 = vpop.permute.xlu0 %2823 }
 0x219   : > { %v2615_v15 = vmul.f32 0.5, %v5198_v1  ;;  %2989 = vrot.lane.b32.xlu1 %v2742_v41, %s5303_s14  ;;  %v3691_v6 = vpack.c.bf16 %v2742_v41, %v2741_v55  ;;  %v2368_v53 = vpop.f32.mrb[56].mxu0  ;;  %5209 = vtanh.f32 %v2516_v18  ;;  %v6538_v20 = vpop.permute.xlu1 %2825 }
 0x21a   : > { %v5200_v30 = vpop.eup %5199  ;;  %v4792_v2 = vadd.f32 %v2368_v53, %v6281_v11  ;;  %v2370_v34 = vpop.f32.mrb[57].mxu0  ;;  %5211 = vtanh.f32 %v2518_v7 }
 0x21b   : > { %v2616_v17 = vmul.f32 0.5, %v5200_v30  ;;  %v4793_v45 = vadd.f32 %v2370_v34, %v6286_v63  ;;  %v2372_v3 = vpop.f32.mrb[58].mxu0  ;;  %4721 = vmatmul.mubr.msk.bf16.gmra.mrb[84].mxu1 %vm2145_vm3, %v3691_v6  ;;  %v6542_v42 = vadd.f32 0.5, %v2615_v15  ;;  %v6544_v1 = vpop.eup %5201 }
 0x21c   : > { %7378 = vst [vmem:[#allocation35_spill] sm:$0xff] %v6544_v1  ;;  %v2519_v55 = vadd.f32 %v4792_v2, %v6144_v10  ;;  %v4794_v18 = vadd.f32 %v2372_v3, %v6294_v44  ;;  %v2374_v41 = vpop.f32.mrb[59].mxu0  ;;  %v6548_v11 = vpop.permute.xlu0 %2827 }
 0x21d   : > { %7377 = vst [vmem:[#allocation34_spill] sm:$0xff] %v6542_v42  ;;  %7379 = vst [vmem:[#allocation36_spill] sm:$0xff] %v6548_v11  ;;  %v4795_v53 = vadd.f32 %v2374_v41, %v6299_v12  ;;  %v2743_v63 = vmul.f32 %v6544_v1, %v6542_v42  ;;  %v6553_v34 = vadd.f32 0.5, %v2616_v17  ;;  %v6555_v6 = vpop.eup %5203  ;;  %v2520_v15 = vadd.f32 %v4793_v45, %v6147_v0  ;;  %v6559_v30 = vpop.permute.xlu1 %2829 }
 0x21e   : > { %5213 = vtanh.f32 %v2519_v55  ;;  %v2521_v7 = vadd.f32 %v4794_v18, %v6144_v10 }
 0x21f   : > { %7380 = vst [vmem:[#allocation37_spill] sm:$0xff] %v6553_v34  ;;  %2991 = vrot.lane.b32.xlu0 %v2743_v63, %s5303_s14  ;;  %v2744_v44 = vmul.f32 %v6555_v6, %v6553_v34  ;;  %v2522_v2 = vadd.f32 %v4795_v53, %v6147_v0 }
 0x220   : > { %v5206_v12 = vpop.eup %5205  ;;  %5215 = vtanh.f32 %v2521_v7  ;;  %v6565_v17 = vpop.permute.xlu0 %2831 }
 0x221   : > { %v2617_v3 = vmul.f32 0.5, %v5206_v12  ;;  %2993 = vrot.lane.b32.xlu1 %v2744_v44, %s5303_s14  ;;  %v3692_v55 = vpack.c.bf16 %v2744_v44, %v2743_v63  ;;  %v2378_v45 = vpop.f32.mrb[60].mxu0  ;;  %5217 = vtanh.f32 %v2520_v15  ;;  %v6569_v1 = vpop.permute.xlu1 %2833 }
 0x222   : > { %v5208_v41 = vpop.eup %5207  ;;  %v4796_v18 = vadd.f32 %v2378_v45, %v6312_v19  ;;  %v2380_v42 = vpop.f32.mrb[61].mxu0  ;;  %5219 = vtanh.f32 %v2522_v2 }
 0x223   : > { %v2618_v11 = vmul.f32 0.5, %v5208_v41  ;;  %v4797_v34 = vadd.f32 %v2380_v42, %v6317_v4  ;;  %v2382_v7 = vpop.f32.mrb[62].mxu0  ;;  %4724 = vmatprep.mubr.msk.bf16.mxu1 %vm2145_vm3, %v3692_v55  ;;  %v6573_v53 = vadd.f32 0.5, %v2617_v3  ;;  %v6575_v12 = vpop.eup %5209 }
 0x224   : > { %v2523_v63 = vadd.f32 %v4796_v18, %v6144_v10  ;;  %v4798_v15 = vadd.f32 %v2382_v7, %v6325_v47  ;;  %v2384_v44 = vpop.f32.mrb[63].mxu0  ;;  %v6579_v19 = vpop.permute.xlu0 %2835 }
 0x225   : > { %7381 = vst [vmem:[#allocation38_spill] sm:$0xff] %v6573_v53  ;;  %7382 = vst [vmem:[#allocation39_spill] sm:$0xff] %v6579_v19  ;;  %v4799_v45 = vadd.f32 %v2384_v44, %v6330_v33  ;;  %v2745_v4 = vmul.f32 %v6575_v12, %v6573_v53  ;;  %v6584_v42 = vadd.f32 0.5, %v2618_v11  ;;  %v6586_v55 = vpop.eup %5211  ;;  %v2524_v3 = vadd.f32 %v4797_v34, %v6147_v0  ;;  %v6590_v41 = vpop.permute.xlu1 %2837 }
 0x226   : > { %5221 = vtanh.f32 %v2523_v63  ;;  %v2525_v2 = vadd.f32 %v4798_v15, %v6144_v10  ;;  %v2655_v11 = vmul.f32 0.5, %v6184_v29  ;;  %v2656_v15 = vmul.f32 0.5, %v6197_v51 }
 0x227   : > { %2995 = vrot.lane.b32.xlu0 %v2745_v4, %s5303_s14  ;;  %v2746_v47 = vmul.f32 %v6586_v55, %v6584_v42  ;;  %v2526_v18 = vadd.f32 %v4799_v45, %v6147_v0 }
 0x228   : > { %v5214_v33 = vpop.eup %5213  ;;  %5223 = vtanh.f32 %v2525_v2  ;;  %v6597_v7 = vpop.permute.xlu0 %2839  ;;  %v2687_v29 = vadd.f32 0.5, %v2655_v11  ;;  %v2688_v51 = vadd.f32 0.5, %v2656_v15  ;;  %v2657_v11 = vmul.f32 0.5, %v6215_v21 }
 0x229   : > { %7383 = vst [vmem:[#allocation40_spill] sm:$0xff] %v6597_v7  ;;  %v2619_v63 = vmul.f32 0.5, %v5214_v33  ;;  %2997 = vrot.lane.b32.xlu1 %v2746_v47, %s5303_s14  ;;  %v3693_v34 = vpack.c.bf16 %v2746_v47, %v2745_v4  ;;  %5225 = vtanh.f32 %v2524_v3  ;;  %v6601_v44 = vpop.permute.xlu1 %2841 }
 0x22a   : > { %v5216_v10 = vpop.eup %5215  ;;  %5227 = vtanh.f32 %v2526_v18  ;;  %v2879_v18 = vmul.f32 %v6379_v22, %v2687_v29  ;;  %v2880_v15 = vmul.f32 %v6383_v58, %v2688_v51  ;;  %v2689_v29 = vadd.f32 0.5, %v2657_v11 }
 0x22b   : > { %v2620_v53 = vmul.f32 0.5, %v5216_v10  ;;  %4725 = vmatmul.mubr.msk.bf16.gmra.mrb[88].mxu1 %vm2145_vm3, %v3693_v34  ;;  %v6604_v2 = vadd.f32 0.5, %v2619_v63  ;;  %v6606_v0 = vpop.eup %5217 }
 0x22c   : > { %7385 = vst [vmem:[#allocation42_spill] sm:$0xff] %v6606_v0  ;;  %v6608_v45 = vpop.permute.xlu0 %2843  ;;  %v6614_v3 = vpop.eup %5219 }
 0x22d   : > { %7384 = vst [vmem:[#allocation41_spill] sm:$0xff] %v6604_v2  ;;  %7386 = vst [vmem:[#allocation43_spill] sm:$0xff] %v6608_v45  ;;  %v2747_v4 = vmul.f32 %v6606_v0, %v6604_v2  ;;  %v6612_v47 = vadd.f32 0.5, %v2620_v53  ;;  %v6616_v33 = vpop.permute.xlu1 %2845 }
 0x22e   : > { %7388 = vst [vmem:[#allocation45_spill] sm:$0xff] %v6616_v33  ;;  %v2658_v33 = vmul.f32 0.5, %v6228_v26 }
 0x22f   : > { %7387 = vst [vmem:[#allocation44_spill] sm:$0xff] %v6612_v47  ;;  %2999 = vrot.lane.b32.xlu0 %v2747_v4, %s5303_s14  ;;  %v2748_v63 = vmul.f32 %v6614_v3, %v6612_v47 }
 0x230   : > { %v5222_v34 = vpop.eup %5221  ;;  %v2690_v26 = vadd.f32 0.5, %v2658_v33 }
 0x231   : > { %v2621_v10 = vmul.f32 0.5, %v5222_v34  ;;  %v2944_v45 = vpop.permute.xlu0 %2943  ;;  %3001 = vrot.lane.b32.xlu1 %v2748_v63, %s5303_s14  ;;  %v3694_v53 = vpack.c.bf16 %v2748_v63, %v2747_v4 }
 0x232   : > { %v5224_v2 = vpop.eup %5223  ;;  %v3039_v7 = vadd.f32 %v2944_v45, %v2879_v18  ;;  %v2660_v18 = vmul.f32 0.5, %v6259_v59  ;;  %v2661_v59 = vmul.f32 0.5, %v6277_v14 }
 0x233   : > { %v2622_v0 = vmul.f32 0.5, %v5224_v2  ;;  %v2946_v19 = vpop.permute.xlu1 %2945  ;;  %4728 = vmatprep.mubr.msk.bf16.mxu1 %vm2145_vm3, %v3694_v53  ;;  %v6627_v47 = vadd.f32 0.5, %v2621_v10  ;;  %v6629_v22 = vpop.eup %5225 }
 0x234   : > { %5229 = vtanh.f32 %v3039_v7  ;;  %v3040_v21 = vadd.f32 %v2946_v19, %v2880_v15  ;;  %3167 = vrot.lane.b32.xlu0 %v3039_v7, %s5303_s14  ;;  %v6636_v58 = vpop.eup %5227  ;;  %v2881_v19 = vmul.f32 %v6393_v25, %v2689_v29  ;;  %v2659_v7 = vmul.f32 0.5, %v6246_v56 }
 0x235   : > { %v2749_v45 = vmul.f32 %v6629_v22, %v6627_v47  ;;  %v6634_v4 = vadd.f32 0.5, %v2622_v0  ;;  %v2882_v0 = vmul.f32 %v6404_v46, %v2690_v26  ;;  %v2692_v56 = vadd.f32 0.5, %v2660_v18  ;;  %v7391_v18 = vld [vmem:[#allocation4_spill] sm:$0xff] }
 0x236   : > { %5231 = vtanh.f32 %v3040_v21  ;;  %3169 = vrot.lane.b32.xlu1 %v3040_v21, %s5303_s14  ;;  %v2691_v10 = vadd.f32 0.5, %v2659_v7  ;;  %v2693_v14 = vadd.f32 0.5, %v2661_v59  ;;  %v7393_v59 = vld [vmem:[#allocation11_spill] sm:$0xff] }
 0x237   : > { %v2750_v2 = vmul.f32 %v6636_v58, %v6634_v4  ;;  %v2884_v26 = vmul.f32 %v6414_v49, %v2692_v56 }
 0x238   : > { %3003 = vrot.lane.b32.xlu0 %v2749_v45, %s5303_s14  ;;  %v2883_v46 = vmul.f32 %v6410_v50, %v2691_v10 }
 0x239   : > { %v2948_v51 = vpop.permute.xlu0 %2947  ;;  %v3695_v63 = vpack.c.bf16 %v2750_v2, %v2749_v45 }
 0x23a   : > { %v3041_v34 = vadd.f32 %v2948_v51, %v2881_v19  ;;  %3005 = vrot.lane.b32.xlu1 %v2750_v2, %s5303_s14  ;;  %v7389_v2 = vld [vmem:[#allocation9_spill] sm:$0xff] }
 0x23b   : > { %v2950_v11 = vpop.permute.xlu1 %2949  ;;  %4729 = vmatmul.mubr.msk.bf16.gmra.mrb[92].mxu1 %vm2145_vm3, %v3695_v63  ;;  %v2662_v19 = vmul.f32 0.5, %v7389_v2 }
 0x23c   : > { %5233 = vtanh.f32 %v3041_v34  ;;  %v3042_v33 = vadd.f32 %v2950_v11, %v2882_v0  ;;  %3171 = vrot.lane.b32.xlu0 %v3041_v34, %s5303_s14  ;;  %v2885_v34 = vmul.f32 %v6424_v39, %v2693_v14 }
 0x23d   : > { %v2694_v51 = vadd.f32 0.5, %v2662_v19 }
 0x23e   : > { %v5230_v25 = vpop.eup %5229  ;;  %5235 = vtanh.f32 %v3042_v33  ;;  %3173 = vrot.lane.b32.xlu1 %v3042_v33, %s5303_s14 }
 0x23f   : > { %v6651_v53 = vmul.f32 %v5230_v25, %v6182_v24  ;;  %v2886_v10 = vmul.f32 %v6435_v62, %v2694_v51  ;;  %v7392_v25 = vld [vmem:[#allocation13_spill] sm:$0xff]  ;;  %v7395_v51 = vld [vmem:[#allocation6_spill] sm:$0xff] }
 0x240   : > { %v5232_v15 = vpop.eup %5231  ;;  %v2664_v56 = vmul.f32 0.5, %v7392_v25 }
 0x241   : > { %v2952_v21 = vpop.permute.xlu0 %2951  ;;  %3327 = vrot.lane.b32.xlu0 %v6651_v53, %s5304_s28  ;;  %v6658_v29 = vmul.f32 %v5232_v15, %v6195_v8  ;;  %v7390_v8 = vld [vmem:[#allocation3_spill] sm:$0xff] }
 0x242   : > { %v3043_v45 = vadd.f32 %v2952_v21, %v2883_v46  ;;  %v2663_v21 = vmul.f32 0.5, %v7393_v59 }
 0x243   : > { %v2954_v24 = vpop.permute.xlu1 %2953  ;;  %3329 = vrot.lane.b32.xlu1 %v6658_v29, %s5304_s28 }
 0x244   : > { %5237 = vtanh.f32 %v3043_v45  ;;  %v3044_v50 = vadd.f32 %v2954_v24, %v2884_v26  ;;  %v7394_v26 = vld [vmem:[#allocation5_spill] sm:$0xff]  ;;  %v2695_v19 = vadd.f32 0.5, %v2663_v21 }
 0x245   : > { %3175 = vrot.lane.b32.xlu0 %v3043_v45, %s5303_s14  ;;  %v2696_v45 = vadd.f32 0.5, %v2664_v56 }
 0x246   : > { %v5234_v7 = vpop.eup %5233  ;;  %5239 = vtanh.f32 %v3044_v50 }
 0x247   : > { %3177 = vrot.lane.b32.xlu1 %v3044_v50, %s5303_s14  ;;  %v6667_v63 = vmul.f32 %v5234_v7, %v7390_v8  ;;  %v2888_v24 = vmul.f32 %v6445_v37, %v2696_v45  ;;  %v2666_v50 = vmul.f32 0.5, %v6348_v52  ;;  %v2665_v37 = vmul.f32 0.5, %v6339_v36 }
 0x248   : > { %v5236_v49 = vpop.eup %5235 }
 0x249   : > { %v2956_v0 = vpop.permute.xlu0 %2955  ;;  %3331 = vrot.lane.b32.xlu0 %v6667_v63, %s5304_s28  ;;  %v6673_v11 = vmul.f32 %v5236_v49, %v7391_v18  ;;  %v2887_v49 = vmul.f32 %v6441_v38, %v2695_v19  ;;  %v2698_v18 = vadd.f32 0.5, %v2666_v50  ;;  %v7396_v38 = vld [vmem:[#allocation7_spill] sm:$0xff]  ;;  %v2670_v19 = vmul.f32 0.5, %v6400_v31 }
 0x24a   : > { %v3045_v33 = vadd.f32 %v2956_v0, %v2885_v34 }
 0x24b   : > { %v2958_v15 = vpop.permute.xlu1 %2957  ;;  %3333 = vrot.lane.b32.xlu1 %v6673_v11, %s5304_s28  ;;  %v2890_v52 = vmul.f32 %v6466_v32, %v2698_v18  ;;  %v2669_v32 = vmul.f32 0.5, %v6389_v54  ;;  %v2702_v54 = vadd.f32 0.5, %v2670_v19  ;;  %v7402_v19 = vld [vmem:[#allocation21_spill] sm:$0xff] }
 0x24c   : > { %v3046_v46 = vadd.f32 %v2958_v15, %v2886_v10  ;;  %5241 = vtanh.f32 %v3045_v33  ;;  %v2668_v10 = vmul.f32 0.5, %v6371_v16 }
 0x24d   : > { %3179 = vrot.lane.b32.xlu0 %v3045_v33, %s5303_s14 }
 0x24e   : > { %v5238_v39 = vpop.eup %5237  ;;  %5243 = vtanh.f32 %v3046_v46  ;;  %v2700_v36 = vadd.f32 0.5, %v2668_v10  ;;  %v7399_v10 = vld [vmem:[#allocation12_spill] sm:$0xff] }
 0x24f   : > { %3181 = vrot.lane.b32.xlu1 %v3046_v46, %s5303_s14  ;;  %v6683_v2 = vmul.f32 %v5238_v39, %v7394_v26  ;;  %v2697_v46 = vadd.f32 0.5, %v2665_v37  ;;  %v7397_v39 = vld [vmem:[#allocation8_spill] sm:$0xff]  ;;  %v2672_v37 = vmul.f32 0.5, %v6431_v60 }
 0x250   : > { %v5240_v62 = vpop.eup %5239 }
 0x251   : > { %3335 = vrot.lane.b32.xlu0 %v6683_v2, %s5304_s28  ;;  %v2960_v14 = vpop.permute.xlu0 %2959  ;;  %v6690_v8 = vmul.f32 %v5240_v62, %v7395_v51  ;;  %v2889_v16 = vmul.f32 %v6455_v40, %v2697_v46  ;;  %v2892_v62 = vmul.f32 %v6476_v57, %v2700_v36  ;;  %v2701_v51 = vadd.f32 0.5, %v2669_v32  ;;  %v7398_v40 = vld [vmem:[#allocation10_spill] sm:$0xff] }
 0x252   : > { %v3047_v0 = vadd.f32 %v2960_v14, %v2887_v49  ;;  %v2667_v14 = vmul.f32 0.5, %v6362_v9  ;;  %v2704_v46 = vadd.f32 0.5, %v2672_v37  ;;  %v7405_v37 = vld [vmem:[#allocation16_spill] sm:$0xff] }
 0x253   : > { %v2962_v7 = vpop.permute.xlu1 %2961  ;;  %v2893_v31 = vmul.f32 %v6486_v43, %v2701_v51 }
 0x254   : > { %v3048_v34 = vadd.f32 %v2962_v7, %v2888_v24  ;;  %5245 = vtanh.f32 %v3047_v0  ;;  %v2699_v57 = vadd.f32 0.5, %v2667_v14  ;;  %v2896_v60 = vmul.f32 %v6507_v35, %v2704_v46  ;;  %v7404_v14 = vld [vmem:[#allocation18_spill] sm:$0xff]  ;;  %v7407_v46 = vld [vmem:[#allocation24_spill] sm:$0xff] }
 0x255   : > { %3337 = vrot.lane.b32.xlu0 %v6690_v8, %s5304_s28 }
 0x256   : > { %3185 = vrot.lane.b32.xlu1 %v3048_v34, %s5303_s14  ;;  %v5242_v33 = vpop.eup %5241  ;;  %5247 = vtanh.f32 %v3048_v34 }
 0x257   : > { %v6701_v56 = vmul.f32 %v5242_v33, %v7396_v38  ;;  %v2894_v33 = vmul.f32 %v6497_v5, %v2702_v54  ;;  %v2891_v38 = vmul.f32 %v6472_v28, %v2699_v57  ;;  %v7400_v5 = vld [vmem:[#allocation26_spill] sm:$0xff] }
 0x258   : > { %v5244_v15 = vpop.eup %5243  ;;  %v2674_v36 = vmul.f32 0.5, %v7400_v5 }
 0x259   : > { %3183 = vrot.lane.b32.xlu0 %v3047_v0, %s5303_s14  ;;  %v2964_v21 = vpop.permute.xlu0 %2963  ;;  %v6707_v45 = vmul.f32 %v5244_v15, %v7397_v39  ;;  %v7401_v39 = vld [vmem:[#allocation14_spill] sm:$0xff] }
 0x25a   : > { %v3049_v26 = vadd.f32 %v2964_v21, %v2889_v16 }
 0x25b   : > { %v2966_v25 = vpop.permute.xlu1 %2965 }
 0x25c   : > { %v3050_v59 = vadd.f32 %v2966_v25, %v2890_v52  ;;  %5249 = vtanh.f32 %v3049_v26 }
 0x25d   : > { %3339 = vrot.lane.b32.xlu0 %v6701_v56, %s5304_s28 }
 0x25e   : > { %3189 = vrot.lane.b32.xlu1 %v3050_v59, %s5303_s14  ;;  %v5246_v50 = vpop.eup %5245  ;;  %5251 = vtanh.f32 %v3050_v59 }
 0x25f   : > { %v6719_v34 = vmul.f32 %v5246_v50, %v7398_v40  ;;  %v7403_v50 = vld [vmem:[#allocation15_spill] sm:$0xff] }
 0x260   : > { %v5248_v0 = vpop.eup %5247 }
 0x261   : > { %3341 = vrot.lane.b32.xlu0 %v6707_v45, %s5304_s28  ;;  %v2968_v49 = vpop.permute.xlu0 %2967  ;;  %v6727_v25 = vmul.f32 %v5248_v0, %v7399_v10 }
 0x262   : > { %v3051_v43 = vadd.f32 %v2968_v49, %v2891_v38  ;;  %v2678_v38 = vmul.f32 0.5, %v6524_v48  ;;  %v7408_v48 = vld [vmem:[#allocation25_spill] sm:$0xff] }
 0x263   : > { %v2970_v24 = vpop.permute.xlu1 %2969 }
 0x264   : > { %v3052_v7 = vadd.f32 %v2970_v24, %v2892_v62  ;;  %v2706_v62 = vadd.f32 0.5, %v2674_v36  ;;  %v2671_v24 = vmul.f32 0.5, %v7402_v19  ;;  %v7409_v19 = vld [vmem:[#allocation19_spill] sm:$0xff] }
 0x265   : > { %3187 = vrot.lane.b32.xlu0 %v3049_v26, %s5303_s14 }
 0x266   : > { %3193 = vrot.lane.b32.xlu1 %v3052_v7, %s5303_s14  ;;  %v5250_v59 = vpop.eup %5249  ;;  %v2898_v49 = vmul.f32 %v6528_v13, %v2706_v62  ;;  %v2703_v54 = vadd.f32 0.5, %v2671_v24 }
 0x267   : > { %v6737_v28 = vmul.f32 %v5250_v59, %v7401_v39  ;;  %v2673_v59 = vmul.f32 0.5, %v7407_v46 }
 0x268   : > { %v5252_v16 = vpop.eup %5251 }
 0x269   : > { %v2972_v18 = vpop.permute.xlu0 %2971  ;;  %3343 = vrot.lane.b32.xlu0 %v6719_v34, %s5304_s28  ;;  %v6744_v35 = vmul.f32 %v5252_v16, %v7403_v50  ;;  %v2680_v16 = vmul.f32 0.5, %v6555_v6  ;;  %v7410_v50 = vld [vmem:[#allocation32_spill] sm:$0xff] }
 0x26a   : > { %v3053_v9 = vadd.f32 %v2972_v18, %v2893_v31 }
 0x26b   : > { %v2974_v52 = vpop.permute.xlu1 %2973 }
 0x26c   : > { %5253 = vtanh.f32 %v3053_v9  ;;  %v3054_v15 = vadd.f32 %v2974_v52, %v2894_v33  ;;  %v2895_v33 = vmul.f32 %v6503_v23, %v2703_v54  ;;  %v2710_v23 = vadd.f32 0.5, %v2678_v38 }
 0x26d   : > { %3345 = vrot.lane.b32.xlu0 %v6727_v25, %s5304_s28  ;;  %5255 = vtanh.f32 %v3051_v43 }
 0x26e   : > { %3197 = vrot.lane.b32.xlu1 %v3054_v15, %s5303_s14  ;;  %5257 = vtanh.f32 %v3052_v7  ;;  %v2676_v7 = vmul.f32 0.5, %v6493_v61  ;;  %v2902_v39 = vmul.f32 %v6559_v30, %v2710_v23  ;;  %v2712_v30 = vadd.f32 0.5, %v2680_v16  ;;  %v7415_v23 = vld [vmem:[#allocation22_spill] sm:$0xff] }
 0x26f   : > { %5259 = vtanh.f32 %v3054_v15  ;;  %v7406_v15 = vld [vmem:[#allocation17_spill] sm:$0xff] }
 0x270   : > { %v2708_v18 = vadd.f32 0.5, %v2676_v7 }
 0x271   : > { %3191 = vrot.lane.b32.xlu0 %v3051_v43, %s5303_s14  ;;  %v2976_v31 = vpop.permute.xlu0 %2975 }
 0x272   : > { %v3055_v10 = vadd.f32 %v2976_v31, %v2895_v33  ;;  %v2900_v61 = vmul.f32 %v6538_v20, %v2708_v18  ;;  %v2705_v20 = vadd.f32 0.5, %v2673_v59  ;;  %v7412_v31 = vld [vmem:[#allocation29_spill] sm:$0xff]  ;;  %v2904_v33 = vmul.f32 %v6569_v1, %v2712_v30  ;;  %v7419_v30 = vld [vmem:[#allocation35_spill] sm:$0xff] }
 0x273   : > { %v2978_v21 = vpop.permute.xlu1 %2977 }
 0x274   : > { %v3056_v32 = vadd.f32 %v2978_v21, %v2896_v60 }
 0x275   : > { %3347 = vrot.lane.b32.xlu0 %v6737_v28, %s5304_s28 }
 0x276   : > { %v5254_v26 = vpop.eup %5253  ;;  %3201 = vrot.lane.b32.xlu1 %v3056_v32, %s5303_s14 }
 0x277   : > { %v6747_v51 = vmul.f32 %v5254_v26, %v7404_v14  ;;  %v5256_v0 = vpop.eup %5255  ;;  %v2897_v14 = vmul.f32 %v7410_v50, %v2705_v20 }
 0x278   : > { %v6759_v52 = vmul.f32 %v5256_v0, %v7405_v37  ;;  %v5258_v13 = vpop.eup %5257  ;;  %v2682_v37 = vmul.f32 0.5, %v6586_v55 }
 0x279   : > { %3349 = vrot.lane.b32.xlu0 %v6744_v35, %s5304_s28  ;;  %v6766_v43 = vmul.f32 %v5258_v13, %v7406_v15  ;;  %v5260_v5 = vpop.eup %5259  ;;  %v2980_v26 = vpop.permute.xlu0 %2979  ;;  %v7414_v15 = vld [vmem:[#allocation31_spill] sm:$0xff] }
 0x27a   : > { %3355 = vrot.lane.b32.xlu1 %v6747_v51, %s5304_s28  ;;  %v6781_v24 = vmul.f32 %v5260_v5, %v7409_v19  ;;  %v2677_v46 = vmul.f32 0.5, %v7414_v15  ;;  %v2714_v55 = vadd.f32 0.5, %v2682_v37  ;;  %v6815_v19 = vstv %s4637_s29 }
 0x27b   : > { %v2982_v40 = vpop.permute.xlu1 %2981 }
 0x27c   : > { %v3058_v57 = vadd.f32 %v2982_v40, %v2898_v49  ;;  %v7411_v49 = vld [vmem:[#allocation28_spill] sm:$0xff]  ;;  %v2709_v20 = vadd.f32 0.5, %v2677_v46  ;;  %v2906_v16 = vmul.f32 %v6590_v41, %v2714_v55  ;;  %v6826_v41 = vld [vmem:[%s7302_s9] ss:$0 sm:$0xff]  ;;  %v2681_v55 = vmul.f32 0.5, %v6575_v12 }
 0x27d   : > { %3195 = vrot.lane.b32.xlu0 %v3053_v9, %s5303_s14  ;;  %v2675_v7 = vmul.f32 0.5, %v7411_v49  ;;  %v2684_v49 = vmul.f32 0.5, %v6614_v3  ;;  %v2686_v12 = vmul.f32 0.5, %v6636_v58 }
 0x27e   : > { %5261 = vtanh.f32 %v3058_v57  ;;  %3205 = vrot.lane.b32.xlu1 %v3058_v57, %s5303_s14 }
 0x27f   : > { %5263 = vtanh.f32 %v3055_v10  ;;  %v2707_v0 = vadd.f32 0.5, %v2675_v7  ;;  %v2716_v46 = vadd.f32 0.5, %v2684_v49 }
 0x281   : > { %3351 = vrot.lane.b32.xlu0 %v6759_v52, %s5304_s28  ;;  %v2984_v57 = vpop.permute.xlu0 %2983 }
 0x283   : > { %v2986_v9 = vpop.permute.xlu1 %2985 }
 0x284   : > { %v3060_v60 = vadd.f32 %v2986_v9, %v2900_v61  ;;  %v2899_v9 = vmul.f32 %v6534_v27, %v2707_v0  ;;  %v7416_v27 = vld [vmem:[#allocation33_spill] sm:$0xff] }
 0x285   : > { %3353 = vrot.lane.b32.xlu0 %v6766_v43, %s5304_s28 }
 0x286   : > { %5265 = vtanh.f32 %v3060_v60  ;;  %3209 = vrot.lane.b32.xlu1 %v3060_v60, %s5303_s14  ;;  %v3059_v1 = vadd.f32 %v2984_v57, %v2899_v9  ;;  %v7420_v9 = vld [vmem:[#allocation23_spill] sm:$0xff] }
 0x287   : > { %5267 = vtanh.f32 %v3056_v32  ;;  %v3057_v32 = vadd.f32 %v2980_v26, %v2897_v14  ;;  %v7417_v26 = vld [vmem:[#allocation2_spill] sm:$0xff] }
 0x288   : > { %v5262_v36 = vpop.eup %5261  ;;  %v3947_v14 = vadd.s32 8, %v7417_v26  ;;  %v3949_v0 = vadd.s32 24, %v7417_v26  ;;  %v3979_v3 = vadd.s32 %v6815_v19, %v7417_v26 }
 0x289   : > { %3199 = vrot.lane.b32.xlu0 %v3055_v10, %s5303_s14  ;;  %v6774_v21 = vmul.f32 %v5262_v36, %v7408_v48  ;;  %v5264_v6 = vpop.eup %5263  ;;  %v7413_v10 = vld [vmem:[#allocation20_spill] sm:$0xff]  ;;  %v2988_v60 = vpop.permute.xlu0 %2987 }
 0x28a   : > { %v6797_v61 = vmul.f32 %v5264_v6, %v7413_v10  ;;  %v2679_v6 = vmul.f32 0.5, %v7419_v30  ;;  %vm4011_vm4 = vcmp.lt.s32.totalorder %v3979_v3, 512 }
 0x28b   : > { %v2990_v62 = vpop.permute.xlu1 %2989  ;;  %3365 = vrot.lane.b32.xlu1 %v6774_v21, %s5304_s28 }
 0x28c   : > { %v3062_v54 = vadd.f32 %v2990_v62, %v2902_v39  ;;  %v3948_v62 = vadd.s32 16, %v7417_v26 }
 0x28d   : > { %3357 = vrot.lane.b32.xlu0 %v6781_v24, %s5304_s28 }
 0x28e   : > { %5269 = vtanh.f32 %v3062_v54  ;;  %v3981_v37 = vadd.s32 %v6815_v19, %v3948_v62  ;;  %v7421_v62 = vld [vmem:[#allocation37_spill] sm:$0xff] }
 0x28f   : > { %3213 = vrot.lane.b32.xlu1 %v3062_v54, %s5303_s14  ;;  %5271 = vtanh.f32 %v3057_v32  ;;  %v7418_v54 = vld [vmem:[#allocation36_spill] sm:$0xff] }
 0x290   : > { %v5266_v40 = vpop.eup %5265  ;;  %vm4013_vm5 = vcmp.lt.s32.totalorder %v3981_v37, 512 }
 0x291   : > { %3203 = vrot.lane.b32.xlu0 %v3057_v32, %s5303_s14  ;;  %v6790_v18 = vmul.f32 %v5266_v40, %v7412_v31  ;;  %v5268_v38 = vpop.eup %5267  ;;  %v2992_v48 = vpop.permute.xlu0 %2991  ;;  %v2901_v32 = vmul.f32 %v7418_v54, %v2709_v20 }
 0x292   : > { %v6805_v5 = vmul.f32 %v5268_v38, %v7415_v23  ;;  %v3980_v38 = vadd.s32 %v6815_v19, %v3947_v14 }
 0x293   : > { %v2994_v13 = vpop.permute.xlu1 %2993  ;;  %3369 = vrot.lane.b32.xlu1 %v6790_v18, %s5304_s28  ;;  %v3061_v31 = vadd.f32 %v2988_v60, %v2901_v32  ;;  %v2908_v32 = vmul.f32 %v6601_v44, %v2716_v46 }
 0x294   : > { %v3064_v59 = vadd.f32 %v2994_v13, %v2904_v33  ;;  %vm4012_vm6 = vcmp.lt.s32.totalorder %v3980_v38, 512 }
 0x295   : > { %3359 = vrot.lane.b32.xlu0 %v6797_v61, %s5304_s28 }
 0x296   : > { %5273 = vtanh.f32 %v3064_v59 }
 0x297   : > { %3217 = vrot.lane.b32.xlu1 %v3064_v59, %s5303_s14  ;;  %5275 = vtanh.f32 %v3059_v1 }
 0x298   : > { %v5270_v36 = vpop.eup %5269 }
 0x299   : > { %3361 = vrot.lane.b32.xlu0 %v6805_v5, %s5304_s28  ;;  %v6811_v39 = vmul.f32 %v5270_v36, %v7416_v27  ;;  %v5272_v7 = vpop.eup %5271  ;;  %v6829_v57 = vpop.permute.xlu0 %2995  ;;  %v3982_v36 = vadd.s32 %v6815_v19, %v3949_v0 }
 0x29a   : > { %v6839_v15 = vmul.f32 %v5272_v7, %v7420_v9  ;;  %v2718_v9 = vadd.f32 0.5, %v2686_v12  ;;  %v7424_v12 = vld [vmem:[#allocation42_spill] sm:$0xff] }
 0x29b   : > { %v2998_v50 = vpop.permute.xlu1 %2997  ;;  %3373 = vrot.lane.b32.xlu1 %v6811_v39, %s5304_s28  ;;  %vm4014_vm7 = vcmp.lt.s32.totalorder %v3982_v36, 512  ;;  %v3950_v36 = vadd.s32 32, %v7417_v26 }
 0x29c   : > { %v3066_v40 = vadd.f32 %v2998_v50, %v2906_v16 }
 0x29d   : > { %3207 = vrot.lane.b32.xlu0 %v3059_v1, %s5303_s14  ;;  %v2711_v1 = vadd.f32 0.5, %v2679_v6 }
 0x29e   : > { %5277 = vtanh.f32 %v3066_v40  ;;  %v4702_v33 = vpop.f32.mrb[64].mxu1 }
 0x29f   : > { %v3826_v13 = vadd.f32 %v4702_v33, %v6826_v41  ;;  %v3817_v10 = vpop.f32.mrb[65].mxu1  ;;  %3221 = vrot.lane.b32.xlu1 %v3066_v40, %s5303_s14  ;;  %5279 = vtanh.f32 %v3061_v31  ;;  %v2903_v6 = vmul.f32 %v6565_v17, %v2711_v1  ;;  %v2713_v33 = vadd.f32 0.5, %v2681_v55  ;;  %v7422_v1 = vld [vmem:[#allocation27_spill] sm:$0xff] }
 0x2a0   : > { %v5274_v59 = vpop.eup %5273  ;;  %v3818_v60 = vadd.f32 %v6826_v41, %v3817_v10  ;;  %v4703_v23 = vpop.f32.mrb[66].mxu1 }
 0x2a1   : > { %v3829_v20 = vadd.f32 %v4703_v23, %v6826_v41  ;;  %v3820_v27 = vpop.f32.mrb[67].mxu1  ;;  %v6845_v16 = vpop.permute.xlu0 %2999  ;;  %3363 = vrot.lane.b32.xlu0 %v6839_v15, %s5304_s28  ;;  %v6850_v50 = vmul.f32 %v5274_v59, %v7421_v62  ;;  %v4045_v14 = vand.u32 2147483647, %v3826_v13  ;;  %v3063_v44 = vadd.f32 %v2992_v48, %v2903_v6 }
 0x2a2   : > { %v4043_v49 = vand.u32 2147483647, %v3818_v60  ;;  %v3821_v7 = vadd.f32 %v6826_v41, %v3820_v27  ;;  %v5276_v30 = vpop.eup %5275 }
 0x2a3   : > { %v3002_v54 = vpop.permute.xlu1 %3001  ;;  %3377 = vrot.lane.b32.xlu1 %v6850_v50, %s5304_s28  ;;  %v4046_v0 = vand.u32 2147483647, %v3829_v20  ;;  %v4141_v10 = vsel %vm4013_vm5, %v4045_v14, 0.0  ;;  %v6874_v55 = vmul.f32 %v5276_v30, %v7422_v1  ;;  %v7423_v20 = vld [vmem:[#allocation39_spill] sm:$0xff]  ;;  %v2683_v14 = vmul.f32 0.5, %v7424_v12 }
 0x2a4   : > { %v4139_v40 = vsel %vm4011_vm4, %v4043_v49, 0.0  ;;  %v4044_v58 = vand.u32 2147483647, %v3821_v7  ;;  %v3068_v13 = vadd.f32 %v3002_v54, %v2908_v32  ;;  %v4174_v38 = vsel %vm703_vm0, %v4141_v10, 0.0  ;;  %v7425_v54 = vld [vmem:[#allocation45_spill] sm:$0xff] }
 0x2a5   : > { %3211 = vrot.lane.b32.xlu0 %v3061_v31, %s5303_s14  ;;  %v4171_v46 = vsel %vm703_vm0, %v4139_v40, 0.0  ;;  %v4142_v31 = vsel %vm4014_vm7, %v4046_v0, 0.0  ;;  %v2905_v27 = vmul.f32 %v7423_v20, %v2713_v33  ;;  %v2910_v32 = vmul.f32 %v7425_v54, %v2718_v9 }
 0x2a6   : > { %v4140_v17 = vsel %vm4012_vm6, %v4044_v58, 0.0  ;;  %v3168_v3 = vpop.permute.xlu0 %3167  ;;  %5281 = vtanh.f32 %v3068_v13  ;;  %v4176_v7 = vsel %vm703_vm0, %v4142_v31, 0.0  ;;  %v3951_v30 = vadd.s32 40, %v7417_v26 }
 0x2a7   : > { %v4172_v59 = vsel %vm703_vm0, %v4140_v17, 0.0  ;;  %3263 = vst.msk [vmem:[%s6863_s18] sm:$0xff] %vm2145_vm3, %v3168_v3  ;;  %3225 = vrot.lane.b32.xlu1 %v3068_v13, %s5303_s14  ;;  %5283 = vtanh.f32 %v3063_v44  ;;  %v3065_v58 = vadd.f32 %v6829_v57, %v2905_v27  ;;  %v3983_v13 = vadd.s32 %v6815_v19, %v3950_v36 }
 0x2a8   : > { %v5278_v48 = vpop.eup %5277  ;;  %v4173_v37 = vadd.f32 %v4172_v59, %v4171_v46  ;;  %v3170_v60 = vpop.permute.xlu1 %3169  ;;  %v3953_v10 = vadd.s32 56, %v7417_v26  ;;  %v2715_v17 = vadd.f32 0.5, %v2683_v14  ;;  %v3984_v57 = vadd.s32 %v6815_v19, %v3951_v30 }
 0x2a9   : > { %3264 = vst.msk [vmem:[%s6863_s18 + $0x8] sm:$0xff] %vm2145_vm3, %v3170_v60  ;;  %3367 = vrot.lane.b32.xlu0 %v6874_v55, %s5304_s28  ;;  %v6882_v23 = vmul.f32 %v5278_v48, %v6584_v42  ;;  %v3952_v42 = vadd.s32 48, %v7417_v26  ;;  %v5280_v6 = vpop.eup %5279  ;;  %v2685_v31 = vmul.f32 0.5, %v6629_v22  ;;  %vm4015_vm8 = vcmp.lt.s32.totalorder %v3983_v13, 512 }
 0x2aa   : > { %v4175_v62 = vadd.f32 %v4174_v38, %v4173_v37  ;;  %v6887_v49 = vpop.permute.xlu0 %3003  ;;  %v3986_v27 = vadd.s32 %v6815_v19, %v3953_v10  ;;  %vm4016_vm10 = vcmp.lt.s32.totalorder %v3984_v57, 512 }
 0x2ab   : > { %3381 = vrot.lane.b32.xlu1 %v6882_v23, %s5304_s28  ;;  %v3985_v59 = vadd.s32 %v6815_v19, %v3952_v42 }
 0x2ac   : > { %v3006_v40 = vpop.permute.xlu1 %3005  ;;  %v4177_v0 = vadd.f32 %v4176_v7, %v4175_v62  ;;  %v7427_v7 = vld [vmem:[#allocation44_spill] sm:$0xff]  ;;  %vm4018_vm11 = vcmp.lt.s32.totalorder %v3986_v27, 512 }
 0x2ad   : > { %v3070_v33 = vadd.f32 %v3006_v40, %v2910_v32  ;;  %3215 = vrot.lane.b32.xlu0 %v3063_v44, %s5303_s14  ;;  %v7426_v44 = vld [vmem:[#allocation30_spill] sm:$0xff]  ;;  %v7428_v32 = vld [vmem:[#allocation40_spill] sm:$0xff]  ;;  %vm4017_vm9 = vcmp.lt.s32.totalorder %v3985_v59, 512  ;;  %v2717_v40 = vadd.f32 0.5, %v2685_v31 }
 0x2ae   : > { %v4706_v3 = vpop.f32.mrb[68].mxu1  ;;  %v3172_v9 = vpop.permute.xlu0 %3171  ;;  %v6906_v48 = vmul.f32 %v5280_v6, %v7426_v44  ;;  %v2907_v42 = vmul.f32 %v7428_v32, %v2715_v17 }
 0x2af   : > { %v3842_v46 = vadd.f32 %v4706_v3, %v6826_v41  ;;  %3265 = vst.msk [vmem:[%s6863_s18 + $0x10] sm:$0xff] %vm2145_vm3, %v3172_v9  ;;  %v3833_v1 = vpop.f32.mrb[69].mxu1  ;;  %3229 = vrot.lane.b32.xlu1 %v3070_v33, %s5303_s14  ;;  %5285 = vtanh.f32 %v3070_v33 }
 0x2b0   : > { %v3834_v37 = vadd.f32 %v6826_v41, %v3833_v1  ;;  %v4707_v60 = vpop.f32.mrb[70].mxu1  ;;  %v3174_v38 = vpop.permute.xlu1 %3173  ;;  %5287 = vtanh.f32 %v3065_v58 }
 0x2b1   : > { %v5282_v36 = vpop.eup %5281  ;;  %v3845_v20 = vadd.f32 %v4707_v60, %v6826_v41  ;;  %3266 = vst.msk [vmem:[%s6863_s18 + $0x18] sm:$0xff] %vm2145_vm3, %v3174_v38  ;;  %v3836_v62 = vpop.f32.mrb[71].mxu1  ;;  %3371 = vrot.lane.b32.xlu0 %v6906_v48, %s5304_s28  ;;  %v4049_v12 = vand.u32 2147483647, %v3842_v46  ;;  %v3067_v46 = vadd.f32 %v6845_v16, %v2907_v42  ;;  %v7430_v38 = vld [vmem:[#allocation43_spill] sm:$0xff]  ;;  %v3956_v42 = vadd.s32 80, %v7417_v26 }
 0x2b2   : > { %v4047_v22 = vand.u32 2147483647, %v3834_v37  ;;  %v3837_v14 = vadd.f32 %v6826_v41, %v3836_v62  ;;  %v6918_v54 = vmul.f32 %v5282_v36, %v7427_v7  ;;  %v5284_v6 = vpop.eup %5283  ;;  %v7429_v37 = vld [vmem:[#allocation34_spill] sm:$0xff]  ;;  %v2909_v36 = vmul.f32 %v7430_v38, %v2717_v40 }
 0x2b3   : > { %v6921_v30 = vpop.permute.xlu0 %3327  ;;  %v4050_v10 = vand.u32 2147483647, %v3845_v20  ;;  %v4145_v59 = vsel %vm4017_vm9, %v4049_v12, 0.0  ;;  %v6932_v60 = vmul.f32 %v5284_v6, %v7429_v37  ;;  %5289 = vtanh.f32 %v3067_v46 }
 0x2b4   : > { %v4143_v33 = vsel %vm4015_vm8, %v4047_v22, 0.0  ;;  %v4048_v3 = vand.u32 2147483647, %v3837_v14  ;;  %3385 = vrot.lane.b32.xlu1 %v6918_v54, %s5304_s28  ;;  %v4182_v16 = vsel %vm703_vm0, %v4145_v59, 0.0  ;;  %v3069_v12 = vadd.f32 %v6887_v49, %v2909_v36 }
 0x2b5   : > { %v4178_v9 = vsel %vm703_vm0, %v4143_v33, 0.0  ;;  %3219 = vrot.lane.b32.xlu0 %v3065_v58, %s5303_s14  ;;  %v3330_v17 = vpop.permute.xlu1 %3329  ;;  %v4146_v20 = vsel %vm4018_vm11, %v4050_v10, 0.0  ;;  %v3955_v6 = vadd.s32 72, %v7417_v26 }
 0x2b6   : > { %v4179_v1 = vadd.f32 %v4178_v9, %v4177_v0  ;;  %v4144_v57 = vsel %vm4016_vm10, %v4048_v3, 0.0  ;;  %v3424_v44 = vadd.f32 %v3330_v17, %v6658_v29  ;;  %v3954_v29 = vadd.s32 64, %v7417_v26 }
 0x2b7   : > { %v4180_v13 = vsel %vm703_vm0, %v4144_v57, 0.0  ;;  %v3176_v31 = vpop.permute.xlu0 %3175  ;;  %v4184_v7 = vsel %vm703_vm0, %v4146_v20, 0.0  ;;  %v3957_v3 = vadd.s32 88, %v7417_v26  ;;  %5291 = vtanh.f32 %v3069_v12 }
 0x2b8   : > { %v4181_v27 = vadd.f32 %v4180_v13, %v4179_v1  ;;  %3267 = vst.msk [vmem:[%s6863_s18 + $0x20] sm:$0xff] %vm2145_vm3, %v3176_v31  ;;  %v4641_v58 = vpack.c.bf16 %v3424_v44, %v3424_v44  ;;  %v3987_v10 = vadd.s32 %v6815_v19, %v3954_v29  ;;  %v3989_v1 = vadd.s32 %v6815_v19, %v3956_v42  ;;  %v7431_v13 = vld [vmem:[#allocation38_spill] sm:$0xff] }
 0x2b9   : > { %3375 = vrot.lane.b32.xlu0 %v6932_v60, %s5304_s28  ;;  %v3178_v0 = vpop.permute.xlu1 %3177  ;;  %v5286_v62 = vpop.eup %5285  ;;  %v3990_v36 = vadd.s32 %v6815_v19, %v3957_v3 }
 0x2ba   : > { %v4183_v22 = vadd.f32 %v4182_v16, %v4181_v27  ;;  %3268 = vst.msk [vmem:[%s6863_s18 + $0x28] sm:$0xff] %vm2145_vm3, %v3178_v0  ;;  %v5288_v14 = vpop.eup %5287  ;;  %3553 = vrot.lane.b32.xlu1 %v4641_v58, %s5303_s14  ;;  %v6952_v49 = vmul.f32 %v5286_v62, %v6634_v4  ;;  %v3988_v4 = vadd.s32 %v6815_v19, %v3955_v6  ;;  %vm4019_vm12 = vcmp.lt.s32.totalorder %v3987_v10, 512 }
 0x2bb   : > { %v6946_v32 = vpop.permute.xlu0 %3331  ;;  %v6963_v44 = vmul.f32 %v5288_v14, %v7431_v13  ;;  %vm4021_vm13 = vcmp.lt.s32.totalorder %v3989_v1, 512  ;;  %vm4022_vm15 = vcmp.lt.s32.totalorder %v3990_v36, 512 }
 0x2bc   : > { %v4185_v40 = vadd.f32 %v4184_v7, %v4183_v22  ;;  %vm4020_vm14 = vcmp.lt.s32.totalorder %v3988_v4, 512 }
 0x2bd   : > { %3223 = vrot.lane.b32.xlu0 %v3067_v46, %s5303_s14  ;;  %v3334_v33 = vpop.permute.xlu1 %3333  ;;  %v5290_v62 = vpop.eup %5289 }
 0x2be   : > { %v3426_v9 = vadd.f32 %v3334_v33, %v6673_v11  ;;  %v4710_v17 = vpop.f32.mrb[72].mxu1  ;;  %3389 = vrot.lane.b32.xlu1 %v6952_v49, %s5304_s28 }
 0x2bf   : > { %v3858_v59 = vadd.f32 %v4710_v17, %v6826_v41  ;;  %v3849_v46 = vpop.f32.mrb[73].mxu1  ;;  %v3180_v57 = vpop.permute.xlu0 %3179  ;;  %v7432_v17 = vld [vmem:[#allocation41_spill] sm:$0xff] }
 0x2c0   : > { %v4643_v31 = vpack.c.bf16 %v3426_v9, %v3426_v9  ;;  %v3850_v37 = vadd.f32 %v6826_v41, %v3849_v46  ;;  %3269 = vst.msk [vmem:[%s6863_s18 + $0x30] sm:$0xff] %vm2145_vm3, %v3180_v57  ;;  %v4711_v11 = vpop.f32.mrb[74].mxu1 }
 0x2c1   : > { %v3861_v38 = vadd.f32 %v4711_v11, %v6826_v41  ;;  %v3852_v20 = vpop.f32.mrb[75].mxu1  ;;  %3379 = vrot.lane.b32.xlu0 %v6963_v44, %s5304_s28  ;;  %v3182_v27 = vpop.permute.xlu1 %3181  ;;  %v4053_v16 = vand.u32 2147483647, %v3858_v59  ;;  %v6980_v59 = vmul.f32 %v5290_v62, %v7432_v17  ;;  %v3960_v11 = vadd.s32 112, %v7417_v26 }
 0x2c2   : > { %v4051_v58 = vand.u32 2147483647, %v3850_v37  ;;  %v3853_v0 = vadd.f32 %v6826_v41, %v3852_v20  ;;  %3270 = vst.msk [vmem:[%s6863_s18 + $0x38] sm:$0xff] %vm2145_vm3, %v3182_v27  ;;  %3557 = vrot.lane.b32.xlu1 %v4643_v31, %s5303_s14  ;;  %v5292_v1 = vpop.eup %5291  ;;  %v3959_v27 = vadd.s32 104, %v7417_v26  ;;  %v3425_v62 = vadd.f32 %v6946_v32, %v6667_v63 }
 0x2c3   : > { %v3336_v29 = vpop.permute.xlu0 %3335  ;;  %v4054_v14 = vand.u32 2147483647, %v3861_v38  ;;  %v4149_v6 = vsel %vm4021_vm13, %v4053_v16, 0.0  ;;  %v3423_v38 = vadd.f32 %v6921_v30, %v6651_v53  ;;  %v6994_v20 = vmul.f32 %v5292_v1, %v6627_v47 }
 0x2c4   : > { %v4147_v22 = vsel %vm4019_vm12, %v4051_v58, 0.0  ;;  %v4052_v7 = vand.u32 2147483647, %v3853_v0  ;;  %v4190_v31 = vsel %vm703_vm0, %v4149_v6, 0.0  ;;  %v3961_v53 = vadd.s32 120, %v7417_v26 }
 0x2c5   : > { %v4186_v42 = vsel %vm703_vm0, %v4147_v22, 0.0  ;;  %3227 = vrot.lane.b32.xlu0 %v3069_v12, %s5303_s14  ;;  %v4150_v46 = vsel %vm4022_vm15, %v4054_v14, 0.0  ;;  %v3958_v12 = vadd.s32 96, %v7417_v26  ;;  %v3993_v0 = vadd.s32 %v6815_v19, %v3960_v11 }
 0x2c6   : > { %v4187_v33 = vadd.f32 %v4186_v42, %v4185_v40  ;;  %v4148_v10 = vsel %vm4020_vm14, %v4052_v7, 0.0  ;;  %v4192_v36 = vsel %vm703_vm0, %v4150_v46, 0.0  ;;  %v4640_v47 = vpack.c.bf16 %v3423_v38, %v3423_v38 }
 0x2c7   : > { %v4188_v3 = vsel %vm703_vm0, %v4148_v10, 0.0  ;;  %v3338_v9 = vpop.permute.xlu0 %3337  ;;  %v3991_v58 = vadd.s32 %v6815_v19, %v3958_v12  ;;  %v3992_v42 = vadd.s32 %v6815_v19, %v3959_v27  ;;  %v4642_v46 = vpack.c.bf16 %v3425_v62, %v3425_v62 }
 0x2c8   : > { %v4189_v57 = vadd.f32 %v4188_v3, %v4187_v33  ;;  %v3428_v4 = vadd.f32 %v3338_v9, %v6690_v8  ;;  %v3186_v13 = vpop.permute.xlu1 %3185  ;;  %v3994_v9 = vadd.s32 %v6815_v19, %v3961_v53  ;;  %vm4025_vm2 = vcmp.lt.s32.totalorder %v3993_v0, 512 }
 0x2c9   : > { %3272 = vst.msk [vmem:[%s6863_s18 + $0x48] sm:$0xff] %vm2145_vm3, %v3186_v13  ;;  %3383 = vrot.lane.b32.xlu0 %v6980_v59, %s5304_s28  ;;  %vm4023_vm1 = vcmp.lt.s32.totalorder %v3991_v58, 512  ;;  %vm4024_vm4 = vcmp.lt.s32.totalorder %v3992_v42, 512 }
 0x2ca   : > { %v4191_v40 = vadd.f32 %v4190_v31, %v4189_v57  ;;  %v4645_v37 = vpack.c.bf16 %v3428_v4, %v3428_v4  ;;  %v3427_v57 = vadd.f32 %v3336_v29, %v6683_v2  ;;  %vm4026_vm5 = vcmp.lt.s32.totalorder %v3994_v9, 512 }
 0x2cb   : > { %v3184_v8 = vpop.permute.xlu0 %3183 }
 0x2cc   : > { %3271 = vst.msk [vmem:[%s6863_s18 + $0x40] sm:$0xff] %vm2145_vm3, %v3184_v8  ;;  %3561 = vrot.lane.b32.xlu1 %v4645_v37, %s5303_s14  ;;  %v4193_v16 = vadd.f32 %v4192_v36, %v4191_v40  ;;  %v4644_v2 = vpack.c.bf16 %v3427_v57, %v3427_v57 }
 0x2cd   : > { %3387 = vrot.lane.b32.xlu0 %v6994_v20, %s5304_s28 }
 0x2ce   : > { %v4714_v30 = vpop.f32.mrb[76].mxu1 }
 0x2cf   : > { %v3874_v22 = vadd.f32 %v4714_v30, %v6826_v41  ;;  %v3865_v14 = vpop.f32.mrb[77].mxu1  ;;  %v3340_v7 = vpop.permute.xlu0 %3339 }
 0x2d0   : > { %v3866_v6 = vadd.f32 %v6826_v41, %v3865_v14  ;;  %v4715_v33 = vpop.f32.mrb[78].mxu1  ;;  %v3190_v10 = vpop.permute.xlu1 %3189  ;;  %v3429_v29 = vadd.f32 %v3340_v7, %v6701_v56  ;;  %v3964_v14 = vadd.s32 144, %v7417_v26  ;;  %v3963_v7 = vadd.s32 136, %v7417_v26 }
 0x2d1   : > { %v3877_v3 = vadd.f32 %v4715_v33, %v6826_v41  ;;  %3274 = vst.msk [vmem:[%s6863_s18 + $0x58] sm:$0xff] %vm2145_vm3, %v3190_v10  ;;  %v3868_v17 = vpop.f32.mrb[79].mxu1  ;;  %3551 = vrot.lane.b32.xlu0 %v4640_v47, %s5303_s14  ;;  %v4057_v63 = vand.u32 2147483647, %v3874_v22  ;;  %v3965_v10 = vadd.s32 152, %v7417_v26 }
 0x2d2   : > { %v4055_v32 = vand.u32 2147483647, %v3866_v6  ;;  %v3869_v1 = vadd.f32 %v6826_v41, %v3868_v17  ;;  %v4646_v56 = vpack.c.bf16 %v3429_v29, %v3429_v29 }
 0x2d3   : > { %v3342_v4 = vpop.permute.xlu0 %3341  ;;  %v4058_v31 = vand.u32 2147483647, %v3877_v3  ;;  %v4153_v11 = vsel %vm4025_vm2, %v4057_v63, 0.0  ;;  %v3997_v63 = vadd.s32 %v6815_v19, %v3964_v14 }
 0x2d4   : > { %v4151_v13 = vsel %vm4023_vm1, %v4055_v32, 0.0  ;;  %v4056_v12 = vand.u32 2147483647, %v3869_v1  ;;  %v3430_v40 = vadd.f32 %v3342_v4, %v6707_v45  ;;  %v4198_v0 = vsel %vm703_vm0, %v4153_v11, 0.0 }
 0x2d5   : > { %v4194_v37 = vsel %vm703_vm0, %v4151_v13, 0.0  ;;  %3555 = vrot.lane.b32.xlu0 %v4642_v46, %s5303_s14  ;;  %v4154_v53 = vsel %vm4026_vm5, %v4058_v31, 0.0  ;;  %v3996_v46 = vadd.s32 %v6815_v19, %v3963_v7  ;;  %v3998_v31 = vadd.s32 %v6815_v19, %v3965_v10 }
 0x2d6   : > { %v4195_v38 = vadd.f32 %v4194_v37, %v4193_v16  ;;  %v4152_v36 = vsel %vm4024_vm4, %v4056_v12, 0.0  ;;  %v4647_v8 = vpack.c.bf16 %v3430_v40, %v3430_v40  ;;  %v3962_v16 = vadd.s32 128, %v7417_v26 }
 0x2d7   : > { %v4196_v27 = vsel %vm703_vm0, %v4152_v36, 0.0  ;;  %v3188_v58 = vpop.permute.xlu0 %3187  ;;  %v4200_v62 = vsel %vm703_vm0, %v4154_v53, 0.0  ;;  %vm4029_vm7 = vcmp.lt.s32.totalorder %v3997_v63, 512  ;;  %vm4028_vm8 = vcmp.lt.s32.totalorder %v3996_v46, 512 }
 0x2d8   : > { %v4197_v30 = vadd.f32 %v4196_v27, %v4195_v38  ;;  %3273 = vst.msk [vmem:[%s6863_s18 + $0x50] sm:$0xff] %vm2145_vm3, %v3188_v58  ;;  %v3194_v45 = vpop.permute.xlu1 %3193  ;;  %3565 = vrot.lane.b32.xlu1 %v4647_v8, %s5303_s14  ;;  %v3995_v33 = vadd.s32 %v6815_v19, %v3962_v16  ;;  %vm4030_vm9 = vcmp.lt.s32.totalorder %v3998_v31, 512  ;;  %v3967_v10 = vadd.s32 168, %v7417_v26 }
 0x2d9   : > { %3276 = vst.msk [vmem:[%s6863_s18 + $0x68] sm:$0xff] %vm2145_vm3, %v3194_v45  ;;  %3559 = vrot.lane.b32.xlu0 %v4644_v2, %s5303_s14 }
 0x2da   : > { %v4199_v47 = vadd.f32 %v4198_v0, %v4197_v30  ;;  %vm4027_vm6 = vcmp.lt.s32.totalorder %v3995_v33, 512  ;;  %v3968_v33 = vadd.s32 176, %v7417_v26 }
 0x2db   : > { %v3344_v22 = vpop.permute.xlu0 %3343 }
 0x2dc   : > { %v3431_v42 = vadd.f32 %v3344_v22, %v6719_v34  ;;  %v4201_v6 = vadd.f32 %v4200_v62, %v4199_v47  ;;  %v3966_v22 = vadd.s32 160, %v7417_v26  ;;  %v4001_v46 = vadd.s32 %v6815_v19, %v3968_v33 }
 0x2dd   : > { %3563 = vrot.lane.b32.xlu0 %v4646_v56, %s5303_s14 }
 0x2de   : > { %v4648_v3 = vpack.c.bf16 %v3431_v42, %v3431_v42  ;;  %v4718_v9 = vpop.f32.mrb[80].mxu1  ;;  %vm4033_vm11 = vcmp.lt.s32.totalorder %v4001_v46, 512 }
 0x2df   : > { %v3890_v17 = vadd.f32 %v4718_v9, %v6826_v41  ;;  %v3881_v32 = vpop.f32.mrb[81].mxu1  ;;  %v7039_v1 = vpop.permute.xlu0 %3345  ;;  %v3999_v9 = vadd.s32 %v6815_v19, %v3966_v22 }
 0x2e0   : > { %v3882_v34 = vadd.f32 %v6826_v41, %v3881_v32  ;;  %v4719_v57 = vpop.f32.mrb[82].mxu1  ;;  %v3198_v4 = vpop.permute.xlu1 %3197 }
 0x2e1   : > { %v3893_v13 = vadd.f32 %v4719_v57, %v6826_v41  ;;  %3278 = vst.msk [vmem:[%s6863_s18 + $0x78] sm:$0xff] %vm2145_vm3, %v3198_v4  ;;  %v3884_v12 = vpop.f32.mrb[83].mxu1  ;;  %3567 = vrot.lane.b32.xlu0 %v4648_v3, %s5303_s14  ;;  %v4061_v40 = vand.u32 2147483647, %v3890_v17  ;;  %v3969_v17 = vadd.s32 184, %v7417_v26  ;;  %v4000_v4 = vadd.s32 %v6815_v19, %v3967_v10 }
 0x2e2   : > { %v4059_v37 = vand.u32 2147483647, %v3882_v34  ;;  %v3885_v11 = vadd.f32 %v6826_v41, %v3884_v12  ;;  %vm4031_vm10 = vcmp.lt.s32.totalorder %v3999_v9, 512  ;;  %v3972_v9 = vadd.s32 208, %v7417_v26 }
 0x2e3   : > { %v3192_v38 = vpop.permute.xlu0 %3191  ;;  %v4062_v8 = vand.u32 2147483647, %v3893_v13  ;;  %v4157_v27 = vsel %vm4029_vm7, %v4061_v40, 0.0  ;;  %vm4032_vm12 = vcmp.lt.s32.totalorder %v4000_v4, 512 }
 0x2e4   : > { %v4155_v36 = vsel %vm4027_vm6, %v4059_v37, 0.0  ;;  %v4060_v2 = vand.u32 2147483647, %v3885_v11  ;;  %3275 = vst.msk [vmem:[%s6863_s18 + $0x60] sm:$0xff] %vm2145_vm3, %v3192_v38  ;;  %v4206_v62 = vsel %vm703_vm0, %v4157_v27, 0.0  ;;  %v4002_v37 = vadd.s32 %v6815_v19, %v3969_v17 }
 0x2e5   : > { %v4202_v29 = vsel %vm703_vm0, %v4155_v36, 0.0  ;;  %v4158_v0 = vsel %vm4030_vm9, %v4062_v8, 0.0  ;;  %v3971_v17 = vadd.s32 200, %v7417_v26 }
 0x2e6   : > { %v4203_v58 = vadd.f32 %v4202_v29, %v4201_v6  ;;  %v4156_v53 = vsel %vm4028_vm8, %v4060_v2, 0.0  ;;  %v4208_v42 = vsel %vm703_vm0, %v4158_v0, 0.0  ;;  %vm4034_vm13 = vcmp.lt.s32.totalorder %v4002_v37, 512 }
 0x2e7   : > { %v4204_v30 = vsel %vm703_vm0, %v4156_v53, 0.0  ;;  %v3348_v45 = vpop.permute.xlu0 %3347 }
 0x2e8   : > { %v4205_v16 = vadd.f32 %v4204_v30, %v4203_v58  ;;  %v3433_v47 = vadd.f32 %v3348_v45, %v6737_v28  ;;  %v3202_v56 = vpop.permute.xlu1 %3201 }
 0x2e9   : > { %3280 = vst.msk [vmem:[%s6863_s18 + $0x88] sm:$0xff] %vm2145_vm3, %v3202_v56 }
 0x2ea   : > { %v4207_v14 = vadd.f32 %v4206_v62, %v4205_v16  ;;  %v4650_v7 = vpack.c.bf16 %v3433_v47, %v3433_v47 }
 0x2eb   : > { %v7059_v6 = vpop.permute.xlu0 %3349 }
 0x2ec   : > { %3571 = vrot.lane.b32.xlu0 %v4650_v7, %s5303_s14  ;;  %v3356_v28 = vpop.permute.xlu1 %3355  ;;  %v4209_v3 = vadd.f32 %v4208_v42, %v4207_v14 }
 0x2ed   : > { %v3437_v30 = vadd.f32 %v3356_v28, %v6747_v51  ;;  %v3970_v51 = vadd.s32 192, %v7417_v26 }
 0x2ee   : > { %v4722_v63 = vpop.f32.mrb[84].mxu1 }
 0x2ef   : > { %v3906_v32 = vadd.f32 %v4722_v63, %v6826_v41  ;;  %v3897_v34 = vpop.f32.mrb[85].mxu1  ;;  %v3196_v57 = vpop.permute.xlu0 %3195  ;;  %v4654_v33 = vpack.c.bf16 %v3437_v30, %v3437_v30  ;;  %v4003_v46 = vadd.s32 %v6815_v19, %v3970_v51 }
 0x2f0   : > { %v3898_v13 = vadd.f32 %v6826_v41, %v3897_v34  ;;  %3277 = vst.msk [vmem:[%s6863_s18 + $0x70] sm:$0xff] %vm2145_vm3, %v3196_v57  ;;  %v4723_v31 = vpop.f32.mrb[86].mxu1  ;;  %v3206_v12 = vpop.permute.xlu1 %3205  ;;  %v3973_v34 = vadd.s32 216, %v7417_v26 }
 0x2f1   : > { %v3909_v40 = vadd.f32 %v4723_v31, %v6826_v41  ;;  %3282 = vst.msk [vmem:[%s6863_s18 + $0x98] sm:$0xff] %vm2145_vm3, %v3206_v12  ;;  %v3900_v11 = vpop.f32.mrb[87].mxu1  ;;  %v4065_v38 = vand.u32 2147483647, %v3906_v32  ;;  %vm4035_vm14 = vcmp.lt.s32.totalorder %v4003_v46, 512 }
 0x2f2   : > { %v4063_v36 = vand.u32 2147483647, %v3898_v13  ;;  %v3901_v8 = vadd.f32 %v6826_v41, %v3900_v11  ;;  %v4005_v13 = vadd.s32 %v6815_v19, %v3972_v9 }
 0x2f3   : > { %v3352_v2 = vpop.permute.xlu0 %3351  ;;  %v4066_v27 = vand.u32 2147483647, %v3909_v40  ;;  %v4161_v0 = vsel %vm4033_vm11, %v4065_v38, 0.0  ;;  %v4004_v40 = vadd.s32 %v6815_v19, %v3971_v17 }
 0x2f4   : > { %v4159_v29 = vsel %vm4031_vm10, %v4063_v36, 0.0  ;;  %v4064_v58 = vand.u32 2147483647, %v3901_v8  ;;  %v3435_v53 = vadd.f32 %v3352_v2, %v6759_v52  ;;  %v4214_v52 = vsel %vm703_vm0, %v4161_v0, 0.0 }
 0x2f5   : > { %v4210_v45 = vsel %vm703_vm0, %v4159_v29, 0.0  ;;  %v4162_v14 = vsel %vm4034_vm13, %v4066_v27, 0.0  ;;  %v4006_v36 = vadd.s32 %v6815_v19, %v3973_v34  ;;  %vm4037_vm15 = vcmp.lt.s32.totalorder %v4005_v13, 512 }
 0x2f6   : > { %v4211_v16 = vadd.f32 %v4210_v45, %v4209_v3  ;;  %v4160_v47 = vsel %vm4032_vm12, %v4064_v58, 0.0  ;;  %v4652_v56 = vpack.c.bf16 %v3435_v53, %v3435_v53  ;;  %v4216_v28 = vsel %vm703_vm0, %v4162_v14, 0.0 }
 0x2f7   : > { %v4212_v62 = vsel %vm703_vm0, %v4160_v47, 0.0  ;;  %v7081_v22 = vpop.permute.xlu0 %3353  ;;  %vm4036_vm1 = vcmp.lt.s32.totalorder %v4004_v40, 512  ;;  %vm4038_vm2 = vcmp.lt.s32.totalorder %v4006_v36, 512  ;;  %v3976_v34 = vadd.s32 240, %v7417_v26 }
 0x2f8   : > { %v4213_v7 = vadd.f32 %v4212_v62, %v4211_v16  ;;  %3575 = vrot.lane.b32.xlu0 %v4652_v56, %s5303_s14  ;;  %v3210_v42 = vpop.permute.xlu1 %3209 }
 0x2f9   : > { %3284 = vst.msk [vmem:[%s6863_s18 + $0xa8] sm:$0xff] %vm2145_vm3, %v3210_v42 }
 0x2fa   : > { %v4215_v10 = vadd.f32 %v4214_v52, %v4213_v7 }
 0x2fb   : > { %v3200_v3 = vpop.permute.xlu0 %3199 }
 0x2fc   : > { %3279 = vst.msk [vmem:[%s6863_s18 + $0x80] sm:$0xff] %vm2145_vm3, %v3200_v3  ;;  %3579 = vrot.lane.b32.xlu0 %v4654_v33, %s5303_s14  ;;  %v4217_v63 = vadd.f32 %v4216_v28, %v4215_v10  ;;  %v3974_v3 = vadd.s32 224, %v7417_v26 }
 0x2fd   : > { %v7094_v32 = vpop.permute.xlu1 %3365 }
 0x2fe   : > { %v4726_v57 = vpop.f32.mrb[88].mxu1  ;;  %v4007_v13 = vadd.s32 %v6815_v19, %v3974_v3 }
 0x2ff   : > { %v3922_v4 = vadd.f32 %v4726_v57, %v6826_v41  ;;  %v3913_v31 = vpop.f32.mrb[89].mxu1  ;;  %v7100_v12 = vpop.permute.xlu0 %3357  ;;  %v3975_v57 = vadd.s32 232, %v7417_v26 }
 0x300   : > { %v3914_v37 = vadd.f32 %v6826_v41, %v3913_v31  ;;  %v4727_v11 = vpop.f32.mrb[90].mxu1  ;;  %v3977_v31 = vadd.s32 248, %v7417_v26  ;;  %vm4039_vm4 = vcmp.lt.s32.totalorder %v4007_v13, 512 }
 0x301   : > { %v3925_v38 = vadd.f32 %v4727_v11, %v6826_v41  ;;  %v3916_v8 = vpop.f32.mrb[91].mxu1  ;;  %v3214_v2 = vpop.permute.xlu1 %3213  ;;  %v4069_v29 = vand.u32 2147483647, %v3922_v4  ;;  %v4009_v11 = vadd.s32 %v6815_v19, %v3976_v34 }
 0x302   : > { %v4067_v27 = vand.u32 2147483647, %v3914_v37  ;;  %v3917_v58 = vadd.f32 %v6826_v41, %v3916_v8  ;;  %3286 = vst.msk [vmem:[%s6863_s18 + $0xb8] sm:$0xff] %vm2145_vm3, %v3214_v2  ;;  %v4008_v8 = vadd.s32 %v6815_v19, %v3975_v57  ;;  %v4010_v26 = vadd.s32 %v6815_v19, %v3977_v31 }
 0x303   : > { %v3204_v53 = vpop.permute.xlu0 %3203  ;;  %v4070_v45 = vand.u32 2147483647, %v3925_v38  ;;  %v4165_v56 = vsel %vm4037_vm15, %v4069_v29, 0.0  ;;  %vm4041_vm5 = vcmp.lt.s32.totalorder %v4009_v11, 512 }
 0x304   : > { %v4163_v30 = vsel %vm4035_vm14, %v4067_v27, 0.0  ;;  %v4068_v0 = vand.u32 2147483647, %v3917_v58  ;;  %3281 = vst.msk [vmem:[%s6863_s18 + $0x90] sm:$0xff] %vm2145_vm3, %v3204_v53  ;;  %v4222_v10 = vsel %vm703_vm0, %v4165_v56, 0.0  ;;  %vm4040_vm6 = vcmp.lt.s32.totalorder %v4008_v8, 512 }
 0x305   : > { %v4218_v16 = vsel %vm703_vm0, %v4163_v30, 0.0  ;;  %v7112_v47 = vpop.permute.xlu1 %3369  ;;  %v4166_v52 = vsel %vm4038_vm2, %v4070_v45, 0.0  ;;  %vm4042_vm7 = vcmp.lt.s32.totalorder %v4010_v26, 512 }
 0x306   : > { %v4219_v62 = vadd.f32 %v4218_v16, %v4217_v63  ;;  %v4164_v14 = vsel %vm4036_vm1, %v4068_v0, 0.0  ;;  %v4224_v63 = vsel %vm703_vm0, %v4166_v52, 0.0 }
 0x307   : > { %v4220_v7 = vsel %vm703_vm0, %v4164_v14, 0.0  ;;  %v3360_v42 = vpop.permute.xlu0 %3359 }
 0x308   : > { %v4221_v51 = vadd.f32 %v4220_v7, %v4219_v62  ;;  %v3439_v33 = vadd.f32 %v3360_v42, %v6797_v61 }
 0x309   : > { %v3218_v28 = vpop.permute.xlu1 %3217 }
 0x30a   : > { %v4223_v9 = vadd.f32 %v4222_v10, %v4221_v51  ;;  %v4656_v17 = vpack.c.bf16 %v3439_v33, %v3439_v33  ;;  %3288 = vst.msk [vmem:[%s6863_s18 + $0xc8] sm:$0xff] %vm2145_vm3, %v3218_v28 }
 0x30b   : > { %v7121_v46 = vpop.permute.xlu0 %3361 }
 0x30c   : > { %3583 = vrot.lane.b32.xlu0 %v4656_v17, %s5303_s14  ;;  %v4225_v61 = vadd.f32 %v4224_v63, %v4223_v9 }
 0x30d   : > { %v7126_v4 = vpop.permute.xlu1 %3373 }
 0x30e   : > { %v4730_v40 = vpop.f32.mrb[92].mxu1 }
 0x30f   : > { %v3938_v37 = vadd.f32 %v4730_v40, %v6826_v41  ;;  %v3208_v38 = vpop.permute.xlu0 %3207  ;;  %v3929_v36 = vpop.f32.mrb[93].mxu1 }
 0x310   : > { %3283 = vst.msk [vmem:[%s6863_s18 + $0xa0] sm:$0xff] %vm2145_vm3, %v3208_v38  ;;  %v3930_v2 = vadd.f32 %v6826_v41, %v3929_v36  ;;  %v4731_v29 = vpop.f32.mrb[94].mxu1 }
 0x311   : > { %v3941_v27 = vadd.f32 %v4731_v29, %v6826_v41  ;;  %v3222_v58 = vpop.permute.xlu1 %3221  ;;  %v3932_v53 = vpop.f32.mrb[95].mxu1  ;;  %v4073_v30 = vand.u32 2147483647, %v3938_v37 }
 0x312   : > { %v4071_v45 = vand.u32 2147483647, %v3930_v2  ;;  %3290 = vst.msk [vmem:[%s6863_s18 + $0xd8] sm:$0xff] %vm2145_vm3, %v3222_v58  ;;  %v3933_v0 = vadd.f32 %v6826_v41, %v3932_v53  ;;  %v3434_v58 = vadd.f32 %v7059_v6, %v6744_v35 }
 0x313   : > { %v3364_v16 = vpop.permute.xlu0 %3363  ;;  %v4074_v62 = vand.u32 2147483647, %v3941_v27  ;;  %v4169_v52 = vsel %vm4041_vm5, %v4073_v30, 0.0 }
 0x314   : > { %v4167_v56 = vsel %vm4039_vm4, %v4071_v45, 0.0  ;;  %v4072_v14 = vand.u32 2147483647, %v3933_v0  ;;  %v3441_v7 = vadd.f32 %v3364_v16, %v6839_v15  ;;  %v4230_v15 = vsel %vm703_vm0, %v4169_v52, 0.0 }
 0x315   : > { %v4226_v19 = vsel %vm703_vm0, %v4167_v56, 0.0  ;;  %v7143_v42 = vpop.permute.xlu1 %3377  ;;  %v4170_v3 = vsel %vm4042_vm7, %v4074_v62, 0.0  ;;  %v3438_v16 = vadd.f32 %v7100_v12, %v6781_v24  ;;  %v3442_v12 = vadd.f32 %v7094_v32, %v6774_v21 }
 0x316   : > { %v4227_v51 = vadd.f32 %v4226_v19, %v4225_v61  ;;  %v4168_v33 = vsel %vm4040_vm6, %v4072_v14, 0.0  ;;  %v4658_v10 = vpack.c.bf16 %v3441_v7, %v3441_v7  ;;  %v4232_v34 = vsel %vm703_vm0, %v4170_v3, 0.0 }
 0x317   : > { %v4228_v41 = vsel %vm703_vm0, %v4168_v33, 0.0  ;;  %v3212_v28 = vpop.permute.xlu0 %3211  ;;  %vm3647_vm0 = vcmask 257024  }
 0x318   : > { %v4229_v9 = vadd.f32 %v4228_v41, %v4227_v51  ;;  %3285 = vst.msk [vmem:[%s6863_s18 + $0xb0] sm:$0xff] %vm2145_vm3, %v3212_v28  ;;  %3587 = vrot.lane.b32.xlu0 %v4658_v10, %s5303_s14 }
 0x319   : > { %v3226_v17 = vpop.permute.xlu1 %3225 }
 0x31a   : > { %3292 = vst.msk [vmem:[%s6863_s18 + $0xe8] sm:$0xff] %vm2145_vm3, %v3226_v17  ;;  %v4231_v63 = vadd.f32 %v4230_v15, %v4229_v9 }
 0x31b   : > { %v3368_v57 = vpop.permute.xlu0 %3367 }
 0x31c   : > { %v3443_v61 = vadd.f32 %v3368_v57, %v6874_v55  ;;  %v4233_v13 = vadd.f32 %v4232_v34, %v4231_v63  ;;  %v3432_v55 = vadd.f32 %v7039_v1, %v6727_v25  ;;  %v4651_v1 = vpack.c.bf16 %v3434_v58, %v3434_v58 }
 0x31d   : > { %v7154_v31 = vpop.permute.xlu1 %3381 }
 0x31e   : > { %v4660_v40 = vpack.c.bf16 %v3443_v61, %v3443_v61  ;;  %4234 = vadd.xlane.f32.xlu1 %v4233_v13  ;;  %v4649_v26 = vpack.c.bf16 %v3432_v55, %v3432_v55 }
 0x31f   : > { %v3216_v37 = vpop.permute.xlu0 %3215 }
 0x320   : > { %3287 = vst.msk [vmem:[%s6863_s18 + $0xc0] sm:$0xff] %vm2145_vm3, %v3216_v37  ;;  %3591 = vrot.lane.b32.xlu0 %v4660_v40, %s5303_s14 }
 0x321   : > { %v3230_v11 = vpop.permute.xlu1 %3229 }
 0x322   : > { %3294 = vst.msk [vmem:[%s6863_s18 + $0xf8] sm:$0xff] %vm2145_vm3, %v3230_v11 }
 0x323   : > { %v3372_v38 = vpop.permute.xlu0 %3371 }
 0x324   : > { %v3445_v36 = vadd.f32 %v3372_v38, %v6906_v48 }
 0x326   : > { %v4662_v8 = vpack.c.bf16 %v3445_v36, %v3445_v36  ;;  %v7167_v29 = vpop.permute.xlu1 %3385 }
 0x327   : > { %v3220_v2 = vpop.permute.xlu0 %3219 }
 0x328   : > { %3289 = vst.msk [vmem:[%s6863_s18 + $0xd0] sm:$0xff] %vm2145_vm3, %v3220_v2  ;;  %3595 = vrot.lane.b32.xlu0 %v4662_v8, %s5303_s14 }
 0x32b   : > { %v3376_v27 = vpop.permute.xlu0 %3375 }
 0x32c   : > { %v3447_v48 = vadd.f32 %v3376_v27, %v6932_v60  ;;  %v3554_v53 = vpop.permute.xlu1 %3553  ;;  %v3436_v60 = vadd.f32 %v7081_v22, %v6766_v43  ;;  %v4655_v43 = vpack.c.bf16 %v3438_v16, %v3438_v16 }
 0x32d   : > { %3649 = vst.msk [vmem:[%s7174_s24 + $0x4] sm:$0xf] %vm3647_vm0, %v3554_v53 }
 0x32e   : > { %v4664_v30 = vpack.c.bf16 %v3447_v48, %v3447_v48  ;;  %v4653_v6 = vpack.c.bf16 %v3436_v60, %v3436_v60 }
 0x32f   : > { %v3224_v25 = vpop.permute.xlu0 %3223  ;;  %3569 = vrot.lane.b32.xlu1 %v4649_v26, %s5303_s14 }
 0x330   : > { %3291 = vst.msk [vmem:[%s6863_s18 + $0xe0] sm:$0xff] %vm2145_vm3, %v3224_v25  ;;  %3599 = vrot.lane.b32.xlu0 %v4664_v30, %s5303_s14  ;;  %v3390_v45 = vpop.permute.xlu1 %3389 }
 0x333   : > { %v3380_v0 = vpop.permute.xlu0 %3379  ;;  %3573 = vrot.lane.b32.xlu1 %v4651_v1, %s5303_s14 }
 0x334   : > { %v3449_v35 = vadd.f32 %v3380_v0, %v6963_v44  ;;  %v3558_v56 = vpop.permute.xlu1 %3557  ;;  %v3440_v44 = vadd.f32 %v7121_v46, %v6805_v5  ;;  %v4659_v46 = vpack.c.bf16 %v3442_v12, %v3442_v12 }
 0x335   : > { %3651 = vst.msk [vmem:[%s7174_s24 + $0xc] sm:$0xf] %vm3647_vm0, %v3558_v56 }
 0x336   : > { %v4666_v62 = vpack.c.bf16 %v3449_v35, %v3449_v35  ;;  %v4657_v7 = vpack.c.bf16 %v3440_v44, %v3440_v44 }
 0x337   : > { %v3228_v14 = vpop.permute.xlu0 %3227  ;;  %3577 = vrot.lane.b32.xlu1 %v4653_v6, %s5303_s14 }
 0x338   : > { %3293 = vst.msk [vmem:[%s6863_s18 + $0xf0] sm:$0xff] %vm2145_vm3, %v3228_v14  ;;  %3603 = vrot.lane.b32.xlu0 %v4666_v62, %s5303_s14 }
 0x33b   : > { %v3384_v22 = vpop.permute.xlu0 %3383  ;;  %3581 = vrot.lane.b32.xlu1 %v4655_v43, %s5303_s14 }
 0x33c   : > { %v3451_v24 = vadd.f32 %v3384_v22, %v6980_v59  ;;  %v3444_v59 = vadd.f32 %v7112_v47, %v6790_v18  ;;  %v3448_v47 = vadd.f32 %v7143_v42, %v6850_v50  ;;  %v3452_v42 = vadd.f32 %v7167_v29, %v6918_v54 }
 0x33e   : > { %v4668_v19 = vpack.c.bf16 %v3451_v24, %v3451_v24  ;;  %v3562_v52 = vpop.permute.xlu1 %3561  ;;  %v4661_v32 = vpack.c.bf16 %v3444_v59, %v3444_v59  ;;  %v4665_v3 = vpack.c.bf16 %v3448_v47, %v3448_v47  ;;  %v4669_v15 = vpack.c.bf16 %v3452_v42, %v3452_v42 }
 0x33f   : > { %3653 = vst.msk [vmem:[%s7174_s24 + $0x14] sm:$0xf] %vm3647_vm0, %v3562_v52  ;;  %v3388_v51 = vpop.permute.xlu0 %3387  ;;  %3585 = vrot.lane.b32.xlu1 %v4657_v7, %s5303_s14 }
 0x340   : > { %v3453_v5 = vadd.f32 %v3388_v51, %v6994_v20  ;;  %3607 = vrot.lane.b32.xlu0 %v4668_v19, %s5303_s14  ;;  %v3446_v20 = vadd.f32 %v7126_v4, %v6811_v39  ;;  %v3450_v39 = vadd.f32 %v7154_v31, %v6882_v23  ;;  %v3454_v23 = vadd.f32 %v3390_v45, %v6952_v49 }
 0x342   : > { %v4670_v33 = vpack.c.bf16 %v3453_v5, %v3453_v5  ;;  %v4663_v18 = vpack.c.bf16 %v3446_v20, %v3446_v20  ;;  %v4667_v50 = vpack.c.bf16 %v3450_v39, %v3450_v39  ;;  %v4671_v17 = vpack.c.bf16 %v3454_v23, %v3454_v23 }
 0x343   : > { %v3552_v21 = vpop.permute.xlu0 %3551  ;;  %3589 = vrot.lane.b32.xlu1 %v4659_v46, %s5303_s14 }
 0x344   : > { %3648 = vst.msk [vmem:[%s7174_s24] sm:$0xf] %vm3647_vm0, %v3552_v21  ;;  %3611 = vrot.lane.b32.xlu0 %v4670_v33, %s5303_s14 }
 0x347   : > { %v3556_v10 = vpop.permute.xlu0 %3555  ;;  %3593 = vrot.lane.b32.xlu1 %v4661_v32, %s5303_s14 }
 0x348   : > { %3650 = vst.msk [vmem:[%s7174_s24 + $0x8] sm:$0xf] %vm3647_vm0, %v3556_v10 }
 0x34a   : > { %v3566_v41 = vpop.permute.xlu1 %3565 }
 0x34b   : > { %3655 = vst.msk [vmem:[%s7174_s24 + $0x1c] sm:$0xf] %vm3647_vm0, %v3566_v41  ;;  %v3560_v28 = vpop.permute.xlu0 %3559  ;;  %3597 = vrot.lane.b32.xlu1 %v4663_v18, %s5303_s14 }
 0x34c   : > { %3652 = vst.msk [vmem:[%s7174_s24 + $0x10] sm:$0xf] %vm3647_vm0, %v3560_v28 }
 0x34f   : > { %v3564_v4 = vpop.permute.xlu0 %3563  ;;  %3601 = vrot.lane.b32.xlu1 %v4665_v3, %s5303_s14 }
 0x350   : > { %3654 = vst.msk [vmem:[%s7174_s24 + $0x18] sm:$0xf] %vm3647_vm0, %v3564_v4 }
 0x353   : > { %v3568_v9 = vpop.permute.xlu0 %3567  ;;  %3605 = vrot.lane.b32.xlu1 %v4667_v50, %s5303_s14 }
 0x354   : > { %3656 = vst.msk [vmem:[%s7174_s24 + $0x20] sm:$0xf] %vm3647_vm0, %v3568_v9 }
 0x357   : > { %3609 = vrot.lane.b32.xlu1 %v4669_v15, %s5303_s14 }
 0x35b   : > { %3613 = vrot.lane.b32.xlu1 %v4671_v17, %s5303_s14 }
 0x35e   : > { %v3572_v63 = vpop.permute.xlu0 %3571 }
 0x35f   : > { %3658 = vst.msk [vmem:[%s7174_s24 + $0x28] sm:$0xf] %vm3647_vm0, %v3572_v63 }
 0x36a   : > { %v3576_v54 = vpop.permute.xlu0 %3575 }
 0x36b   : > { %3660 = vst.msk [vmem:[%s7174_s24 + $0x30] sm:$0xf] %vm3647_vm0, %v3576_v54 }
 0x36e   : > { %v3580_v34 = vpop.permute.xlu0 %3579 }
 0x36f   : > { %3662 = vst.msk [vmem:[%s7174_s24 + $0x38] sm:$0xf] %vm3647_vm0, %v3580_v34 }
 0x37e   : > { %v3584_v57 = vpop.permute.xlu0 %3583 }
 0x37f   : > { %3664 = vst.msk [vmem:[%s7174_s24 + $0x40] sm:$0xf] %vm3647_vm0, %v3584_v57 }
 0x38a   : > { %v3588_v49 = vpop.permute.xlu0 %3587 }
 0x38b   : > { %3666 = vst.msk [vmem:[%s7174_s24 + $0x48] sm:$0xf] %vm3647_vm0, %v3588_v49 }
 0x392   : > { %v3592_v61 = vpop.permute.xlu0 %3591 }
 0x393   : > { %3668 = vst.msk [vmem:[%s7174_s24 + $0x50] sm:$0xf] %vm3647_vm0, %v3592_v61 }
 0x39a   : > { %v3596_v13 = vpop.permute.xlu0 %3595 }
 0x39b   : > { %3670 = vst.msk [vmem:[%s7174_s24 + $0x58] sm:$0xf] %vm3647_vm0, %v3596_v13 }
 0x3a2   : > { %v3600_v31 = vpop.permute.xlu0 %3599 }
 0x3a3   : > { %3672 = vst.msk [vmem:[%s7174_s24 + $0x60] sm:$0xf] %vm3647_vm0, %v3600_v31 }
 0x3aa   : > { %v3604_v40 = vpop.permute.xlu0 %3603 }
 0x3ab   : > { %3674 = vst.msk [vmem:[%s7174_s24 + $0x68] sm:$0xf] %vm3647_vm0, %v3604_v40  ;;  %v4235_v37 = vpop.xlane.xlu1 %4234 }
 0x3ac   : > { %v4236_v11 = vrot.slane %v4235_v37, 4 }
 0x3ae   : > { %v4237_v38 = vadd.f32 %v4236_v11, %v4235_v37 }
 0x3af   : > { %v3570_v36 = vpop.permute.xlu1 %3569 }
 0x3b0   : > { %v4238_v8 = vrot.slane %v4237_v38, 2  ;;  %3657 = vst.msk [vmem:[%s7174_s24 + $0x24] sm:$0xf] %vm3647_vm0, %v3570_v36 }
 0x3b2   : > { %v3608_v2 = vpop.permute.xlu0 %3607  ;;  %v4239_v55 = vadd.f32 %v4238_v8, %v4237_v38 }
 0x3b3   : > { %3676 = vst.msk [vmem:[%s7174_s24 + $0x70] sm:$0xf] %vm3647_vm0, %v3608_v2  ;;  %v3574_v29 = vpop.permute.xlu1 %3573 }
 0x3b4   : > { %3659 = vst.msk [vmem:[%s7174_s24 + $0x2c] sm:$0xf] %vm3647_vm0, %v3574_v29  ;;  %v4240_v27 = vrot.slane %v4239_v55, 1 }
 0x3b6   : > { %v3612_v48 = vpop.permute.xlu0 %3611  ;;  %v4241_v26 = vadd.f32 %v4240_v27, %v4239_v55 }
 0x3b7   : > { %3678 = vst.msk [vmem:[%s7174_s24 + $0x78] sm:$0xf] %vm3647_vm0, %v3612_v48  ;;  %v3578_v58 = vpop.permute.xlu1 %3577 }
 0x3b8   : > { %3661 = vst.msk [vmem:[%s7174_s24 + $0x34] sm:$0xf] %vm3647_vm0, %v3578_v58 }
 0x3b9   : > { %4929 = vpush %v4241_v26 }
 0x3bb   : > { %v3582_v53 = vpop.permute.xlu1 %3581 }
 0x3bc   : > { %3663 = vst.msk [vmem:[%s7174_s24 + $0x3c] sm:$0xf] %vm3647_vm0, %v3582_v53 }
 0x3bf   : > { %v3586_v30 = vpop.permute.xlu1 %3585 }
 0x3c0   : > { %3665 = vst.msk [vmem:[%s7174_s24 + $0x44] sm:$0xf] %vm3647_vm0, %v3586_v30 }
 0x3c3   : > { %v3590_v25 = vpop.permute.xlu1 %3589 }
 0x3c4   : > { %3667 = vst.msk [vmem:[%s7174_s24 + $0x4c] sm:$0xf] %vm3647_vm0, %v3590_v25 }
 0x3c7   : > { %v3594_v1 = vpop.permute.xlu1 %3593 }
 0x3c8   : > { %3669 = vst.msk [vmem:[%s7174_s24 + $0x54] sm:$0xf] %vm3647_vm0, %v3594_v1 }
 0x3cb   : > { %v3598_v60 = vpop.permute.xlu1 %3597 }
 0x3cc   : > { %3671 = vst.msk [vmem:[%s7174_s24 + $0x5c] sm:$0xf] %vm3647_vm0, %v3598_v60 }
 0x3cf   : > { %v3602_v45 = vpop.permute.xlu1 %3601 }
 0x3d0   : > { %3673 = vst.msk [vmem:[%s7174_s24 + $0x64] sm:$0xf] %vm3647_vm0, %v3602_v45 }
 0x3d3   : > { %v3606_v0 = vpop.permute.xlu1 %3605 }
 0x3d4   : > { %3675 = vst.msk [vmem:[%s7174_s24 + $0x6c] sm:$0xf] %vm3647_vm0, %v3606_v0 }
 0x3d7   : > { %v3610_v35 = vpop.permute.xlu1 %3609 }
 0x3d8   : > { %3677 = vst.msk [vmem:[%s7174_s24 + $0x74] sm:$0xf] %vm3647_vm0, %v3610_v35 }
 0x3db   : > { %v3614_v6 = vpop.permute.xlu1 %3613 }
 0x3dc   : > { %3679 = vst.msk [vmem:[%s7174_s24 + $0x7c] sm:$0xf] %vm3647_vm0, %v3614_v6 }
 0x3ea   : > { %s4930_s27 = spop %4929 }
 0x3eb   : > { %v4243_v16 = vstv %s4930_s27 }
 0x3ec   : > { %4245 = vst [vmem:[%s509_s26] sm:$0xff] %v4243_v16 }
 0x3ed PF: > { %s23_s21 = sadd.s32 1, %s5299_s21  }
 0x3ee   : > { %p20_p5 = scmp.ge.s32.totalorder %s23_s21, 4  }
 0x3f0   :  { %22 = sbr.rel (!%p20_p5) target bundleno = 1 (0x1), region = 123 }

</bundles_post_ra>
